<compile_context>
chip_gen: v6e
topology: v6e:2x2x1
jax: 0.10.0
libtpu: 0.0.40
codegen_flags: <defaults>
</compile_context>

<pallas_src>
import functools
import numpy as np

import jax
import jax.numpy as jnp
from jax.experimental import pallas as pl
from jax.experimental.pallas import tpu as pltpu

LN_EPS = 1e-5


# ----------------------------- in-kernel math helpers -----------------------------

def _layernorm(x, g, b):
    mu = jnp.mean(x, axis=-1, keepdims=True)
    var = jnp.mean((x - mu) ** 2, axis=-1, keepdims=True)
    return (x - mu) * jax.lax.rsqrt(var + LN_EPS) * g + b


def _gelu_tanh(x):
    c = np.float32(np.sqrt(2.0 / np.pi))
    return 0.5 * x * (1.0 + jnp.tanh(c * (x + 0.044715 * x * x * x)))


def _softmax_lastdim(x):
    m = jnp.max(x, axis=-1, keepdims=True)
    e = jnp.exp(x - m)
    return e / jnp.sum(e, axis=-1, keepdims=True)


# ----------------------------- fused Pallas kernel -----------------------------

def fused_vit_kernel(patches_ref, wmap_ref, posb_ref, bias_ref,
                     g1_ref, b1_ref, wqkv_ref, bqkv_ref,
                     g2_ref, b2_ref, w1_ref, bb1_ref, w2_ref, bb2_ref,
                     out_ref, msa_ref, *, n_blocks, n_heads, d_head):
    """Whole ViT forward on one (N*S, D) token slab kept in VMEM.

    patches_ref: (N*S, input_d)  -- row 0 of each image is zero (cls slot)
    posb_ref:    (N*S, D)        -- pos-embed + linear_mapper bias, cls rows hold cls+pos[0]
    bias_ref:    (N*S, N*S)      -- additive attention mask: 0 same-image, -1e30 cross-image
    w/b *_ref:   stacked along a leading n_blocks axis
    msa_ref:     (N*S, D) VMEM scratch for assembling per-head attention outputs
    """
    D = n_heads * d_head
    scale = np.float32(1.0 / np.sqrt(d_head))

    # Hoisted once: additive same-image mask (reused for every head / block).
    bias = bias_ref[...]

    # Patch embedding: linear map + (pos embed + bias + cls) in one shot.
    x = jnp.dot(patches_ref[...], wmap_ref[...],
                preferred_element_type=jnp.float32) + posb_ref[...]

    for blk in range(n_blocks):                 # static unroll (n_blocks tiny)
        # ---- MHSA branch ----
        xn = _layernorm(x, g1_ref[blk], b1_ref[blk])
        # Fused q/k/v projection: block-diagonal (D, 3D) weight -> one MXU push.
        qkv = jnp.dot(xn, wqkv_ref[blk],
                      preferred_element_type=jnp.float32) + bqkv_ref[blk]
        for h in range(n_heads):                # static unroll
            lo = h * d_head
            q = qkv[:, lo:lo + d_head]
            k = qkv[:, D + lo:D + lo + d_head]
            v = qkv[:, 2 * D + lo:2 * D + lo + d_head]
            # q @ k^T without materializing a transpose.
            scores = jax.lax.dot_general(
                q, k, (((1,), (1,)), ((), ())),
                preferred_element_type=jnp.float32)
            att = _softmax_lastdim(scores * scale + bias)
            # Write head output directly into its lane slice (no lane concat).
            msa_ref[:, lo:lo + d_head] = jnp.dot(
                att, v, preferred_element_type=jnp.float32)
        x = x + msa_ref[...]

        # ---- MLP branch ----
        xn2 = _layernorm(x, g2_ref[blk], b2_ref[blk])
        hid = _gelu_tanh(jnp.dot(xn2, w1_ref[blk],
                                 preferred_element_type=jnp.float32) + bb1_ref[blk])
        x = x + jnp.dot(hid, w2_ref[blk],
                        preferred_element_type=jnp.float32) + bb2_ref[blk]

    out_ref[...] = x


# ----------------------------- pallas_call wrapper -----------------------------

def _full_spec(shape):
    n = len(shape)
    return pl.BlockSpec(shape, lambda i, _n=n: (0,) * _n)


def fused_vit_call(patches2d, posb, attn_bias, wmap, packed, n_heads, d_head):
    NS = patches2d.shape[0]
    D = wmap.shape[1]
    n_blocks = packed["g1"].shape[0]

    kernel = functools.partial(fused_vit_kernel, n_blocks=n_blocks,
                               n_heads=n_heads, d_head=d_head)

    inputs = [patches2d, wmap, posb, attn_bias,
              packed["g1"], packed["b1"], packed["wqkv"], packed["bqkv"],
              packed["g2"], packed["b2"], packed["w1"], packed["bb1"],
              packed["w2"], packed["bb2"]]

    return pl.pallas_call(
        kernel,
        out_shape=jax.ShapeDtypeStruct((NS, D), jnp.float32),
        grid=(1,),
        in_specs=[_full_spec(a.shape) for a in inputs],
        out_specs=pl.BlockSpec((NS, D), lambda i: (0, 0)),
        scratch_shapes=[pltpu.VMEM((NS, D), jnp.float32)],
        compiler_params=pltpu.CompilerParams(
            dimension_semantics=("arbitrary",)),
    )(*inputs)


# ----------------------------- parameters & forward -----------------------------

def get_positional_embeddings(sequence_length, d):
    result = np.ones((sequence_length, d), dtype=np.float32)
    for i in range(sequence_length):
        for j in range(d):
            if j % 2 == 0:
                result[i, j] = np.sin(i / 10000 ** (j / d))
            else:
                result[i, j] = np.cos(i / 10000 ** ((j - 1) / d))
    return jnp.asarray(result)


def init_params(key, chw=(1, 28, 28), n_patches=7, hidden_d=8, n_heads=2,
                n_blocks=2, mlp_ratio=4):
    c, h, w = chw
    ps = h // n_patches
    input_d = c * ps * ps
    d_head = hidden_d // n_heads
    keys = iter(jax.random.split(key, 128))

    def linear(in_d, out_d):
        lim = 1.0 / np.sqrt(in_d)
        W = jax.random.uniform(next(keys), (in_d, out_d), jnp.float32, -lim, lim)
        b = jax.random.uniform(next(keys), (1, out_d), jnp.float32, -lim, lim)
        return W, b

    wmap, bmap = linear(input_d, hidden_d)
    cls = jax.random.uniform(next(keys), (1, hidden_d), jnp.float32)       # torch.rand
    pos = get_positional_embeddings(n_patches ** 2 + 1, hidden_d)

    blocks = []
    for _ in range(n_blocks):
        def per_head():
            Ws, bs = [], []
            for _ in range(n_heads):
                W, b = linear(d_head, d_head)
                Ws.append(W)
                bs.append(b)
            return jnp.stack(Ws), jnp.stack(bs)        # (H, dh, dh), (H, 1, dh)
        wq, bq = per_head()
        wk, bk = per_head()
        wv, bv = per_head()
        w1, bb1 = linear(hidden_d, mlp_ratio * hidden_d)
        w2, bb2 = linear(mlp_ratio * hidden_d, hidden_d)
        blocks.append(dict(
            g1=jnp.ones((1, hidden_d), jnp.float32), b1=jnp.zeros((1, hidden_d), jnp.float32),
            wq=wq, bq=bq, wk=wk, bk=bk, wv=wv, bv=bv,
            g2=jnp.ones((1, hidden_d), jnp.float32), b2=jnp.zeros((1, hidden_d), jnp.float32),
            w1=w1, bb1=bb1, w2=w2, bb2=bb2,
        ))
    return dict(wmap=wmap, bmap=bmap, cls=cls, pos=pos, blocks=blocks)


def _pack_blocks(blocks, n_heads):
    """Stack per-block params along a leading axis and fuse per-head q/k/v
    Linear(d_head, d_head) weights into one block-diagonal (D, 3D) matrix."""
    def block_diag(w):                       # (H, dh, dh) -> (D, D)
        H, dh, _ = w.shape
        D = H * dh
        out = jnp.zeros((D, D), jnp.float32)
        for h in range(H):
            out = out.at[h * dh:(h + 1) * dh, h * dh:(h + 1) * dh].set(w[h])
        return out

    def pack_block(blk):
        wqkv = jnp.concatenate(
            [block_diag(blk["wq"]), block_diag(blk["wk"]), block_diag(blk["wv"])],
            axis=1)                                                  # (D, 3D)
        bqkv = jnp.concatenate(
            [blk["bq"].reshape(1, -1), blk["bk"].reshape(1, -1),
             blk["bv"].reshape(1, -1)], axis=1)                       # (1, 3D)
        return wqkv, bqkv

    wqkv_l, bqkv_l = zip(*[pack_block(b) for b in blocks])
    return dict(
        g1=jnp.stack([b["g1"] for b in blocks]),
        b1=jnp.stack([b["b1"] for b in blocks]),
        wqkv=jnp.stack(wqkv_l),
        bqkv=jnp.stack(bqkv_l),
        g2=jnp.stack([b["g2"] for b in blocks]),
        b2=jnp.stack([b["b2"] for b in blocks]),
        w1=jnp.stack([b["w1"] for b in blocks]),
        bb1=jnp.stack([b["bb1"] for b in blocks]),
        w2=jnp.stack([b["w2"] for b in blocks]),
        bb2=jnp.stack([b["bb2"] for b in blocks]),
    )


def patchify(images, n_patches):
    # images: (N, C, H, W) -> (N, n_patches**2, C*ps*ps); flatten order is (C, ps, ps)
    N, C, H, W = images.shape
    ps = H // n_patches
    x = images.reshape(N, C, n_patches, ps, n_patches, ps)
    x = x.transpose(0, 2, 4, 1, 3, 5)
    return x.reshape(N, n_patches * n_patches, C * ps * ps)


def vit_forward(images, params, n_patches, n_heads):
    N = images.shape[0]
    D = params["wmap"].shape[1]
    d_head = D // n_heads
    S = n_patches ** 2 + 1

    patches = patchify(images, n_patches)                  # (N, S-1, In)
    In = patches.shape[-1]
    # Row 0 of each image is a zero "cls slot" so the whole batch is one
    # (N*S, In) @ (In, D) matmul inside the kernel.
    patches_p = jnp.concatenate(
        [jnp.zeros((N, 1, In), jnp.float32), patches], axis=1)     # (N, S, In)
    patches2d = patches_p.reshape(N * S, In)

    # Positional embedding + mapper bias folded per row; cls rows = cls + pos[0].
    posb = jnp.tile(params["pos"], (N, 1)) + params["bmap"]         # (N*S, D)
    cls_row = params["pos"][0:1] + params["cls"]                    # (1, D)
    posb = posb.at[jnp.arange(N) * S].set(jnp.broadcast_to(cls_row, (N, D)))

    # Additive attention mask: 0 within an image, -1e30 across images, so all
    # images share one batched attention per head.
    img_ids = jnp.repeat(jnp.arange(N), S)
    attn_bias = jnp.where(img_ids[:, None] == img_ids[None, :],
                          0.0, -1e30).astype(jnp.float32)           # (N*S, N*S)

    packed = _pack_blocks(params["blocks"], n_heads)
    out2d = fused_vit_call(patches2d, posb, attn_bias, params["wmap"],
                           packed, n_heads, d_head)
    return out2d.reshape(N, S, D)


# ----------------------------- pure-JAX reference (for sanity check) -----------------------------

def vit_forward_ref(images, params, n_patches, n_heads):
    patches = patchify(images, n_patches)
    tok = patches @ params["wmap"] + params["bmap"]
    N = tok.shape[0]
    cls = jnp.broadcast_to(params["cls"][None], (N, 1, params["cls"].shape[1]))
    out = jnp.concatenate([cls, tok], axis=1) + params["pos"][None]
    D = out.shape[-1]
    dh = D // n_heads
    for blk in params["blocks"]:
        xn = _layernorm(out, blk["g1"], blk["b1"])
        heads = []
        for h in range(n_heads):
            seq = xn[..., h * dh:(h + 1) * dh]
            q = seq @ blk["wq"][h] + blk["bq"][h]
            k = seq @ blk["wk"][h] + blk["bk"][h]
            v = seq @ blk["wv"][h] + blk["bv"][h]
            att = jax.nn.softmax(jnp.einsum("nsd,ntd->nst", q, k) / np.sqrt(dh), axis=-1)
            heads.append(jnp.einsum("nst,ntd->nsd", att, v))
        out = out + jnp.concatenate(heads, axis=-1)
        xn2 = _layernorm(out, blk["g2"], blk["b2"])
        out = out + (_gelu_tanh(xn2 @ blk["w1"] + blk["bb1"]) @ blk["w2"] + blk["bb2"])
    return out


# ----------------------------- main -----------------------------

if __name__ == "__main__":
    chw, n_patches, hidden_d, n_heads, n_blocks = (1, 28, 28), 7, 8, 2, 2
    batch = 2

    key = jax.random.PRNGKey(0)
    k_img, k_param = jax.random.split(key)
    images = jax.random.normal(k_img, (batch,) + chw, jnp.float32)
    params = init_params(k_param, chw, n_patches, hidden_d, n_heads, n_blocks)

    forward = jax.jit(vit_forward, static_argnums=(2, 3))
    out = forward(images, params, n_patches, n_heads)
    out = jax.block_until_ready(out)
    assert out.shape == (batch, n_patches ** 2 + 1, hidden_d)

    ref = vit_forward_ref(images, params, n_patches, n_heads)
    np.testing.assert_allclose(np.asarray(out), np.asarray(ref), rtol=1e-3, atol=1e-3)

    print("KERNEL_OK")
</pallas_src>

<mosaic_0001>
module attributes {stable_mosaic.version = 11 : i64} {
  func.func @fused_vit_kernel(%arg0: i32, %arg1: memref<100x16xf32, #tpu.memory_space<vmem>>, %arg2: memref<16x8xf32, #tpu.memory_space<vmem>>, %arg3: memref<100x8xf32, #tpu.memory_space<vmem>>, %arg4: memref<100x100xf32, #tpu.memory_space<vmem>>, %arg5: memref<2x1x8xf32, #tpu.memory_space<vmem>>, %arg6: memref<2x1x8xf32, #tpu.memory_space<vmem>>, %arg7: memref<2x8x24xf32, #tpu.memory_space<vmem>>, %arg8: memref<2x1x24xf32, #tpu.memory_space<vmem>>, %arg9: memref<2x1x8xf32, #tpu.memory_space<vmem>>, %arg10: memref<2x1x8xf32, #tpu.memory_space<vmem>>, %arg11: memref<2x8x32xf32, #tpu.memory_space<vmem>>, %arg12: memref<2x1x32xf32, #tpu.memory_space<vmem>>, %arg13: memref<2x32x8xf32, #tpu.memory_space<vmem>>, %arg14: memref<2x1x8xf32, #tpu.memory_space<vmem>>, %arg15: memref<100x8xf32, #tpu.memory_space<vmem>>, %arg16: memref<100x8xf32, #tpu.memory_space<vmem>>) attributes {dimension_semantics = [#tpu.dimension_semantics<arbitrary>], iteration_bounds = array<i64: 1>, scalar_prefetch = 0 : i64, scratch_operands = 1 : i64, tpu.core_type = #tpu.core_type<tc>, window_params = [{pipeline_mode = #tpu.pipeline_mode<synchronous>, transform_indices = @transform_0, window_bounds = array<i64: 100, 16>}, {pipeline_mode = #tpu.pipeline_mode<synchronous>, transform_indices = @transform_1, window_bounds = array<i64: 16, 8>}, {pipeline_mode = #tpu.pipeline_mode<synchronous>, transform_indices = @transform_2, window_bounds = array<i64: 100, 8>}, {pipeline_mode = #tpu.pipeline_mode<synchronous>, transform_indices = @transform_3, window_bounds = array<i64: 100, 100>}, {pipeline_mode = #tpu.pipeline_mode<synchronous>, transform_indices = @transform_4, window_bounds = array<i64: 2, 1, 8>}, {pipeline_mode = #tpu.pipeline_mode<synchronous>, transform_indices = @transform_5, window_bounds = array<i64: 2, 1, 8>}, {pipeline_mode = #tpu.pipeline_mode<synchronous>, transform_indices = @transform_6, window_bounds = array<i64: 2, 8, 24>}, {pipeline_mode = #tpu.pipeline_mode<synchronous>, transform_indices = @transform_7, window_bounds = array<i64: 2, 1, 24>}, {pipeline_mode = #tpu.pipeline_mode<synchronous>, transform_indices = @transform_8, window_bounds = array<i64: 2, 1, 8>}, {pipeline_mode = #tpu.pipeline_mode<synchronous>, transform_indices = @transform_9, window_bounds = array<i64: 2, 1, 8>}, {pipeline_mode = #tpu.pipeline_mode<synchronous>, transform_indices = @transform_10, window_bounds = array<i64: 2, 8, 32>}, {pipeline_mode = #tpu.pipeline_mode<synchronous>, transform_indices = @transform_11, window_bounds = array<i64: 2, 1, 32>}, {pipeline_mode = #tpu.pipeline_mode<synchronous>, transform_indices = @transform_12, window_bounds = array<i64: 2, 32, 8>}, {pipeline_mode = #tpu.pipeline_mode<synchronous>, transform_indices = @transform_13, window_bounds = array<i64: 2, 1, 8>}, {pipeline_mode = #tpu.pipeline_mode<synchronous>, transform_indices = @transform_14, window_bounds = array<i64: 100, 8>}]} {
    %c0 = arith.constant 0 : index
    %c0_0 = arith.constant 0 : index
    %0 = vector.load %arg4[%c0, %c0_0] : memref<100x100xf32, #tpu.memory_space<vmem>>, vector<100x100xf32>
    %c0_1 = arith.constant 0 : index
    %c0_2 = arith.constant 0 : index
    %1 = vector.load %arg1[%c0_1, %c0_2] : memref<100x16xf32, #tpu.memory_space<vmem>>, vector<100x16xf32>
    %c0_3 = arith.constant 0 : index
    %c0_4 = arith.constant 0 : index
    %2 = vector.load %arg2[%c0_3, %c0_4] : memref<16x8xf32, #tpu.memory_space<vmem>>, vector<16x8xf32>
    %cst = arith.constant dense<0.000000e+00> : vector<100x8xf32>
    %3 = tpu.matmul %1, %2, %cst {dimension_numbers = #tpu.dot_dimension_numbers<[1], [0], [0], [1], [0, 0, 1, 1], [], []>} : vector<100x16xf32>, vector<16x8xf32>, vector<100x8xf32> -> vector<100x8xf32>
    %c0_5 = arith.constant 0 : index
    %c0_6 = arith.constant 0 : index
    %4 = vector.load %arg3[%c0_5, %c0_6] : memref<100x8xf32, #tpu.memory_space<vmem>>, vector<100x8xf32>
    %5 = arith.addf %3, %4 : vector<100x8xf32>
    %c0_7 = arith.constant 0 : index
    %c0_8 = arith.constant 0 : index
    %c0_9 = arith.constant 0 : index
    %6 = vector.load %arg5[%c0_7, %c0_8, %c0_9] : memref<2x1x8xf32, #tpu.memory_space<vmem>>, vector<1x1x8xf32>
    %7 = vector.shape_cast %6 : vector<1x1x8xf32> to vector<1x8xf32>
    %c0_10 = arith.constant 0 : index
    %c0_11 = arith.constant 0 : index
    %c0_12 = arith.constant 0 : index
    %8 = vector.load %arg6[%c0_10, %c0_11, %c0_12] : memref<2x1x8xf32, #tpu.memory_space<vmem>>, vector<1x1x8xf32>
    %9 = vector.shape_cast %8 : vector<1x1x8xf32> to vector<1x8xf32>
    %cst_13 = arith.constant dense<0.000000e+00> : vector<100xf32>
    %10 = vector.multi_reduction <add>, %5, %cst_13 [1] : vector<100x8xf32> to vector<100xf32>
    %11 = vector.shape_cast %10 : vector<100xf32> to vector<100x1xf32>
    %cst_14 = arith.constant 8.000000e+00 : f32
    %12 = vector.broadcast %cst_14 : f32 to vector<100x1xf32>
    %13 = arith.divf %11, %12 : vector<100x1xf32>
    %14 = vector.broadcast %13 : vector<100x1xf32> to vector<100x8xf32>
    %15 = arith.subf %5, %14 : vector<100x8xf32>
    %16 = arith.mulf %15, %15 : vector<100x8xf32>
    %cst_15 = arith.constant dense<0.000000e+00> : vector<100xf32>
    %17 = vector.multi_reduction <add>, %16, %cst_15 [1] : vector<100x8xf32> to vector<100xf32>
    %18 = vector.shape_cast %17 : vector<100xf32> to vector<100x1xf32>
    %cst_16 = arith.constant 8.000000e+00 : f32
    %19 = vector.broadcast %cst_16 : f32 to vector<100x1xf32>
    %20 = arith.divf %18, %19 : vector<100x1xf32>
    %21 = vector.broadcast %13 : vector<100x1xf32> to vector<100x8xf32>
    %22 = arith.subf %5, %21 : vector<100x8xf32>
    %cst_17 = arith.constant 9.99999974E-6 : f32
    %23 = vector.broadcast %cst_17 : f32 to vector<100x1xf32>
    %24 = arith.addf %20, %23 : vector<100x1xf32>
    %25 = math.rsqrt %24 : vector<100x1xf32>
    %26 = vector.broadcast %25 : vector<100x1xf32> to vector<100x8xf32>
    %27 = arith.mulf %22, %26 : vector<100x8xf32>
    %28 = vector.broadcast %7 : vector<1x8xf32> to vector<100x8xf32>
    %29 = arith.mulf %27, %28 : vector<100x8xf32>
    %30 = vector.broadcast %9 : vector<1x8xf32> to vector<100x8xf32>
    %31 = arith.addf %29, %30 : vector<100x8xf32>
    %c0_18 = arith.constant 0 : index
    %c0_19 = arith.constant 0 : index
    %c0_20 = arith.constant 0 : index
    %32 = vector.load %arg7[%c0_18, %c0_19, %c0_20] : memref<2x8x24xf32, #tpu.memory_space<vmem>>, vector<1x8x24xf32>
    %33 = vector.shape_cast %32 : vector<1x8x24xf32> to vector<8x24xf32>
    %cst_21 = arith.constant dense<0.000000e+00> : vector<100x24xf32>
    %34 = tpu.matmul %31, %33, %cst_21 {dimension_numbers = #tpu.dot_dimension_numbers<[1], [0], [0], [1], [0, 0, 1, 1], [], []>} : vector<100x8xf32>, vector<8x24xf32>, vector<100x24xf32> -> vector<100x24xf32>
    %c0_22 = arith.constant 0 : index
    %c0_23 = arith.constant 0 : index
    %c0_24 = arith.constant 0 : index
    %35 = vector.load %arg8[%c0_22, %c0_23, %c0_24] : memref<2x1x24xf32, #tpu.memory_space<vmem>>, vector<1x1x24xf32>
    %36 = vector.shape_cast %35 : vector<1x1x24xf32> to vector<1x24xf32>
    %37 = vector.broadcast %36 : vector<1x24xf32> to vector<100x24xf32>
    %38 = arith.addf %34, %37 : vector<100x24xf32>
    %39 = vector.extract_strided_slice %38 {offsets = [0, 0], sizes = [100, 4], strides = [1, 1]} : vector<100x24xf32> to vector<100x4xf32>
    %40 = vector.extract_strided_slice %38 {offsets = [0, 8], sizes = [100, 4], strides = [1, 1]} : vector<100x24xf32> to vector<100x4xf32>
    %41 = vector.extract_strided_slice %38 {offsets = [0, 16], sizes = [100, 4], strides = [1, 1]} : vector<100x24xf32> to vector<100x4xf32>
    %cst_25 = arith.constant dense<0.000000e+00> : vector<100x100xf32>
    %42 = tpu.matmul %39, %40, %cst_25 {dimension_numbers = #tpu.dot_dimension_numbers<[1], [1], [0], [0], [0, 0, 1, 0], [], []>} : vector<100x4xf32>, vector<100x4xf32>, vector<100x100xf32> -> vector<100x100xf32>
    %cst_26 = arith.constant 5.000000e-01 : f32
    %43 = vector.broadcast %cst_26 : f32 to vector<100x100xf32>
    %44 = arith.mulf %42, %43 : vector<100x100xf32>
    %45 = arith.addf %44, %0 : vector<100x100xf32>
    %cst_27 = arith.constant dense<0xFF800000> : vector<100xf32>
    %46 = vector.multi_reduction <maximumf>, %45, %cst_27 [1] : vector<100x100xf32> to vector<100xf32>
    %47 = vector.shape_cast %46 : vector<100xf32> to vector<100x1xf32>
    %48 = vector.broadcast %47 : vector<100x1xf32> to vector<100x100xf32>
    %49 = arith.subf %45, %48 : vector<100x100xf32>
    %50 = math.exp %49 : vector<100x100xf32>
    %cst_28 = arith.constant dense<0.000000e+00> : vector<100xf32>
    %51 = vector.multi_reduction <add>, %50, %cst_28 [1] : vector<100x100xf32> to vector<100xf32>
    %52 = vector.shape_cast %51 : vector<100xf32> to vector<100x1xf32>
    %53 = vector.broadcast %52 : vector<100x1xf32> to vector<100x100xf32>
    %54 = arith.divf %50, %53 : vector<100x100xf32>
    %cst_29 = arith.constant dense<0.000000e+00> : vector<100x4xf32>
    %55 = tpu.matmul %54, %41, %cst_29 {dimension_numbers = #tpu.dot_dimension_numbers<[1], [0], [0], [1], [0, 0, 1, 1], [], []>} : vector<100x100xf32>, vector<100x4xf32>, vector<100x4xf32> -> vector<100x4xf32>
    %c0_30 = arith.constant 0 : index
    %c0_31 = arith.constant 0 : index
    %56 = vector.load %arg16[%c0_30, %c0_31] : memref<100x8xf32, #tpu.memory_space<vmem>>, vector<100x4xf32>
    tpu.vector_store %arg16[%c0_30, %c0_31], %55 {strides = array<i32>} : memref<100x8xf32, #tpu.memory_space<vmem>>, vector<100x4xf32>,
    %57 = vector.extract_strided_slice %38 {offsets = [0, 4], sizes = [100, 4], strides = [1, 1]} : vector<100x24xf32> to vector<100x4xf32>
    %58 = vector.extract_strided_slice %38 {offsets = [0, 12], sizes = [100, 4], strides = [1, 1]} : vector<100x24xf32> to vector<100x4xf32>
    %59 = vector.extract_strided_slice %38 {offsets = [0, 20], sizes = [100, 4], strides = [1, 1]} : vector<100x24xf32> to vector<100x4xf32>
    %cst_32 = arith.constant dense<0.000000e+00> : vector<100x100xf32>
    %60 = tpu.matmul %57, %58, %cst_32 {dimension_numbers = #tpu.dot_dimension_numbers<[1], [1], [0], [0], [0, 0, 1, 0], [], []>} : vector<100x4xf32>, vector<100x4xf32>, vector<100x100xf32> -> vector<100x100xf32>
    %cst_33 = arith.constant 5.000000e-01 : f32
    %61 = vector.broadcast %cst_33 : f32 to vector<100x100xf32>
    %62 = arith.mulf %60, %61 : vector<100x100xf32>
    %63 = arith.addf %62, %0 : vector<100x100xf32>
    %cst_34 = arith.constant dense<0xFF800000> : vector<100xf32>
    %64 = vector.multi_reduction <maximumf>, %63, %cst_34 [1] : vector<100x100xf32> to vector<100xf32>
    %65 = vector.shape_cast %64 : vector<100xf32> to vector<100x1xf32>
    %66 = vector.broadcast %65 : vector<100x1xf32> to vector<100x100xf32>
    %67 = arith.subf %63, %66 : vector<100x100xf32>
    %68 = math.exp %67 : vector<100x100xf32>
    %cst_35 = arith.constant dense<0.000000e+00> : vector<100xf32>
    %69 = vector.multi_reduction <add>, %68, %cst_35 [1] : vector<100x100xf32> to vector<100xf32>
    %70 = vector.shape_cast %69 : vector<100xf32> to vector<100x1xf32>
    %71 = vector.broadcast %70 : vector<100x1xf32> to vector<100x100xf32>
    %72 = arith.divf %68, %71 : vector<100x100xf32>
    %cst_36 = arith.constant dense<0.000000e+00> : vector<100x4xf32>
    %73 = tpu.matmul %72, %59, %cst_36 {dimension_numbers = #tpu.dot_dimension_numbers<[1], [0], [0], [1], [0, 0, 1, 1], [], []>} : vector<100x100xf32>, vector<100x4xf32>, vector<100x4xf32> -> vector<100x4xf32>
    %c0_37 = arith.constant 0 : index
    %c4 = arith.constant 4 : index
    %74 = vector.load %arg16[%c0_37, %c4] : memref<100x8xf32, #tpu.memory_space<vmem>>, vector<100x4xf32>
    tpu.vector_store %arg16[%c0_37, %c4], %73 {strides = array<i32>} : memref<100x8xf32, #tpu.memory_space<vmem>>, vector<100x4xf32>,
    %c0_38 = arith.constant 0 : index
    %c0_39 = arith.constant 0 : index
    %75 = vector.load %arg16[%c0_38, %c0_39] : memref<100x8xf32, #tpu.memory_space<vmem>>, vector<100x8xf32>
    %76 = arith.addf %5, %75 : vector<100x8xf32>
    %c0_40 = arith.constant 0 : index
    %c0_41 = arith.constant 0 : index
    %c0_42 = arith.constant 0 : index
    %77 = vector.load %arg9[%c0_40, %c0_41, %c0_42] : memref<2x1x8xf32, #tpu.memory_space<vmem>>, vector<1x1x8xf32>
    %78 = vector.shape_cast %77 : vector<1x1x8xf32> to vector<1x8xf32>
    %c0_43 = arith.constant 0 : index
    %c0_44 = arith.constant 0 : index
    %c0_45 = arith.constant 0 : index
    %79 = vector.load %arg10[%c0_43, %c0_44, %c0_45] : memref<2x1x8xf32, #tpu.memory_space<vmem>>, vector<1x1x8xf32>
    %80 = vector.shape_cast %79 : vector<1x1x8xf32> to vector<1x8xf32>
    %cst_46 = arith.constant dense<0.000000e+00> : vector<100xf32>
    %81 = vector.multi_reduction <add>, %76, %cst_46 [1] : vector<100x8xf32> to vector<100xf32>
    %82 = vector.shape_cast %81 : vector<100xf32> to vector<100x1xf32>
    %cst_47 = arith.constant 8.000000e+00 : f32
    %83 = vector.broadcast %cst_47 : f32 to vector<100x1xf32>
    %84 = arith.divf %82, %83 : vector<100x1xf32>
    %85 = vector.broadcast %84 : vector<100x1xf32> to vector<100x8xf32>
    %86 = arith.subf %76, %85 : vector<100x8xf32>
    %87 = arith.mulf %86, %86 : vector<100x8xf32>
    %cst_48 = arith.constant dense<0.000000e+00> : vector<100xf32>
    %88 = vector.multi_reduction <add>, %87, %cst_48 [1] : vector<100x8xf32> to vector<100xf32>
    %89 = vector.shape_cast %88 : vector<100xf32> to vector<100x1xf32>
    %cst_49 = arith.constant 8.000000e+00 : f32
    %90 = vector.broadcast %cst_49 : f32 to vector<100x1xf32>
    %91 = arith.divf %89, %90 : vector<100x1xf32>
    %92 = vector.broadcast %84 : vector<100x1xf32> to vector<100x8xf32>
    %93 = arith.subf %76, %92 : vector<100x8xf32>
    %cst_50 = arith.constant 9.99999974E-6 : f32
    %94 = vector.broadcast %cst_50 : f32 to vector<100x1xf32>
    %95 = arith.addf %91, %94 : vector<100x1xf32>
    %96 = math.rsqrt %95 : vector<100x1xf32>
    %97 = vector.broadcast %96 : vector<100x1xf32> to vector<100x8xf32>
    %98 = arith.mulf %93, %97 : vector<100x8xf32>
    %99 = vector.broadcast %78 : vector<1x8xf32> to vector<100x8xf32>
    %100 = arith.mulf %98, %99 : vector<100x8xf32>
    %101 = vector.broadcast %80 : vector<1x8xf32> to vector<100x8xf32>
    %102 = arith.addf %100, %101 : vector<100x8xf32>
    %c0_51 = arith.constant 0 : index
    %c0_52 = arith.constant 0 : index
    %c0_53 = arith.constant 0 : index
    %103 = vector.load %arg11[%c0_51, %c0_52, %c0_53] : memref<2x8x32xf32, #tpu.memory_space<vmem>>, vector<1x8x32xf32>
    %104 = vector.shape_cast %103 : vector<1x8x32xf32> to vector<8x32xf32>
    %cst_54 = arith.constant dense<0.000000e+00> : vector<100x32xf32>
    %105 = tpu.matmul %102, %104, %cst_54 {dimension_numbers = #tpu.dot_dimension_numbers<[1], [0], [0], [1], [0, 0, 1, 1], [], []>} : vector<100x8xf32>, vector<8x32xf32>, vector<100x32xf32> -> vector<100x32xf32>
    %c0_55 = arith.constant 0 : index
    %c0_56 = arith.constant 0 : index
    %c0_57 = arith.constant 0 : index
    %106 = vector.load %arg12[%c0_55, %c0_56, %c0_57] : memref<2x1x32xf32, #tpu.memory_space<vmem>>, vector<1x1x32xf32>
    %107 = vector.shape_cast %106 : vector<1x1x32xf32> to vector<1x32xf32>
    %108 = vector.broadcast %107 : vector<1x32xf32> to vector<100x32xf32>
    %109 = arith.addf %105, %108 : vector<100x32xf32>
    %cst_58 = arith.constant 5.000000e-01 : f32
    %110 = vector.broadcast %cst_58 : f32 to vector<100x32xf32>
    %111 = arith.mulf %110, %109 : vector<100x32xf32>
    %cst_59 = arith.constant 4.471500e-02 : f32
    %112 = vector.broadcast %cst_59 : f32 to vector<100x32xf32>
    %113 = arith.mulf %112, %109 : vector<100x32xf32>
    %114 = arith.mulf %113, %109 : vector<100x32xf32>
    %115 = arith.mulf %114, %109 : vector<100x32xf32>
    %116 = arith.addf %109, %115 : vector<100x32xf32>
    %cst_60 = arith.constant 0.797884583 : f32
    %117 = vector.broadcast %cst_60 : f32 to vector<100x32xf32>
    %118 = arith.mulf %117, %116 : vector<100x32xf32>
    %119 = math.tanh %118 : vector<100x32xf32>
    %cst_61 = arith.constant 1.000000e+00 : f32
    %120 = vector.broadcast %cst_61 : f32 to vector<100x32xf32>
    %121 = arith.addf %120, %119 : vector<100x32xf32>
    %122 = arith.mulf %111, %121 : vector<100x32xf32>
    %c0_62 = arith.constant 0 : index
    %c0_63 = arith.constant 0 : index
    %c0_64 = arith.constant 0 : index
    %123 = vector.load %arg13[%c0_62, %c0_63, %c0_64] : memref<2x32x8xf32, #tpu.memory_space<vmem>>, vector<1x32x8xf32>
    %124 = vector.shape_cast %123 : vector<1x32x8xf32> to vector<32x8xf32>
    %cst_65 = arith.constant dense<0.000000e+00> : vector<100x8xf32>
    %125 = tpu.matmul %122, %124, %cst_65 {dimension_numbers = #tpu.dot_dimension_numbers<[1], [0], [0], [1], [0, 0, 1, 1], [], []>} : vector<100x32xf32>, vector<32x8xf32>, vector<100x8xf32> -> vector<100x8xf32>
    %126 = arith.addf %76, %125 : vector<100x8xf32>
    %c0_66 = arith.constant 0 : index
    %c0_67 = arith.constant 0 : index
    %c0_68 = arith.constant 0 : index
    %127 = vector.load %arg14[%c0_66, %c0_67, %c0_68] : memref<2x1x8xf32, #tpu.memory_space<vmem>>, vector<1x1x8xf32>
    %128 = vector.shape_cast %127 : vector<1x1x8xf32> to vector<1x8xf32>
    %129 = vector.broadcast %128 : vector<1x8xf32> to vector<100x8xf32>
    %130 = arith.addf %126, %129 : vector<100x8xf32>
    %c1 = arith.constant 1 : index
    %c0_69 = arith.constant 0 : index
    %c0_70 = arith.constant 0 : index
    %131 = vector.load %arg5[%c1, %c0_69, %c0_70] : memref<2x1x8xf32, #tpu.memory_space<vmem>>, vector<1x1x8xf32>
    %132 = vector.shape_cast %131 : vector<1x1x8xf32> to vector<1x8xf32>
    %c1_71 = arith.constant 1 : index
    %c0_72 = arith.constant 0 : index
    %c0_73 = arith.constant 0 : index
    %133 = vector.load %arg6[%c1_71, %c0_72, %c0_73] : memref<2x1x8xf32, #tpu.memory_space<vmem>>, vector<1x1x8xf32>
    %134 = vector.shape_cast %133 : vector<1x1x8xf32> to vector<1x8xf32>
    %cst_74 = arith.constant dense<0.000000e+00> : vector<100xf32>
    %135 = vector.multi_reduction <add>, %130, %cst_74 [1] : vector<100x8xf32> to vector<100xf32>
    %136 = vector.shape_cast %135 : vector<100xf32> to vector<100x1xf32>
    %cst_75 = arith.constant 8.000000e+00 : f32
    %137 = vector.broadcast %cst_75 : f32 to vector<100x1xf32>
    %138 = arith.divf %136, %137 : vector<100x1xf32>
    %139 = vector.broadcast %138 : vector<100x1xf32> to vector<100x8xf32>
    %140 = arith.subf %130, %139 : vector<100x8xf32>
    %141 = arith.mulf %140, %140 : vector<100x8xf32>
    %cst_76 = arith.constant dense<0.000000e+00> : vector<100xf32>
    %142 = vector.multi_reduction <add>, %141, %cst_76 [1] : vector<100x8xf32> to vector<100xf32>
    %143 = vector.shape_cast %142 : vector<100xf32> to vector<100x1xf32>
    %cst_77 = arith.constant 8.000000e+00 : f32
    %144 = vector.broadcast %cst_77 : f32 to vector<100x1xf32>
    %145 = arith.divf %143, %144 : vector<100x1xf32>
    %146 = vector.broadcast %138 : vector<100x1xf32> to vector<100x8xf32>
    %147 = arith.subf %130, %146 : vector<100x8xf32>
    %cst_78 = arith.constant 9.99999974E-6 : f32
    %148 = vector.broadcast %cst_78 : f32 to vector<100x1xf32>
    %149 = arith.addf %145, %148 : vector<100x1xf32>
    %150 = math.rsqrt %149 : vector<100x1xf32>
    %151 = vector.broadcast %150 : vector<100x1xf32> to vector<100x8xf32>
    %152 = arith.mulf %147, %151 : vector<100x8xf32>
    %153 = vector.broadcast %132 : vector<1x8xf32> to vector<100x8xf32>
    %154 = arith.mulf %152, %153 : vector<100x8xf32>
    %155 = vector.broadcast %134 : vector<1x8xf32> to vector<100x8xf32>
    %156 = arith.addf %154, %155 : vector<100x8xf32>
    %c1_79 = arith.constant 1 : index
    %c0_80 = arith.constant 0 : index
    %c0_81 = arith.constant 0 : index
    %157 = vector.load %arg7[%c1_79, %c0_80, %c0_81] : memref<2x8x24xf32, #tpu.memory_space<vmem>>, vector<1x8x24xf32>
    %158 = vector.shape_cast %157 : vector<1x8x24xf32> to vector<8x24xf32>
    %cst_82 = arith.constant dense<0.000000e+00> : vector<100x24xf32>
    %159 = tpu.matmul %156, %158, %cst_82 {dimension_numbers = #tpu.dot_dimension_numbers<[1], [0], [0], [1], [0, 0, 1, 1], [], []>} : vector<100x8xf32>, vector<8x24xf32>, vector<100x24xf32> -> vector<100x24xf32>
    %c1_83 = arith.constant 1 : index
    %c0_84 = arith.constant 0 : index
    %c0_85 = arith.constant 0 : index
    %160 = vector.load %arg8[%c1_83, %c0_84, %c0_85] : memref<2x1x24xf32, #tpu.memory_space<vmem>>, vector<1x1x24xf32>
    %161 = vector.shape_cast %160 : vector<1x1x24xf32> to vector<1x24xf32>
    %162 = vector.broadcast %161 : vector<1x24xf32> to vector<100x24xf32>
    %163 = arith.addf %159, %162 : vector<100x24xf32>
    %164 = vector.extract_strided_slice %163 {offsets = [0, 0], sizes = [100, 4], strides = [1, 1]} : vector<100x24xf32> to vector<100x4xf32>
    %165 = vector.extract_strided_slice %163 {offsets = [0, 8], sizes = [100, 4], strides = [1, 1]} : vector<100x24xf32> to vector<100x4xf32>
    %166 = vector.extract_strided_slice %163 {offsets = [0, 16], sizes = [100, 4], strides = [1, 1]} : vector<100x24xf32> to vector<100x4xf32>
    %cst_86 = arith.constant dense<0.000000e+00> : vector<100x100xf32>
    %167 = tpu.matmul %164, %165, %cst_86 {dimension_numbers = #tpu.dot_dimension_numbers<[1], [1], [0], [0], [0, 0, 1, 0], [], []>} : vector<100x4xf32>, vector<100x4xf32>, vector<100x100xf32> -> vector<100x100xf32>
    %cst_87 = arith.constant 5.000000e-01 : f32
    %168 = vector.broadcast %cst_87 : f32 to vector<100x100xf32>
    %169 = arith.mulf %167, %168 : vector<100x100xf32>
    %170 = arith.addf %169, %0 : vector<100x100xf32>
    %cst_88 = arith.constant dense<0xFF800000> : vector<100xf32>
    %171 = vector.multi_reduction <maximumf>, %170, %cst_88 [1] : vector<100x100xf32> to vector<100xf32>
    %172 = vector.shape_cast %171 : vector<100xf32> to vector<100x1xf32>
    %173 = vector.broadcast %172 : vector<100x1xf32> to vector<100x100xf32>
    %174 = arith.subf %170, %173 : vector<100x100xf32>
    %175 = math.exp %174 : vector<100x100xf32>
    %cst_89 = arith.constant dense<0.000000e+00> : vector<100xf32>
    %176 = vector.multi_reduction <add>, %175, %cst_89 [1] : vector<100x100xf32> to vector<100xf32>
    %177 = vector.shape_cast %176 : vector<100xf32> to vector<100x1xf32>
    %178 = vector.broadcast %177 : vector<100x1xf32> to vector<100x100xf32>
    %179 = arith.divf %175, %178 : vector<100x100xf32>
    %cst_90 = arith.constant dense<0.000000e+00> : vector<100x4xf32>
    %180 = tpu.matmul %179, %166, %cst_90 {dimension_numbers = #tpu.dot_dimension_numbers<[1], [0], [0], [1], [0, 0, 1, 1], [], []>} : vector<100x100xf32>, vector<100x4xf32>, vector<100x4xf32> -> vector<100x4xf32>
    %c0_91 = arith.constant 0 : index
    %c0_92 = arith.constant 0 : index
    %181 = vector.load %arg16[%c0_91, %c0_92] : memref<100x8xf32, #tpu.memory_space<vmem>>, vector<100x4xf32>
    tpu.vector_store %arg16[%c0_91, %c0_92], %180 {strides = array<i32>} : memref<100x8xf32, #tpu.memory_space<vmem>>, vector<100x4xf32>,
    %182 = vector.extract_strided_slice %163 {offsets = [0, 4], sizes = [100, 4], strides = [1, 1]} : vector<100x24xf32> to vector<100x4xf32>
    %183 = vector.extract_strided_slice %163 {offsets = [0, 12], sizes = [100, 4], strides = [1, 1]} : vector<100x24xf32> to vector<100x4xf32>
    %184 = vector.extract_strided_slice %163 {offsets = [0, 20], sizes = [100, 4], strides = [1, 1]} : vector<100x24xf32> to vector<100x4xf32>
    %cst_93 = arith.constant dense<0.000000e+00> : vector<100x100xf32>
    %185 = tpu.matmul %182, %183, %cst_93 {dimension_numbers = #tpu.dot_dimension_numbers<[1], [1], [0], [0], [0, 0, 1, 0], [], []>} : vector<100x4xf32>, vector<100x4xf32>, vector<100x100xf32> -> vector<100x100xf32>
    %cst_94 = arith.constant 5.000000e-01 : f32
    %186 = vector.broadcast %cst_94 : f32 to vector<100x100xf32>
    %187 = arith.mulf %185, %186 : vector<100x100xf32>
    %188 = arith.addf %187, %0 : vector<100x100xf32>
    %cst_95 = arith.constant dense<0xFF800000> : vector<100xf32>
    %189 = vector.multi_reduction <maximumf>, %188, %cst_95 [1] : vector<100x100xf32> to vector<100xf32>
    %190 = vector.shape_cast %189 : vector<100xf32> to vector<100x1xf32>
    %191 = vector.broadcast %190 : vector<100x1xf32> to vector<100x100xf32>
    %192 = arith.subf %188, %191 : vector<100x100xf32>
    %193 = math.exp %192 : vector<100x100xf32>
    %cst_96 = arith.constant dense<0.000000e+00> : vector<100xf32>
    %194 = vector.multi_reduction <add>, %193, %cst_96 [1] : vector<100x100xf32> to vector<100xf32>
    %195 = vector.shape_cast %194 : vector<100xf32> to vector<100x1xf32>
    %196 = vector.broadcast %195 : vector<100x1xf32> to vector<100x100xf32>
    %197 = arith.divf %193, %196 : vector<100x100xf32>
    %cst_97 = arith.constant dense<0.000000e+00> : vector<100x4xf32>
    %198 = tpu.matmul %197, %184, %cst_97 {dimension_numbers = #tpu.dot_dimension_numbers<[1], [0], [0], [1], [0, 0, 1, 1], [], []>} : vector<100x100xf32>, vector<100x4xf32>, vector<100x4xf32> -> vector<100x4xf32>
    %c0_98 = arith.constant 0 : index
    %c4_99 = arith.constant 4 : index
    %199 = vector.load %arg16[%c0_98, %c4_99] : memref<100x8xf32, #tpu.memory_space<vmem>>, vector<100x4xf32>
    tpu.vector_store %arg16[%c0_98, %c4_99], %198 {strides = array<i32>} : memref<100x8xf32, #tpu.memory_space<vmem>>, vector<100x4xf32>,
    %c0_100 = arith.constant 0 : index
    %c0_101 = arith.constant 0 : index
    %200 = vector.load %arg16[%c0_100, %c0_101] : memref<100x8xf32, #tpu.memory_space<vmem>>, vector<100x8xf32>
    %201 = arith.addf %130, %200 : vector<100x8xf32>
    %c1_102 = arith.constant 1 : index
    %c0_103 = arith.constant 0 : index
    %c0_104 = arith.constant 0 : index
    %202 = vector.load %arg9[%c1_102, %c0_103, %c0_104] : memref<2x1x8xf32, #tpu.memory_space<vmem>>, vector<1x1x8xf32>
    %203 = vector.shape_cast %202 : vector<1x1x8xf32> to vector<1x8xf32>
    %c1_105 = arith.constant 1 : index
    %c0_106 = arith.constant 0 : index
    %c0_107 = arith.constant 0 : index
    %204 = vector.load %arg10[%c1_105, %c0_106, %c0_107] : memref<2x1x8xf32, #tpu.memory_space<vmem>>, vector<1x1x8xf32>
    %205 = vector.shape_cast %204 : vector<1x1x8xf32> to vector<1x8xf32>
    %cst_108 = arith.constant dense<0.000000e+00> : vector<100xf32>
    %206 = vector.multi_reduction <add>, %201, %cst_108 [1] : vector<100x8xf32> to vector<100xf32>
    %207 = vector.shape_cast %206 : vector<100xf32> to vector<100x1xf32>
    %cst_109 = arith.constant 8.000000e+00 : f32
    %208 = vector.broadcast %cst_109 : f32 to vector<100x1xf32>
    %209 = arith.divf %207, %208 : vector<100x1xf32>
    %210 = vector.broadcast %209 : vector<100x1xf32> to vector<100x8xf32>
    %211 = arith.subf %201, %210 : vector<100x8xf32>
    %212 = arith.mulf %211, %211 : vector<100x8xf32>
    %cst_110 = arith.constant dense<0.000000e+00> : vector<100xf32>
    %213 = vector.multi_reduction <add>, %212, %cst_110 [1] : vector<100x8xf32> to vector<100xf32>
    %214 = vector.shape_cast %213 : vector<100xf32> to vector<100x1xf32>
    %cst_111 = arith.constant 8.000000e+00 : f32
    %215 = vector.broadcast %cst_111 : f32 to vector<100x1xf32>
    %216 = arith.divf %214, %215 : vector<100x1xf32>
    %217 = vector.broadcast %209 : vector<100x1xf32> to vector<100x8xf32>
    %218 = arith.subf %201, %217 : vector<100x8xf32>
    %cst_112 = arith.constant 9.99999974E-6 : f32
    %219 = vector.broadcast %cst_112 : f32 to vector<100x1xf32>
    %220 = arith.addf %216, %219 : vector<100x1xf32>
    %221 = math.rsqrt %220 : vector<100x1xf32>
    %222 = vector.broadcast %221 : vector<100x1xf32> to vector<100x8xf32>
    %223 = arith.mulf %218, %222 : vector<100x8xf32>
    %224 = vector.broadcast %203 : vector<1x8xf32> to vector<100x8xf32>
    %225 = arith.mulf %223, %224 : vector<100x8xf32>
    %226 = vector.broadcast %205 : vector<1x8xf32> to vector<100x8xf32>
    %227 = arith.addf %225, %226 : vector<100x8xf32>
    %c1_113 = arith.constant 1 : index
    %c0_114 = arith.constant 0 : index
    %c0_115 = arith.constant 0 : index
    %228 = vector.load %arg11[%c1_113, %c0_114, %c0_115] : memref<2x8x32xf32, #tpu.memory_space<vmem>>, vector<1x8x32xf32>
    %229 = vector.shape_cast %228 : vector<1x8x32xf32> to vector<8x32xf32>
    %cst_116 = arith.constant dense<0.000000e+00> : vector<100x32xf32>
    %230 = tpu.matmul %227, %229, %cst_116 {dimension_numbers = #tpu.dot_dimension_numbers<[1], [0], [0], [1], [0, 0, 1, 1], [], []>} : vector<100x8xf32>, vector<8x32xf32>, vector<100x32xf32> -> vector<100x32xf32>
    %c1_117 = arith.constant 1 : index
    %c0_118 = arith.constant 0 : index
    %c0_119 = arith.constant 0 : index
    %231 = vector.load %arg12[%c1_117, %c0_118, %c0_119] : memref<2x1x32xf32, #tpu.memory_space<vmem>>, vector<1x1x32xf32>
    %232 = vector.shape_cast %231 : vector<1x1x32xf32> to vector<1x32xf32>
    %233 = vector.broadcast %232 : vector<1x32xf32> to vector<100x32xf32>
    %234 = arith.addf %230, %233 : vector<100x32xf32>
    %cst_120 = arith.constant 5.000000e-01 : f32
    %235 = vector.broadcast %cst_120 : f32 to vector<100x32xf32>
    %236 = arith.mulf %235, %234 : vector<100x32xf32>
    %cst_121 = arith.constant 4.471500e-02 : f32
    %237 = vector.broadcast %cst_121 : f32 to vector<100x32xf32>
    %238 = arith.mulf %237, %234 : vector<100x32xf32>
    %239 = arith.mulf %238, %234 : vector<100x32xf32>
    %240 = arith.mulf %239, %234 : vector<100x32xf32>
    %241 = arith.addf %234, %240 : vector<100x32xf32>
    %cst_122 = arith.constant 0.797884583 : f32
    %242 = vector.broadcast %cst_122 : f32 to vector<100x32xf32>
    %243 = arith.mulf %242, %241 : vector<100x32xf32>
    %244 = math.tanh %243 : vector<100x32xf32>
    %cst_123 = arith.constant 1.000000e+00 : f32
    %245 = vector.broadcast %cst_123 : f32 to vector<100x32xf32>
    %246 = arith.addf %245, %244 : vector<100x32xf32>
    %247 = arith.mulf %236, %246 : vector<100x32xf32>
    %c1_124 = arith.constant 1 : index
    %c0_125 = arith.constant 0 : index
    %c0_126 = arith.constant 0 : index
    %248 = vector.load %arg13[%c1_124, %c0_125, %c0_126] : memref<2x32x8xf32, #tpu.memory_space<vmem>>, vector<1x32x8xf32>
    %249 = vector.shape_cast %248 : vector<1x32x8xf32> to vector<32x8xf32>
    %cst_127 = arith.constant dense<0.000000e+00> : vector<100x8xf32>
    %250 = tpu.matmul %247, %249, %cst_127 {dimension_numbers = #tpu.dot_dimension_numbers<[1], [0], [0], [1], [0, 0, 1, 1], [], []>} : vector<100x32xf32>, vector<32x8xf32>, vector<100x8xf32> -> vector<100x8xf32>
    %251 = arith.addf %201, %250 : vector<100x8xf32>
    %c1_128 = arith.constant 1 : index
    %c0_129 = arith.constant 0 : index
    %c0_130 = arith.constant 0 : index
    %252 = vector.load %arg14[%c1_128, %c0_129, %c0_130] : memref<2x1x8xf32, #tpu.memory_space<vmem>>, vector<1x1x8xf32>
    %253 = vector.shape_cast %252 : vector<1x1x8xf32> to vector<1x8xf32>
    %254 = vector.broadcast %253 : vector<1x8xf32> to vector<100x8xf32>
    %255 = arith.addf %251, %254 : vector<100x8xf32>
    %c0_131 = arith.constant 0 : index
    %c0_132 = arith.constant 0 : index
    %256 = vector.load %arg15[%c0_131, %c0_132] : memref<100x8xf32, #tpu.memory_space<vmem>>, vector<100x8xf32>
    tpu.vector_store %arg15[%c0_131, %c0_132], %255 {strides = array<i32>} : memref<100x8xf32, #tpu.memory_space<vmem>>, vector<100x8xf32>,
    return
  }
  func.func @transform_0(%arg0: i32) -> (i32, i32) {
    %c0_i32 = arith.constant 0 : i32
    %c0_i32_0 = arith.constant 0 : i32
    %c0_i32_1 = arith.constant 0 : i32
    return %c0_i32, %c0_i32_0 : i32, i32
  }
  func.func @transform_1(%arg0: i32) -> (i32, i32) {
    %c0_i32 = arith.constant 0 : i32
    %c0_i32_0 = arith.constant 0 : i32
    %c0_i32_1 = arith.constant 0 : i32
    return %c0_i32, %c0_i32_0 : i32, i32
  }
  func.func @transform_2(%arg0: i32) -> (i32, i32) {
    %c0_i32 = arith.constant 0 : i32
    %c0_i32_0 = arith.constant 0 : i32
    %c0_i32_1 = arith.constant 0 : i32
    return %c0_i32, %c0_i32_0 : i32, i32
  }
  func.func @transform_3(%arg0: i32) -> (i32, i32) {
    %c0_i32 = arith.constant 0 : i32
    %c0_i32_0 = arith.constant 0 : i32
    %c0_i32_1 = arith.constant 0 : i32
    return %c0_i32, %c0_i32_0 : i32, i32
  }
  func.func @transform_4(%arg0: i32) -> (i32, i32, i32) {
    %c0_i32 = arith.constant 0 : i32
    %c0_i32_0 = arith.constant 0 : i32
    %c0_i32_1 = arith.constant 0 : i32
    %c0_i32_2 = arith.constant 0 : i32
    return %c0_i32, %c0_i32_0, %c0_i32_1 : i32, i32, i32
  }
  func.func @transform_5(%arg0: i32) -> (i32, i32, i32) {
    %c0_i32 = arith.constant 0 : i32
    %c0_i32_0 = arith.constant 0 : i32
    %c0_i32_1 = arith.constant 0 : i32
    %c0_i32_2 = arith.constant 0 : i32
    return %c0_i32, %c0_i32_0, %c0_i32_1 : i32, i32, i32
  }
  func.func @transform_6(%arg0: i32) -> (i32, i32, i32) {
    %c0_i32 = arith.constant 0 : i32
    %c0_i32_0 = arith.constant 0 : i32
    %c0_i32_1 = arith.constant 0 : i32
    %c0_i32_2 = arith.constant 0 : i32
    return %c0_i32, %c0_i32_0, %c0_i32_1 : i32, i32, i32
  }
  func.func @transform_7(%arg0: i32) -> (i32, i32, i32) {
    %c0_i32 = arith.constant 0 : i32
    %c0_i32_0 = arith.constant 0 : i32
    %c0_i32_1 = arith.constant 0 : i32
    %c0_i32_2 = arith.constant 0 : i32
    return %c0_i32, %c0_i32_0, %c0_i32_1 : i32, i32, i32
  }
  func.func @transform_8(%arg0: i32) -> (i32, i32, i32) {
    %c0_i32 = arith.constant 0 : i32
    %c0_i32_0 = arith.constant 0 : i32
    %c0_i32_1 = arith.constant 0 : i32
    %c0_i32_2 = arith.constant 0 : i32
    return %c0_i32, %c0_i32_0, %c0_i32_1 : i32, i32, i32
  }
  func.func @transform_9(%arg0: i32) -> (i32, i32, i32) {
    %c0_i32 = arith.constant 0 : i32
    %c0_i32_0 = arith.constant 0 : i32
    %c0_i32_1 = arith.constant 0 : i32
    %c0_i32_2 = arith.constant 0 : i32
    return %c0_i32, %c0_i32_0, %c0_i32_1 : i32, i32, i32
  }
  func.func @transform_10(%arg0: i32) -> (i32, i32, i32) {
    %c0_i32 = arith.constant 0 : i32
    %c0_i32_0 = arith.constant 0 : i32
    %c0_i32_1 = arith.constant 0 : i32
    %c0_i32_2 = arith.constant 0 : i32
    return %c0_i32, %c0_i32_0, %c0_i32_1 : i32, i32, i32
  }
  func.func @transform_11(%arg0: i32) -> (i32, i32, i32) {
    %c0_i32 = arith.constant 0 : i32
    %c0_i32_0 = arith.constant 0 : i32
    %c0_i32_1 = arith.constant 0 : i32
    %c0_i32_2 = arith.constant 0 : i32
    return %c0_i32, %c0_i32_0, %c0_i32_1 : i32, i32, i32
  }
  func.func @transform_12(%arg0: i32) -> (i32, i32, i32) {
    %c0_i32 = arith.constant 0 : i32
    %c0_i32_0 = arith.constant 0 : i32
    %c0_i32_1 = arith.constant 0 : i32
    %c0_i32_2 = arith.constant 0 : i32
    return %c0_i32, %c0_i32_0, %c0_i32_1 : i32, i32, i32
  }
  func.func @transform_13(%arg0: i32) -> (i32, i32, i32) {
    %c0_i32 = arith.constant 0 : i32
    %c0_i32_0 = arith.constant 0 : i32
    %c0_i32_1 = arith.constant 0 : i32
    %c0_i32_2 = arith.constant 0 : i32
    return %c0_i32, %c0_i32_0, %c0_i32_1 : i32, i32, i32
  }
  func.func @transform_14(%arg0: i32) -> (i32, i32) {
    %c0_i32 = arith.constant 0 : i32
    %c0_i32_0 = arith.constant 0 : i32
    %c0_i32_1 = arith.constant 0 : i32
    return %c0_i32, %c0_i32_0 : i32, i32
  }
}

</mosaic_0001>

<bundles_post_ra>
// kernel: tile.9
= control target key start
LH: loop header
LB: loop body
LE: loop exit
PB: predicated region body
PF: predicated region fallthrough
CT: control target
= control target key end

     0   :  { %vm43_vm0 = vcmask 1047556   ;;  %vm45_vm1 = vcmask 408576   ;;  %vm55_vm2 = vcmask 818576   ;;  %s112_s0 = inlined_call_operand.vmem [shape: f32[2,50,8], index: 0, kind: input, shape index: {}]   ;;  %s113_s1 = inlined_call_operand.vmem [shape: f32[100,8], index: 1, kind: output, shape index: {}]  }
   0x1   :  { %v63_v0 = vld [vmem:[%s112_s0 + $0xe] sm:$0x3]  ;;  %v64_v1 = vld [vmem:[%s112_s0 + $0xc] sm:$0x3]  ;;  %v65_v2 = vld [vmem:[%s112_s0 + $0xa] sm:$0x3] }
   0x2   :  { %9 = vst [vmem:[#allocation0 + $0x38] sm:$0x3] %v63_v0  ;;  %14 = vst [vmem:[#allocation0 + $0x30] sm:$0x3] %v64_v1  ;;  %v66_v3 = vld [vmem:[%s112_s0 + $0x8] sm:$0x3] }
   0x3   :  { %19 = vst [vmem:[#allocation0 + $0x28] sm:$0x3] %v65_v2  ;;  %v67_v4 = vld [vmem:[%s112_s0 + $0x6] sm:$0x3]  ;;  %v68_v5 = vld [vmem:[%s112_s0 + $0x4] sm:$0x3] }
   0x4   :  { %24 = vst [vmem:[#allocation0 + $0x20] sm:$0x3] %v66_v3  ;;  %29 = vst [vmem:[#allocation0 + $0x18] sm:$0x3] %v67_v4  ;;  %v69_v6 = vld [vmem:[%s112_s0 + $0x2] sm:$0x3] }
   0x5   :  { %34 = vst [vmem:[#allocation0 + $0x10] sm:$0x3] %v68_v5  ;;  %v39_v7 = vld [vmem:[%s112_s0] sm:$0x3]  ;;  %38 = vst [vmem:[#allocation0 + $0x8] sm:$0x3] %v69_v6 }
   0x6   :  { %40 = vst [vmem:[#allocation0] sm:$0x3] %v39_v7  ;;  %s71_s0 = smov 50  }
   0xb   :  { %v42_v8 = vld [vmem:[#allocation0] ss:$8 sm:$0xf0]   ;;  %v50_v9 = vld [vmem:[#allocation0 + $0x1] ss:$8 sm:$0xf0]  }
   0xd   :  { %v41_v10 = vld [vmem:[#allocation0] ss:$8 sm:$0xf]   ;;  %v48_v11 = vld [vmem:[#allocation0 + $0x1] ss:$8 sm:$0xf]  }
   0xe   :  { %v44_v12 = vsel %vm43_vm0, %v42_v8, %v41_v10  ;;  %v52_v13 = vsel %vm43_vm0, %v50_v9, %v48_v11 }
   0xf   :  { %53 = vrot.lane.b32.xlu0 %v52_v13, %s71_s0  ;;  %46 = vst.msk [vmem:[%s113_s1] sm:$0xff] %vm45_vm1, %v44_v12  }
  0x81   :  { %v54_v14 = vpop.permute.xlu0 %53  }
  0x82   :  { %56 = vst.msk [vmem:[%s113_s1] sm:$0xff] %vm55_vm2, %v54_v14  }

// kernel: eq.8
= control target key start
LH: loop header
LB: loop body
LE: loop exit
PB: predicated region body
PF: predicated region fallthrough
CT: control target
= control target key end

     0   :  { %vm8_vm0 = vcmask 408576   ;;  %vm14_vm1 = vcmask 818576   ;;  %s42_s0 = inlined_call_operand.vmem [shape: s32[2,50], index: 0, kind: input, shape index: {}]   ;;  %s43_s1 = inlined_call_operand.vmem [shape: s32[100], index: 1, kind: output, shape index: {}]  }
   0x1   :  { %v5_v0 = vld [vmem:[%s42_s0] sm:$0x3]  ;;  %s25_s0 = smov 50  }
   0x2   :  { %6 = vst [vmem:[#allocation1] sm:$0x3] %v5_v0 }
   0x9   :  { %v11_v1 = vld [vmem:[#allocation1 + $0x1] sm:$0x1]   ;;  %v7_v2 = vld [vmem:[#allocation1] sm:$0x1]  }
   0xa   :  { %12 = vrot.lane.b32.xlu0 %v11_v1, %s25_s0  ;;  %9 = vst.msk [vmem:[#allocation0] sm:$0x1] %vm8_vm0, %v7_v2  }
  0x7c   :  { %v13_v3 = vpop.permute.xlu0 %12  }
  0x7d   :  { %15 = vst.msk [vmem:[#allocation0] sm:$0x1] %vm14_vm1, %v13_v3  }
  0x84   :  { %v20_v4 = vld [vmem:[#allocation0] sm:$0x1] }
  0x85   :  { %23 = vst [vmem:[%s43_s1] sm:$0x1] %v20_v4 }

// kernel: vit_forward.1
= control target key start
LH: loop header
LB: loop body
LE: loop exit
PB: predicated region body
PF: predicated region fallthrough
CT: control target
= control target key end

     0   :  { %v10120_v0 = vmov 0.0   ;;  %vm6916_vm0 = vmmov 0   ;;  %vm88_vm1 = vcmask 130048   ;;  %vm260_vm2 = vcmask 64512   ;;  %s6917_s22 = smov 120   ;;  %s6918_s23 = smov 116   ;;  %s10105_s1 = inlined_call_operand.vmem [shape: f32[16,8], index: 1, kind: input, shape index: {}]   ;;  %s10106_s0 = inlined_call_operand.vmem [shape: f32[100,16], index: 0, kind: input, shape index: {}]   ;;  %s10107_s2 = inlined_call_operand.vmem [shape: f32[100,8], index: 2, kind: input, shape index: {}]   ;;  %s10108_s6 = inlined_call_operand.vmem [shape: f32[2,8,24], index: 6, kind: input, shape index: {}]   ;;  %s10109_s4 = inlined_call_operand.vmem [shape: f32[2,1,8], index: 4, kind: input, shape index: {}]   ;;  %s10110_s5 = inlined_call_operand.vmem [shape: f32[2,1,8], index: 5, kind: input, shape index: {}]   ;;  %s10111_s7 = inlined_call_operand.vmem [shape: f32[2,1,24], index: 7, kind: input, shape index: {}]   ;;  %s10112_s3 = inlined_call_operand.vmem [shape: f32[100,100], index: 3, kind: input, shape index: {}]   ;;  %s10113_s10 = inlined_call_operand.vmem [shape: f32[2,8,32], index: 10, kind: input, shape index: {}]   ;;  %s10114_s8 = inlined_call_operand.vmem [shape: f32[2,1,8], index: 8, kind: input, shape index: {}]   ;;  %s10115_s9 = inlined_call_operand.vmem [shape: f32[2,1,8], index: 9, kind: input, shape index: {}]   ;;  %s10116_s12 = inlined_call_operand.vmem [shape: f32[2,32,8], index: 12, kind: input, shape index: {}]   ;;  %s10117_s11 = inlined_call_operand.vmem [shape: f32[2,1,32], index: 11, kind: input, shape index: {}]   ;;  %s10118_s13 = inlined_call_operand.vmem [shape: f32[2,1,8], index: 13, kind: input, shape index: {}]   ;;  %s10119_s14 = inlined_call_operand.vmem [shape: f32[100,8], index: 14, kind: output, shape index: {}]  }
   0x1   :  { %5707 = vmatprep.subr.mxu0 %v10120_v0  ;;  %v74_v1 = vld [vmem:[%s10105_s1 + $0x8] sm:$0xff]  ;;  %v73_v2 = vld [vmem:[%s10105_s1] sm:$0xff]  ;;  %5711 = vmatprep.mubr.msk.f32.mxu0 %vm6916_vm0, %v10120_v0  ;;  %v62_v5 = vld [vmem:[%s10106_s0 + $0x10] sm:$0xff]  ;;  %vm297_vm3 = vcmask 60416   ;;  %s6919_s24 = smov 124   ;;  %s6920_s25 = smov 112  }
   0x2   :  { %5708 = vmatpush3.msra.mxu0 %v74_v1  ;;  %v60_v3 = vld [vmem:[%s10106_s0] sm:$0xff]  ;;  %5750 = vmatprep.subr.mxu1 %v10120_v0  ;;  %v61_v4 = vld [vmem:[%s10106_s0 + $0x8] sm:$0xff]  ;;  %v63_v6 = vld [vmem:[%s10106_s0 + $0x18] sm:$0xff]  ;;  %s6921_s26 = smov 108   ;;  %vm686_vm4 = vcmask 31744   ;;  %vm1117_vm5 = vcmask 1043456  }
   0x3   :  { %5709 = vmatprep.subr.mxu0 %v10120_v0  ;;  %5752 = vmatprep.mubr.msk.f32.mxu1 %vm6916_vm0, %v10120_v0  ;;  %v64_v7 = vld [vmem:[%s10106_s0 + $0x20] sm:$0xff]  ;;  %v65_v8 = vld [vmem:[%s10106_s0 + $0x28] sm:$0xff]  ;;  %v66_v9 = vld [vmem:[%s10106_s0 + $0x30] sm:$0xff]  ;;  %vm895_vm6 = vcmask 818176   ;;  %vm932_vm7 = vcmask 814080   ;;  %vm1262_vm8 = vcmask 27648  }
   0x4   :  { %5710 = vmatpush3.msra.mxu0 %v73_v2  ;;  %v67_v10 = vld [vmem:[%s10106_s0 + $0x38] sm:$0xff]  ;;  %v68_v11 = vld [vmem:[%s10106_s0 + $0x40] sm:$0xff]  ;;  %v69_v12 = vld [vmem:[%s10106_s0 + $0x48] sm:$0xff]  ;;  %s6922_s20 = smov 4   ;;  %vm1928_vm9 = vcmask 64544   ;;  %vm1941_vm10 = vcmask 60448  }
   0x5   :  { %5712 = vmatmul.mubr.msk.f32.vlgmr.msra.gmra.mxu0 %vm88_vm1, %v60_v3  ;;  %5856 = vmatprep.subr.mxu0 %v10120_v0  ;;  %v70_v13 = vld [vmem:[%s10106_s0 + $0x50] sm:$0xff]  ;;  %v71_v14 = vld [vmem:[%s10106_s0 + $0x58] sm:$0xff]  ;;  %v72_v15 = vld [vmem:[%s10106_s0 + $0x60] sm:$0xf]  ;;  %vm2476_vm11 = vcmask 261120  }
   0x6   :  { %5714 = vmatprep.mubr.msk.f32.mxu0 %vm6916_vm0, %v10120_v0  ;;  %v75_v16 = vld [vmem:[%s10107_s2] sm:$0xff]  ;;  %v76_v20 = vld [vmem:[%s10107_s2 + $0x8] sm:$0xff]  ;;  %v77_v25 = vld [vmem:[%s10107_s2 + $0x10] sm:$0xff] }
   0x7   :  { %v78_v30 = vld [vmem:[%s10107_s2 + $0x18] sm:$0xff]  ;;  %v79_v35 = vld [vmem:[%s10107_s2 + $0x20] sm:$0xff]  ;;  %v80_v40 = vld [vmem:[%s10107_s2 + $0x28] sm:$0xff] }
   0x8   :  { %v81_v45 = vld [vmem:[%s10107_s2 + $0x30] sm:$0xff]  ;;  %v82_v50 = vld [vmem:[%s10107_s2 + $0x38] sm:$0xff]  ;;  %v83_v55 = vld [vmem:[%s10107_s2 + $0x40] sm:$0xff] }
   0x9   :  { %5715 = vmatmul.mubr.msk.f32.gmra.mxu0 %vm88_vm1, %v61_v4  ;;  %v84_v60 = vld [vmem:[%s10107_s2 + $0x48] sm:$0xff]  ;;  %v85_v2 = vld [vmem:[%s10107_s2 + $0x50] sm:$0xff] }
   0xa   :  { %5717 = vmatprep.mubr.msk.f32.mxu0 %vm6916_vm0, %v10120_v0 }
   0xd   :  { %5718 = vmatmul.mubr.msk.f32.gmra.mxu0 %vm88_vm1, %v62_v5 }
   0xe   :  { %5720 = vmatprep.mubr.msk.f32.mxu0 %vm6916_vm0, %v10120_v0 }
  0x11   :  { %5721 = vmatmul.mubr.msk.f32.gmra.mxu0 %vm88_vm1, %v63_v6 }
  0x12   :  { %5723 = vmatprep.mubr.msk.f32.mxu0 %vm6916_vm0, %v10120_v0 }
  0x15   :  { %5724 = vmatmul.mubr.msk.f32.gmra.mxu0 %vm88_vm1, %v64_v7  ;;  %v86_v7 = vld [vmem:[%s10107_s2 + $0x58] sm:$0xff] }
  0x16   :  { %5726 = vmatprep.mubr.msk.f32.mxu0 %vm6916_vm0, %v10120_v0 }
  0x19   :  { %5727 = vmatmul.mubr.msk.f32.gmra.mxu0 %vm88_vm1, %v65_v8 }
  0x1a   :  { %5729 = vmatprep.mubr.msk.f32.mxu0 %vm6916_vm0, %v10120_v0 }
  0x1d   :  { %5730 = vmatmul.mubr.msk.f32.gmra.mxu0 %vm88_vm1, %v66_v9 }
  0x1e   :  { %5732 = vmatprep.mubr.msk.f32.mxu0 %vm6916_vm0, %v10120_v0 }
  0x21   :  { %5733 = vmatmul.mubr.msk.f32.gmra.mxu0 %vm88_vm1, %v67_v10 }
  0x22   :  { %5735 = vmatprep.mubr.msk.f32.mxu0 %vm6916_vm0, %v10120_v0 }
  0x25   :  { %5736 = vmatmul.mubr.msk.f32.gmra.mxu0 %vm88_vm1, %v68_v11 }
  0x26   :  { %5738 = vmatprep.mubr.msk.f32.mxu0 %vm6916_vm0, %v10120_v0 }
  0x29   :  { %5739 = vmatmul.mubr.msk.f32.gmra.mxu0 %vm88_vm1, %v69_v12  ;;  %v87_v12 = vld [vmem:[%s10107_s2 + $0x60] sm:$0xf] }
  0x2a   :  { %5741 = vmatprep.mubr.msk.f32.mxu0 %vm6916_vm0, %v10120_v0 }
  0x2d   :  { %5742 = vmatmul.mubr.msk.f32.gmra.mxu0 %vm88_vm1, %v70_v13 }
  0x2e   :  { %5744 = vmatprep.mubr.msk.f32.mxu0 %vm6916_vm0, %v10120_v0 }
  0x31   :  { %5745 = vmatmul.mubr.msk.f32.gmra.mxu0 %vm88_vm1, %v71_v14 }
  0x32   :  { %5747 = vmatprep.mubr.msk.f32.mxu0 %vm6916_vm0, %v10120_v0 }
  0x35   :  { %5748 = vmatmul.mubr.msk.f32.gmra.mxu0 %vm88_vm1, %v72_v15 }
  0x36   :  { %5882 = vmatprep.mubr.msk.f32.mxu0 %vm6916_vm0, %v10120_v0 }
  0xc5   :  { %v194_v17 = vpop.f32.mrf.mxu0 }
  0xc6   :  { %v7093_v18 = vadd.f32 %v194_v17, %v75_v16 }
  0xc7   :  { %v5713_v19 = vpop.f32.mrf.mxu0 }
  0xc8   :  { %v261_v21 = vsel %vm260_vm2, %v7093_v18, 0.0 }
  0xc9   :  { %262 = vadd.xlane.f32.xlu0 %v261_v21  ;;  %v199_v22 = vpop.f32.mrf.mxu0 }
  0xca   :  { %v7100_v23 = vadd.f32 %v199_v22, %v76_v20 }
  0xcb   :  { %v5716_v24 = vpop.f32.mrf.mxu0 }
  0xcc   :  { %v264_v26 = vsel %vm260_vm2, %v7100_v23, 0.0 }
  0xcd   :  { %265 = vadd.xlane.f32.xlu0 %v264_v26  ;;  %v204_v27 = vpop.f32.mrf.mxu0 }
  0xce   :  { %v7107_v28 = vadd.f32 %v204_v27, %v77_v25 }
  0xcf   :  { %v5719_v29 = vpop.f32.mrf.mxu0 }
  0xd0   :  { %v267_v31 = vsel %vm260_vm2, %v7107_v28, 0.0 }
  0xd1   :  { %268 = vadd.xlane.f32.xlu1 %v267_v31  ;;  %v209_v32 = vpop.f32.mrf.mxu0 }
  0xd2   :  { %v7114_v33 = vadd.f32 %v209_v32, %v78_v30 }
  0xd3   :  { %v5722_v34 = vpop.f32.mrf.mxu0 }
  0xd4   :  { %v270_v36 = vsel %vm260_vm2, %v7114_v33, 0.0 }
  0xd5   :  { %271 = vadd.xlane.f32.xlu1 %v270_v36  ;;  %v214_v37 = vpop.f32.mrf.mxu0 }
  0xd6   :  { %v7121_v38 = vadd.f32 %v214_v37, %v79_v35 }
  0xd7   :  { %v5725_v39 = vpop.f32.mrf.mxu0 }
  0xd8   :  { %v273_v41 = vsel %vm260_vm2, %v7121_v38, 0.0 }
  0xd9   :  { %274 = vadd.xlane.f32.xlu0 %v273_v41  ;;  %v219_v42 = vpop.f32.mrf.mxu0 }
  0xda   :  { %v7128_v43 = vadd.f32 %v219_v42, %v80_v40 }
  0xdb   :  { %v5728_v44 = vpop.f32.mrf.mxu0 }
  0xdc   :  { %v276_v46 = vsel %vm260_vm2, %v7128_v43, 0.0 }
  0xdd   :  { %277 = vadd.xlane.f32.xlu1 %v276_v46  ;;  %v224_v47 = vpop.f32.mrf.mxu0 }
  0xde   :  { %v7135_v48 = vadd.f32 %v224_v47, %v81_v45 }
  0xdf   :  { %v5731_v49 = vpop.f32.mrf.mxu0 }
  0xe0   :  { %v279_v51 = vsel %vm260_vm2, %v7135_v48, 0.0 }
  0xe1   :  { %280 = vadd.xlane.f32.xlu0 %v279_v51  ;;  %v229_v52 = vpop.f32.mrf.mxu0 }
  0xe2   :  { %v7142_v53 = vadd.f32 %v229_v52, %v82_v50 }
  0xe3   :  { %v5734_v54 = vpop.f32.mrf.mxu0 }
  0xe4   :  { %v282_v56 = vsel %vm260_vm2, %v7142_v53, 0.0 }
  0xe5   :  { %283 = vadd.xlane.f32.xlu1 %v282_v56  ;;  %v234_v57 = vpop.f32.mrf.mxu0 }
  0xe6   :  { %v7149_v58 = vadd.f32 %v234_v57, %v83_v55 }
  0xe7   :  { %v5737_v59 = vpop.f32.mrf.mxu0 }
  0xe8   :  { %v285_v61 = vsel %vm260_vm2, %v7149_v58, 0.0 }
  0xe9   :  { %286 = vadd.xlane.f32.xlu0 %v285_v61  ;;  %v239_v62 = vpop.f32.mrf.mxu0 }
  0xea   :  { %v7156_v63 = vadd.f32 %v239_v62, %v84_v60 }
  0xeb   :  { %v5740_v1 = vpop.f32.mrf.mxu0 }
  0xec   :  { %v288_v3 = vsel %vm260_vm2, %v7156_v63, 0.0 }
  0xed   :  { %289 = vadd.xlane.f32.xlu1 %v288_v3  ;;  %v244_v4 = vpop.f32.mrf.mxu0 }
  0xee   :  { %v7163_v5 = vadd.f32 %v244_v4, %v85_v2 }
  0xef   :  { %v5743_v6 = vpop.f32.mrf.mxu0 }
  0xf0   :  { %10129 = vst [vmem:[#allocation3_spill] sm:$0xff] %v7163_v5  ;;  %v291_v8 = vsel %vm260_vm2, %v7163_v5, 0.0 }
  0xf1   :  { %292 = vadd.xlane.f32.xlu0 %v291_v8  ;;  %v249_v9 = vpop.f32.mrf.mxu0 }
  0xf2   :  { %v7170_v10 = vadd.f32 %v249_v9, %v86_v7 }
  0xf3   :  { %v5746_v11 = vpop.f32.mrf.mxu0 }
  0xf4   :  { %10130 = vst [vmem:[#allocation4_spill] sm:$0xff] %v7170_v10  ;;  %v294_v13 = vsel %vm260_vm2, %v7170_v10, 0.0 }
  0xf5   :  { %295 = vadd.xlane.f32.xlu1 %v294_v13  ;;  %v254_v14 = vpop.f32.mrf.mxu0 }
  0xf6   :  { %v7177_v15 = vadd.f32 %v254_v14, %v87_v12 }
  0xf7   :  { %v5749_v16 = vpop.f32.mrf.mxu0 }
  0xf8   :  { %10131 = vst [vmem:[#allocation5_spill] sm:$0xff] %v7177_v15  ;;  %v298_v17 = vsel %vm297_vm3, %v7177_v15, 0.0 }
  0xf9   :  { %299 = vadd.xlane.f32.xlu0 %v298_v17  ;;  %v470_v17 = vld [vmem:[%s10108_s6] sm:$0xff] }
  0xfa   :  { %5751 = vmatpush3.msra.mxu1 %v470_v17 }
  0xfb   :  { %5791 = vmatprep.subr.mxu1 %v10120_v0 }
 0x152   :  { %v263_v19 = vpop.xlane.xlu0 %262 }
 0x153   :  { %v302_v20 = vmul.f32 0.125, %v263_v19 }
 0x155   :  { %v7182_v21 = vsub.f32 %v7093_v18, %v302_v20 }
 0x156   :  { %v266_v22 = vpop.xlane.xlu0 %265 }
 0x157   :  { %v303_v24 = vmul.f32 0.125, %v266_v22  ;;  %v328_v25 = vmul.f32 %v7182_v21, %v7182_v21 }
 0x159   :  { %v7187_v26 = vsub.f32 %v7100_v23, %v303_v24  ;;  %v341_v27 = vsel %vm260_vm2, %v328_v25, 0.0 }
 0x15a   :  { %v269_v29 = vpop.xlane.xlu1 %268  ;;  %342 = vadd.xlane.f32.xlu1 %v341_v27 }
 0x15b   :  { %v304_v30 = vmul.f32 0.125, %v269_v29  ;;  %v329_v31 = vmul.f32 %v7187_v26, %v7187_v26 }
 0x15d   :  { %v7193_v32 = vsub.f32 %v7107_v28, %v304_v30  ;;  %v344_v34 = vsel %vm260_vm2, %v329_v31, 0.0 }
 0x15e   :  { %v272_v35 = vpop.xlane.xlu1 %271  ;;  %345 = vadd.xlane.f32.xlu0 %v344_v34 }
 0x15f   :  { %v305_v36 = vmul.f32 0.125, %v272_v35  ;;  %v330_v37 = vmul.f32 %v7193_v32, %v7193_v32 }
 0x161   :  { %v7199_v39 = vsub.f32 %v7114_v33, %v305_v36  ;;  %v347_v40 = vsel %vm260_vm2, %v330_v37, 0.0 }
 0x162   :  { %v275_v41 = vpop.xlane.xlu0 %274  ;;  %348 = vadd.xlane.f32.xlu1 %v347_v40 }
 0x163   :  { %v306_v42 = vmul.f32 0.125, %v275_v41  ;;  %v331_v44 = vmul.f32 %v7199_v39, %v7199_v39 }
 0x165   :  { %v7205_v45 = vsub.f32 %v7121_v38, %v306_v42  ;;  %v350_v46 = vsel %vm260_vm2, %v331_v44, 0.0 }
 0x166   :  { %v278_v47 = vpop.xlane.xlu1 %277  ;;  %351 = vadd.xlane.f32.xlu0 %v350_v46 }
 0x167   :  { %v307_v49 = vmul.f32 0.125, %v278_v47  ;;  %v332_v50 = vmul.f32 %v7205_v45, %v7205_v45 }
 0x169   :  { %v7211_v51 = vsub.f32 %v7128_v43, %v307_v49  ;;  %v353_v52 = vsel %vm260_vm2, %v332_v50, 0.0 }
 0x16a   :  { %v281_v54 = vpop.xlane.xlu0 %280  ;;  %354 = vadd.xlane.f32.xlu1 %v353_v52 }
 0x16b   :  { %v308_v55 = vmul.f32 0.125, %v281_v54  ;;  %v333_v56 = vmul.f32 %v7211_v51, %v7211_v51 }
 0x16d   :  { %v7217_v57 = vsub.f32 %v7135_v48, %v308_v55  ;;  %v356_v59 = vsel %vm260_vm2, %v333_v56, 0.0 }
 0x16e   :  { %v284_v60 = vpop.xlane.xlu1 %283  ;;  %357 = vadd.xlane.f32.xlu0 %v356_v59 }
 0x16f   :  { %v309_v61 = vmul.f32 0.125, %v284_v60  ;;  %v334_v62 = vmul.f32 %v7217_v57, %v7217_v57 }
 0x171   :  { %v7223_v1 = vsub.f32 %v7142_v53, %v309_v61  ;;  %v359_v2 = vsel %vm260_vm2, %v334_v62, 0.0 }
 0x172   :  { %v287_v3 = vpop.xlane.xlu0 %286  ;;  %360 = vadd.xlane.f32.xlu1 %v359_v2 }
 0x173   :  { %v310_v4 = vmul.f32 0.125, %v287_v3  ;;  %v335_v6 = vmul.f32 %v7223_v1, %v7223_v1 }
 0x175   :  { %v7229_v7 = vsub.f32 %v7149_v58, %v310_v4  ;;  %v362_v8 = vsel %vm260_vm2, %v335_v6, 0.0  ;;  %v7266_v4 = vld [vmem:[%s10109_s4] ss:$0 sm:$0xff] }
 0x176   :  { %v290_v9 = vpop.xlane.xlu1 %289  ;;  %363 = vadd.xlane.f32.xlu0 %v362_v8 }
 0x177   :  { %v311_v11 = vmul.f32 0.125, %v290_v9  ;;  %v336_v12 = vmul.f32 %v7229_v7, %v7229_v7 }
 0x179   :  { %v7235_v13 = vsub.f32 %v7156_v63, %v311_v11  ;;  %v365_v14 = vsel %vm260_vm2, %v336_v12, 0.0  ;;  %v7272_v11 = vld [vmem:[%s10110_s5] ss:$0 sm:$0xff] }
 0x17a   :  { %v293_v16 = vpop.xlane.xlu0 %292  ;;  %366 = vadd.xlane.f32.xlu1 %v365_v14 }
 0x17b   :  { %v312_v19 = vmul.f32 0.125, %v293_v16  ;;  %v337_v20 = vmul.f32 %v7235_v13, %v7235_v13 }
 0x17d   :  { %v7245_v22 = vsub.f32 %v7163_v5, %v312_v19  ;;  %v368_v24 = vsel %vm260_vm2, %v337_v20, 0.0 }
 0x17e   :  { %v296_v25 = vpop.xlane.xlu1 %295  ;;  %369 = vadd.xlane.f32.xlu0 %v368_v24 }
 0x17f   :  { %v313_v27 = vmul.f32 0.125, %v296_v25  ;;  %v338_v29 = vmul.f32 %v7245_v22, %v7245_v22 }
 0x181   :  { %v7251_v30 = vsub.f32 %v7170_v10, %v313_v27  ;;  %v371_v31 = vsel %vm260_vm2, %v338_v29, 0.0 }
 0x182   :  { %372 = vadd.xlane.f32.xlu1 %v371_v31  ;;  %v300_v34 = vpop.xlane.xlu0 %299 }
 0x183   :  { %v314_v35 = vmul.f32 0.125, %v300_v34  ;;  %v339_v36 = vmul.f32 %v7251_v30, %v7251_v30 }
 0x185   :  { %v7257_v37 = vsub.f32 %v7177_v15, %v314_v35  ;;  %v374_v40 = vsel %vm260_vm2, %v339_v36, 0.0 }
 0x186   :  { %375 = vadd.xlane.f32.xlu0 %v374_v40 }
 0x187   :  { %v340_v41 = vmul.f32 %v7257_v37, %v7257_v37 }
 0x189   :  { %v377_v42 = vsel %vm297_vm3, %v340_v41, 0.0 }
 0x18a   :  { %378 = vadd.xlane.f32.xlu1 %v377_v42 }
 0x1e3   :  { %v343_v44 = vpop.xlane.xlu1 %342 }
 0x1e4   :  { %v380_v46 = vmul.f32 0.125, %v343_v44 }
 0x1e6   :  { %v393_v47 = vadd.f32 1e-05, %v380_v46 }
 0x1e7   :  { %v346_v49 = vpop.xlane.xlu0 %345 }
 0x1e8   :  { %6538 = vrsqrt.f32 %v393_v47  ;;  %v381_v50 = vmul.f32 0.125, %v346_v49 }
 0x1ea   :  { %v394_v52 = vadd.f32 1e-05, %v381_v50 }
 0x1eb   :  { %v349_v54 = vpop.xlane.xlu1 %348 }
 0x1ec   :  { %6540 = vrsqrt.f32 %v394_v52  ;;  %v382_v55 = vmul.f32 0.125, %v349_v54 }
 0x1ee   :  { %v395_v56 = vadd.f32 1e-05, %v382_v55 }
 0x1ef   :  { %v352_v59 = vpop.xlane.xlu0 %351 }
 0x1f0   :  { %6542 = vrsqrt.f32 %v395_v56  ;;  %v383_v60 = vmul.f32 0.125, %v352_v59 }
 0x1f2   :  { %v396_v61 = vadd.f32 1e-05, %v383_v60 }
 0x1f3   :  { %v355_v62 = vpop.xlane.xlu1 %354 }
 0x1f4   :  { %6544 = vrsqrt.f32 %v396_v61  ;;  %v384_v2 = vmul.f32 0.125, %v355_v62 }
 0x1f5   :  { %v6539_v3 = vpop.eup %6538 }
 0x1f6   :  { %v397_v6 = vadd.f32 1e-05, %v384_v2  ;;  %v419_v8 = vmul.f32 %v6539_v3, %v7182_v21 }
 0x1f7   :  { %v358_v9 = vpop.xlane.xlu0 %357 }
 0x1f8   :  { %6546 = vrsqrt.f32 %v397_v6  ;;  %v385_v12 = vmul.f32 0.125, %v358_v9  ;;  %v438_v14 = vmul.f32 %v7266_v4, %v419_v8 }
 0x1f9   :  { %v6541_v16 = vpop.eup %6540 }
 0x1fa   :  { %v398_v17 = vadd.f32 1e-05, %v385_v12  ;;  %v457_v19 = vadd.f32 %v7272_v11, %v438_v14  ;;  %v420_v20 = vmul.f32 %v6541_v16, %v7187_v26 }
 0x1fb   :  { %v361_v24 = vpop.xlane.xlu1 %360 }
 0x1fc   :  { %6548 = vrsqrt.f32 %v398_v17  ;;  %v386_v25 = vmul.f32 0.125, %v361_v24  ;;  %5753 = vmatmul.mubr.msk.f32.vlgmr.msra.gmra.mxu1 %vm260_vm2, %v457_v19  ;;  %v439_v21 = vmul.f32 %v7266_v4, %v420_v20 }
 0x1fd   :  { %v6543_v27 = vpop.eup %6542  ;;  %5755 = vmatprep.mubr.msk.f32.mxu1 %vm6916_vm0, %v10120_v0 }
 0x1fe   :  { %v399_v29 = vadd.f32 1e-05, %v386_v25  ;;  %v458_v31 = vadd.f32 %v7272_v11, %v439_v21  ;;  %v421_v34 = vmul.f32 %v6543_v27, %v7193_v32 }
 0x1ff   :  { %v364_v35 = vpop.xlane.xlu0 %363 }
 0x200   :  { %6550 = vrsqrt.f32 %v399_v29  ;;  %v387_v36 = vmul.f32 0.125, %v364_v35  ;;  %5756 = vmatmul.mubr.msk.f32.gmra.mxu1 %vm260_vm2, %v458_v31  ;;  %v440_v26 = vmul.f32 %v7266_v4, %v421_v34 }
 0x201   :  { %v6545_v40 = vpop.eup %6544  ;;  %5758 = vmatprep.mubr.msk.f32.mxu1 %vm6916_vm0, %v10120_v0 }
 0x202   :  { %v400_v41 = vadd.f32 1e-05, %v387_v36  ;;  %v459_v42 = vadd.f32 %v7272_v11, %v440_v26  ;;  %v422_v44 = vmul.f32 %v6545_v40, %v7199_v39 }
 0x203   :  { %v367_v46 = vpop.xlane.xlu1 %366 }
 0x204   :  { %6552 = vrsqrt.f32 %v400_v41  ;;  %v388_v47 = vmul.f32 0.125, %v367_v46  ;;  %5759 = vmatmul.mubr.msk.f32.gmra.mxu1 %vm260_vm2, %v459_v42  ;;  %v441_v32 = vmul.f32 %v7266_v4, %v422_v44 }
 0x205   :  { %v6547_v49 = vpop.eup %6546  ;;  %5761 = vmatprep.mubr.msk.f32.mxu1 %vm6916_vm0, %v10120_v0 }
 0x206   :  { %v401_v50 = vadd.f32 1e-05, %v388_v47  ;;  %v460_v52 = vadd.f32 %v7272_v11, %v441_v32  ;;  %v423_v54 = vmul.f32 %v6547_v49, %v7205_v45 }
 0x207   :  { %v370_v55 = vpop.xlane.xlu0 %369 }
 0x208   :  { %6554 = vrsqrt.f32 %v401_v50  ;;  %v389_v56 = vmul.f32 0.125, %v370_v55  ;;  %5762 = vmatmul.mubr.msk.f32.gmra.mxu1 %vm260_vm2, %v460_v52  ;;  %v442_v39 = vmul.f32 %v7266_v4, %v423_v54 }
 0x209   :  { %v6549_v59 = vpop.eup %6548  ;;  %5764 = vmatprep.mubr.msk.f32.mxu1 %vm6916_vm0, %v10120_v0 }
 0x20a   :  { %v402_v60 = vadd.f32 1e-05, %v389_v56  ;;  %v461_v61 = vadd.f32 %v7272_v11, %v442_v39  ;;  %v424_v62 = vmul.f32 %v6549_v59, %v7211_v51 }
 0x20b   :  { %v373_v2 = vpop.xlane.xlu1 %372 }
 0x20c   :  { %6556 = vrsqrt.f32 %v402_v60  ;;  %v390_v3 = vmul.f32 0.125, %v373_v2  ;;  %5765 = vmatmul.mubr.msk.f32.gmra.mxu1 %vm260_vm2, %v461_v61  ;;  %v443_v45 = vmul.f32 %v7266_v4, %v424_v62 }
 0x20d   :  { %v6551_v6 = vpop.eup %6550  ;;  %5767 = vmatprep.mubr.msk.f32.mxu1 %vm6916_vm0, %v10120_v0 }
 0x20e   :  { %v403_v8 = vadd.f32 1e-05, %v390_v3  ;;  %v462_v9 = vadd.f32 %v7272_v11, %v443_v45  ;;  %v425_v12 = vmul.f32 %v6551_v6, %v7217_v57 }
 0x20f   :  { %v376_v14 = vpop.xlane.xlu0 %375 }
 0x210   :  { %6558 = vrsqrt.f32 %v403_v8  ;;  %v391_v16 = vmul.f32 0.125, %v376_v14  ;;  %5768 = vmatmul.mubr.msk.f32.gmra.mxu1 %vm260_vm2, %v462_v9  ;;  %v444_v51 = vmul.f32 %v7266_v4, %v425_v12 }
 0x211   :  { %v6553_v17 = vpop.eup %6552  ;;  %5770 = vmatprep.mubr.msk.f32.mxu1 %vm6916_vm0, %v10120_v0 }
 0x212   :  { %v404_v19 = vadd.f32 1e-05, %v391_v16  ;;  %v463_v20 = vadd.f32 %v7272_v11, %v444_v51  ;;  %v426_v24 = vmul.f32 %v6553_v17, %v7223_v1 }
 0x213   :  { %v379_v25 = vpop.xlane.xlu1 %378 }
 0x214   :  { %6560 = vrsqrt.f32 %v404_v19  ;;  %v392_v21 = vmul.f32 0.125, %v379_v25  ;;  %5771 = vmatmul.mubr.msk.f32.gmra.mxu1 %vm260_vm2, %v463_v20  ;;  %v445_v57 = vmul.f32 %v7266_v4, %v426_v24  ;;  %v5131_v19 = vld [vmem:[%s10111_s7] ss:$0 sm:$0xff] }
 0x215   :  { %v6555_v27 = vpop.eup %6554  ;;  %5773 = vmatprep.mubr.msk.f32.mxu1 %vm6916_vm0, %v10120_v0 }
 0x216   :  { %v405_v29 = vadd.f32 1e-05, %v392_v21  ;;  %v464_v31 = vadd.f32 %v7272_v11, %v445_v57  ;;  %v427_v34 = vmul.f32 %v6555_v27, %v7229_v7 }
 0x218   :  { %6562 = vrsqrt.f32 %v405_v29  ;;  %5774 = vmatmul.mubr.msk.f32.gmra.mxu1 %vm260_vm2, %v464_v31  ;;  %v446_v1 = vmul.f32 %v7266_v4, %v427_v34 }
 0x219   :  { %v6557_v35 = vpop.eup %6556  ;;  %5776 = vmatprep.mubr.msk.f32.mxu1 %vm6916_vm0, %v10120_v0 }
 0x21a   :  { %v465_v36 = vadd.f32 %v7272_v11, %v446_v1  ;;  %v428_v26 = vmul.f32 %v6557_v35, %v7235_v13 }
 0x21c   :  { %5777 = vmatmul.mubr.msk.f32.gmra.mxu1 %vm260_vm2, %v465_v36  ;;  %v447_v40 = vmul.f32 %v7266_v4, %v428_v26 }
 0x21d   :  { %v6559_v41 = vpop.eup %6558  ;;  %5779 = vmatprep.mubr.msk.f32.mxu1 %vm6916_vm0, %v10120_v0 }
 0x21e   :  { %v466_v7 = vadd.f32 %v7272_v11, %v447_v40  ;;  %v429_v42 = vmul.f32 %v6559_v41, %v7245_v22 }
 0x220   :  { %5780 = vmatmul.mubr.msk.f32.gmra.mxu1 %vm260_vm2, %v466_v7  ;;  %v448_v44 = vmul.f32 %v7266_v4, %v429_v42 }
 0x221   :  { %v6561_v46 = vpop.eup %6560  ;;  %5782 = vmatprep.mubr.msk.f32.mxu1 %vm6916_vm0, %v10120_v0 }
 0x222   :  { %v467_v13 = vadd.f32 %v7272_v11, %v448_v44  ;;  %v430_v47 = vmul.f32 %v6561_v46, %v7251_v30 }
 0x224   :  { %5783 = vmatmul.mubr.msk.f32.gmra.mxu1 %vm260_vm2, %v467_v13  ;;  %v449_v32 = vmul.f32 %v7266_v4, %v430_v47 }
 0x225   :  { %v6563_v49 = vpop.eup %6562  ;;  %5785 = vmatprep.mubr.msk.f32.mxu1 %vm6916_vm0, %v10120_v0 }
 0x226   :  { %v468_v22 = vadd.f32 %v7272_v11, %v449_v32  ;;  %v431_v50 = vmul.f32 %v6563_v49, %v7257_v37 }
 0x228   :  { %5786 = vmatmul.mubr.msk.f32.gmra.mxu1 %vm260_vm2, %v468_v22  ;;  %v450_v52 = vmul.f32 %v7266_v4, %v431_v50 }
 0x229   :  { %5788 = vmatprep.mubr.msk.f32.mxu1 %vm6916_vm0, %v10120_v0 }
 0x22a   :  { %v469_v30 = vadd.f32 %v7272_v11, %v450_v52 }
 0x22c   :  { %5789 = vmatmul.mubr.msk.f32.gmra.mxu1 %vm260_vm2, %v469_v30 }
 0x22d   :  { %5817 = vmatprep.mubr.msk.f32.mxu1 %vm6916_vm0, %v10120_v0 }
 0x2bc   :  { %v583_v54 = vpop.f32.mrf.mxu1 }
 0x2bd   :  { %v7398_v7 = vadd.f32 %v5131_v19, %v583_v54 }
 0x2be   :  { %v5754_v55 = vpop.f32.mrf.mxu1 }
 0x2c0   :  { %v588_v56 = vpop.f32.mrf.mxu1 }
 0x2c1   :  { %v7400_v42 = vadd.f32 %v5131_v19, %v588_v56 }
 0x2c2   :  { %v5757_v39 = vpop.f32.mrf.mxu1 }
 0x2c4   :  { %v593_v59 = vpop.f32.mrf.mxu1 }
 0x2c5   :  { %v7390_v40 = vadd.f32 %v5131_v19, %v593_v59 }
 0x2c6   :  { %v5760_v37 = vpop.f32.mrf.mxu1 }
 0x2c8   :  { %v598_v60 = vpop.f32.mrf.mxu1 }
 0x2c9   :  { %v7392_v41 = vadd.f32 %v5131_v19, %v598_v60 }
 0x2ca   :  { %v5763_v61 = vpop.f32.mrf.mxu1 }
 0x2cc   :  { %v603_v62 = vpop.f32.mrf.mxu1 }
 0x2cd   :  { %v7382_v36 = vadd.f32 %v5131_v19, %v603_v62 }
 0x2ce   :  { %v5766_v4 = vpop.f32.mrf.mxu1 }
 0x2d0   :  { %v608_v2 = vpop.f32.mrf.mxu1 }
 0x2d1   :  { %v7384_v26 = vadd.f32 %v5131_v19, %v608_v2 }
 0x2d2   :  { %v5769_v3 = vpop.f32.mrf.mxu1 }
 0x2d4   :  { %v613_v45 = vpop.f32.mrf.mxu1 }
 0x2d5   :  { %v7374_v1 = vadd.f32 %v5131_v19, %v613_v45 }
 0x2d6   :  { %v5772_v6 = vpop.f32.mrf.mxu1 }
 0x2d8   :  { %v618_v11 = vpop.f32.mrf.mxu1 }
 0x2d9   :  { %v7376_v35 = vadd.f32 %v5131_v19, %v618_v11 }
 0x2da   :  { %v5775_v8 = vpop.f32.mrf.mxu1 }
 0x2dc   :  { %v623_v9 = vpop.f32.mrf.mxu1 }
 0x2dd   :  { %v7366_v31 = vadd.f32 %v5131_v19, %v623_v9 }
 0x2de   :  { %v5778_v12 = vpop.f32.mrf.mxu1 }
 0x2e0   :  { %v628_v14 = vpop.f32.mrf.mxu1 }
 0x2e1   :  { %v7368_v34 = vadd.f32 %v5131_v19, %v628_v14 }
 0x2e2   :  { %v5781_v16 = vpop.f32.mrf.mxu1 }
 0x2e4   :  { %v633_v51 = vpop.f32.mrf.mxu1 }
 0x2e5   :  { %v7358_v57 = vadd.f32 %v5131_v19, %v633_v51 }
 0x2e6   :  { %v5784_v17 = vpop.f32.mrf.mxu1 }
 0x2e8   :  { %v638_v20 = vpop.f32.mrf.mxu1 }
 0x2e9   :  { %v7354_v24 = vadd.f32 %v5131_v19, %v638_v20 }
 0x2ea   :  { %v5787_v25 = vpop.f32.mrf.mxu1 }
 0x2eb   :  { %682 = vrot.lane.b32.xlu1 %v7354_v24, %s6917_s22 }
 0x2ec   :  { %v643_v21 = vpop.f32.mrf.mxu1 }
 0x2ed   :  { %v7360_v27 = vadd.f32 %v5131_v19, %v643_v21 }
 0x2ee   :  { %v5790_v29 = vpop.f32.mrf.mxu1 }
 0x2ef   :  { %680 = vrot.lane.b32.xlu1 %v7358_v57, %s6917_s22  ;;  %684 = vrot.lane.b32.xlu0 %v7360_v27, %s6917_s22 }
 0x2f3   :  { %678 = vrot.lane.b32.xlu1 %v7368_v34, %s6917_s22  ;;  %676 = vrot.lane.b32.xlu0 %v7366_v31, %s6917_s22 }
 0x2f7   :  { %674 = vrot.lane.b32.xlu1 %v7376_v35, %s6917_s22  ;;  %672 = vrot.lane.b32.xlu0 %v7374_v1, %s6917_s22 }
 0x2fb   :  { %670 = vrot.lane.b32.xlu1 %v7384_v26, %s6917_s22  ;;  %668 = vrot.lane.b32.xlu0 %v7382_v36, %s6917_s22 }
 0x2ff   :  { %666 = vrot.lane.b32.xlu1 %v7392_v41, %s6917_s22  ;;  %664 = vrot.lane.b32.xlu0 %v7390_v40, %s6917_s22 }
 0x303   :  { %662 = vrot.lane.b32.xlu1 %v7400_v42, %s6917_s22  ;;  %660 = vrot.lane.b32.xlu0 %v7398_v7, %s6917_s22 }
 0x307   :  { %1314 = vrot.lane.b32.xlu1 %v7360_v27, %s6918_s23  ;;  %1312 = vrot.lane.b32.xlu0 %v7354_v24, %s6918_s23 }
 0x30b   :  { %1310 = vrot.lane.b32.xlu1 %v7358_v57, %s6918_s23  ;;  %1308 = vrot.lane.b32.xlu0 %v7368_v34, %s6918_s23 }
 0x30f   :  { %1306 = vrot.lane.b32.xlu1 %v7366_v31, %s6918_s23  ;;  %1304 = vrot.lane.b32.xlu0 %v7376_v35, %s6918_s23 }
 0x313   :  { %1302 = vrot.lane.b32.xlu1 %v7374_v1, %s6918_s23  ;;  %1300 = vrot.lane.b32.xlu0 %v7384_v26, %s6918_s23 }
 0x317   :  { %1298 = vrot.lane.b32.xlu1 %v7382_v36, %s6918_s23  ;;  %1296 = vrot.lane.b32.xlu0 %v7392_v41, %s6918_s23 }
 0x31b   :  { %1294 = vrot.lane.b32.xlu1 %v7390_v40, %s6918_s23  ;;  %1292 = vrot.lane.b32.xlu0 %v7400_v42, %s6918_s23 }
 0x31f   :  { %1290 = vrot.lane.b32.xlu1 %v7398_v7, %s6918_s23  ;;  %1264 = vrot.lane.b32.xlu0 %v7398_v7, %s6919_s24 }
 0x323   :  { %1266 = vrot.lane.b32.xlu1 %v7400_v42, %s6919_s24  ;;  %1268 = vrot.lane.b32.xlu0 %v7390_v40, %s6919_s24 }
 0x327   :  { %1270 = vrot.lane.b32.xlu1 %v7392_v41, %s6919_s24  ;;  %1272 = vrot.lane.b32.xlu0 %v7382_v36, %s6919_s24 }
 0x32b   :  { %1274 = vrot.lane.b32.xlu1 %v7384_v26, %s6919_s24  ;;  %1276 = vrot.lane.b32.xlu0 %v7374_v1, %s6919_s24 }
 0x32f   :  { %1278 = vrot.lane.b32.xlu1 %v7376_v35, %s6919_s24  ;;  %1280 = vrot.lane.b32.xlu0 %v7366_v31, %s6919_s24 }
 0x333   :  { %1282 = vrot.lane.b32.xlu1 %v7368_v34, %s6919_s24  ;;  %1284 = vrot.lane.b32.xlu0 %v7358_v57, %s6919_s24 }
 0x337   :  { %1286 = vrot.lane.b32.xlu1 %v7354_v24, %s6919_s24  ;;  %1288 = vrot.lane.b32.xlu0 %v7360_v27, %s6919_s24 }
 0x33b   :  { %1060 = vrot.lane.b32.xlu1 %v7358_v57, %s6920_s25  ;;  %1062 = vrot.lane.b32.xlu0 %v7354_v24, %s6920_s25 }
 0x33f   :  { %1058 = vrot.lane.b32.xlu1 %v7368_v34, %s6920_s25  ;;  %1056 = vrot.lane.b32.xlu0 %v7366_v31, %s6920_s25 }
 0x343   :  { %1054 = vrot.lane.b32.xlu1 %v7376_v35, %s6920_s25  ;;  %1052 = vrot.lane.b32.xlu0 %v7374_v1, %s6920_s25 }
 0x347   :  { %1046 = vrot.lane.b32.xlu1 %v7392_v41, %s6920_s25  ;;  %1050 = vrot.lane.b32.xlu0 %v7384_v26, %s6920_s25 }
 0x34b   :  { %1689 = vrot.lane.b32.xlu1 %v7354_v24, %s6921_s26  ;;  %1048 = vrot.lane.b32.xlu0 %v7382_v36, %s6920_s25 }
 0x34f   :  { %1687 = vrot.lane.b32.xlu1 %v7358_v57, %s6921_s26  ;;  %1044 = vrot.lane.b32.xlu0 %v7390_v40, %s6920_s25 }
 0x353   :  { %1685 = vrot.lane.b32.xlu1 %v7368_v34, %s6921_s26  ;;  %1042 = vrot.lane.b32.xlu0 %v7400_v42, %s6920_s25 }
 0x357   :  { %1683 = vrot.lane.b32.xlu1 %v7366_v31, %s6921_s26  ;;  %1040 = vrot.lane.b32.xlu0 %v7398_v7, %s6920_s25 }
 0x35b   :  { %1679 = vrot.lane.b32.xlu1 %v7374_v1, %s6921_s26  ;;  %1681 = vrot.lane.b32.xlu0 %v7376_v35, %s6921_s26 }
 0x35d   :  { %v683_v44 = vpop.permute.xlu1 %682 }
 0x35f   :  { %1677 = vrot.lane.b32.xlu1 %v7384_v26, %s6921_s26  ;;  %1691 = vrot.lane.b32.xlu0 %v7360_v27, %s6921_s26 }
 0x361   :  { %v681_v46 = vpop.permute.xlu1 %680  ;;  %v685_v13 = vpop.permute.xlu0 %684 }
 0x362   :  { %5792 = vmatpush3.xpose.msk.msra.mxu1 %vm686_vm4, %v685_v13 }
 0x363   :  { %1064 = vrot.lane.b32.xlu1 %v7360_v27, %s6920_s25  ;;  %5793 = vmatprep.subr.mxu1 %v10120_v0 }
 0x365   :  { %v679_v47 = vpop.permute.xlu1 %678  ;;  %v677_v32 = vpop.permute.xlu0 %676 }
 0x366   :  { %5794 = vmatpush3.xpose.msk.msra.mxu1 %vm686_vm4, %v683_v44 }
 0x367   :  { %5795 = vmatprep.subr.mxu1 %v10120_v0 }
 0x369   :  { %v675_v49 = vpop.permute.xlu1 %674  ;;  %v673_v22 = vpop.permute.xlu0 %672 }
 0x36a   :  { %5796 = vmatpush3.xpose.msk.msra.mxu1 %vm686_vm4, %v681_v46 }
 0x36b   :  { %5797 = vmatprep.subr.mxu1 %v10120_v0 }
 0x36d   :  { %v671_v50 = vpop.permute.xlu1 %670  ;;  %v669_v52 = vpop.permute.xlu0 %668 }
 0x36e   :  { %5798 = vmatpush3.xpose.msk.msra.mxu1 %vm686_vm4, %v679_v47 }
 0x36f   :  { %5799 = vmatprep.subr.mxu1 %v10120_v0 }
 0x371   :  { %v667_v30 = vpop.permute.xlu1 %666  ;;  %v665_v54 = vpop.permute.xlu0 %664 }
 0x372   :  { %5800 = vmatpush3.xpose.msk.msra.mxu1 %vm686_vm4, %v677_v32 }
 0x373   :  { %5801 = vmatprep.subr.mxu1 %v10120_v0 }
 0x375   :  { %v663_v55 = vpop.permute.xlu1 %662  ;;  %v661_v56 = vpop.permute.xlu0 %660 }
 0x376   :  { %5802 = vmatpush3.xpose.msk.msra.mxu1 %vm686_vm4, %v675_v49 }
 0x377   :  { %5803 = vmatprep.subr.mxu1 %v10120_v0 }
 0x379   :  { %v1315_v39 = vpop.permute.xlu1 %1314  ;;  %v1313_v59 = vpop.permute.xlu0 %1312 }
 0x37a   :  { %5804 = vmatpush3.xpose.msk.msra.mxu1 %vm686_vm4, %v673_v22 }
 0x37b   :  { %5805 = vmatprep.subr.mxu1 %v10120_v0 }
 0x37d   :  { %v1311_v37 = vpop.permute.xlu1 %1310  ;;  %v1309_v60 = vpop.permute.xlu0 %1308 }
 0x37e   :  { %5806 = vmatpush3.xpose.msk.msra.mxu1 %vm686_vm4, %v671_v50 }
 0x37f   :  { %5807 = vmatprep.subr.mxu1 %v10120_v0 }
 0x381   :  { %v1307_v61 = vpop.permute.xlu1 %1306  ;;  %v1305_v62 = vpop.permute.xlu0 %1304 }
 0x382   :  { %5808 = vmatpush3.xpose.msk.msra.mxu1 %vm686_vm4, %v669_v52 }
 0x383   :  { %5809 = vmatprep.subr.mxu1 %v10120_v0 }
 0x385   :  { %v1303_v4 = vpop.permute.xlu1 %1302  ;;  %v1301_v2 = vpop.permute.xlu0 %1300 }
 0x386   :  { %5810 = vmatpush3.xpose.msk.msra.mxu1 %vm686_vm4, %v667_v30 }
 0x387   :  { %5811 = vmatprep.subr.mxu1 %v10120_v0 }
 0x389   :  { %v1299_v3 = vpop.permute.xlu1 %1298  ;;  %v1297_v45 = vpop.permute.xlu0 %1296 }
 0x38a   :  { %5812 = vmatpush3.xpose.msk.msra.mxu1 %vm686_vm4, %v665_v54 }
 0x38b   :  { %5813 = vmatprep.subr.mxu1 %v10120_v0 }
 0x38d   :  { %v7522_v6 = vpop.permute.xlu1 %1294  ;;  %v7529_v8 = vpop.permute.xlu0 %1292 }
 0x38e   :  { %5814 = vmatpush3.xpose.msk.msra.mxu1 %vm686_vm4, %v663_v55 }
 0x38f   :  { %5815 = vmatprep.subr.mxu1 %v10120_v0 }
 0x391   :  { %v7526_v11 = vpop.permute.xlu1 %1290  ;;  %v7540_v12 = vpop.permute.xlu0 %1264 }
 0x392   :  { %5816 = vmatpush3.xpose.msk.msra.mxu1 %vm686_vm4, %v661_v56 }
 0x393   :  { %5921 = vmatprep.subr.mxu1 %v10120_v0 }
 0x395   :  { %v7532_v9 = vpop.permute.xlu1 %1266  ;;  %5818 = vmatmul.mubr.msk.f32.vlgmr.msra.gmra.mxu1 %vm686_vm4, %v7398_v7  ;;  %v7557_v51 = vpop.permute.xlu0 %1268 }
 0x396   :  { %5922 = vmatpush3.xpose.msk.msra.mxu1 %vm686_vm4, %v1315_v39  ;;  %5820 = vmatprep.mubr.msk.f32.mxu1 %vm6916_vm0, %v10120_v0 }
 0x397   :  { %5923 = vmatprep.subr.mxu1 %v10120_v0 }
 0x399   :  { %v7542_v14 = vpop.permute.xlu1 %1270  ;;  %5821 = vmatmul.mubr.msk.f32.gmra.mxu1 %vm686_vm4, %v7400_v42  ;;  %v7568_v19 = vpop.permute.xlu0 %1272 }
 0x39a   :  { %5924 = vmatpush3.xpose.msk.msra.mxu1 %vm686_vm4, %v1313_v59  ;;  %5823 = vmatprep.mubr.msk.f32.mxu1 %vm6916_vm0, %v10120_v0  ;;  %v7723_v59 = vld [vmem:[%s10112_s3] sm:$0xff] }
 0x39b   :  { %5925 = vmatprep.subr.mxu1 %v10120_v0 }
 0x39d   :  { %v7550_v16 = vpop.permute.xlu1 %1274  ;;  %5824 = vmatmul.mubr.msk.f32.gmra.mxu1 %vm686_vm4, %v7390_v40  ;;  %v7585_v21 = vpop.permute.xlu0 %1276 }
 0x39e   :  { %5926 = vmatpush3.xpose.msk.msra.mxu1 %vm686_vm4, %v1311_v37  ;;  %5826 = vmatprep.mubr.msk.f32.mxu1 %vm6916_vm0, %v10120_v0 }
 0x39f   :  { %5927 = vmatprep.subr.mxu1 %v10120_v0 }
 0x3a1   :  { %v7560_v17 = vpop.permute.xlu1 %1278  ;;  %5827 = vmatmul.mubr.msk.f32.gmra.mxu1 %vm686_vm4, %v7392_v41 }
 0x3a2   :  { %5928 = vmatpush3.xpose.msk.msra.mxu1 %vm686_vm4, %v1309_v60  ;;  %5829 = vmatprep.mubr.msk.f32.mxu1 %vm6916_vm0, %v10120_v0 }
 0x3a3   :  { %5929 = vmatprep.subr.mxu1 %v10120_v0 }
 0x3a5   :  { %v7570_v20 = vpop.permute.xlu1 %1282  ;;  %5830 = vmatmul.mubr.msk.f32.gmra.mxu1 %vm686_vm4, %v7382_v36 }
 0x3a6   :  { %5930 = vmatpush3.xpose.msk.msra.mxu1 %vm686_vm4, %v1307_v61  ;;  %5832 = vmatprep.mubr.msk.f32.mxu1 %vm6916_vm0, %v10120_v0 }
 0x3a7   :  { %5931 = vmatprep.subr.mxu1 %v10120_v0 }
 0x3a9   :  { %v7578_v25 = vpop.permute.xlu1 %1286  ;;  %5833 = vmatmul.mubr.msk.f32.gmra.mxu1 %vm686_vm4, %v7384_v26  ;;  %v7594_v26 = vpop.permute.xlu0 %1280 }
 0x3aa   :  { %5932 = vmatpush3.xpose.msk.msra.mxu1 %vm686_vm4, %v1305_v62  ;;  %5835 = vmatprep.mubr.msk.f32.mxu1 %vm6916_vm0, %v10120_v0 }
 0x3ab   :  { %5933 = vmatprep.subr.mxu1 %v10120_v0 }
 0x3ad   :  { %v1061_v29 = vpop.permute.xlu1 %1060  ;;  %5836 = vmatmul.mubr.msk.f32.gmra.mxu1 %vm686_vm4, %v7374_v1  ;;  %v7607_v46 = vpop.permute.xlu0 %1284 }
 0x3ae   :  { %5934 = vmatpush3.xpose.msk.msra.mxu1 %vm686_vm4, %v1303_v4  ;;  %5838 = vmatprep.mubr.msk.f32.mxu1 %vm6916_vm0, %v10120_v0  ;;  %v7731_v4 = vld [vmem:[%s10112_s3 + $0x8] sm:$0xff] }
 0x3af   :  { %5935 = vmatprep.subr.mxu1 %v10120_v0 }
 0x3b1   :  { %v1059_v44 = vpop.permute.xlu1 %1058  ;;  %5839 = vmatmul.mubr.msk.f32.gmra.mxu1 %vm686_vm4, %v7376_v35 }
 0x3b2   :  { %5936 = vmatpush3.xpose.msk.msra.mxu1 %vm686_vm4, %v1301_v2  ;;  %5841 = vmatprep.mubr.msk.f32.mxu1 %vm6916_vm0, %v10120_v0 }
 0x3b3   :  { %5937 = vmatprep.subr.mxu1 %v10120_v0 }
 0x3b5   :  { %v1055_v1 = vpop.permute.xlu1 %1054  ;;  %5842 = vmatmul.mubr.msk.f32.gmra.mxu1 %vm686_vm4, %v7366_v31  ;;  %v7618_v31 = vpop.permute.xlu0 %1288 }
 0x3b6   :  { %5938 = vmatpush3.xpose.msk.msra.mxu1 %vm686_vm4, %v1299_v3  ;;  %5844 = vmatprep.mubr.msk.f32.mxu1 %vm6916_vm0, %v10120_v0 }
 0x3b7   :  { %5939 = vmatprep.subr.mxu1 %v10120_v0 }
 0x3b9   :  { %v7610_v35 = vpop.permute.xlu1 %1046  ;;  %5845 = vmatmul.mubr.msk.f32.gmra.mxu1 %vm686_vm4, %v7368_v34 }
 0x3ba   :  { %5940 = vmatpush3.xpose.msk.msra.mxu1 %vm686_vm4, %v1297_v45  ;;  %5847 = vmatprep.mubr.msk.f32.mxu1 %vm6916_vm0, %v10120_v0 }
 0x3bb   :  { %5941 = vmatprep.subr.mxu1 %v10120_v0 }
 0x3bd   :  { %v7620_v13 = vpop.permute.xlu1 %1689  ;;  %5848 = vmatmul.mubr.msk.f32.gmra.mxu1 %vm686_vm4, %v7358_v57  ;;  %v1063_v57 = vpop.permute.xlu0 %1062 }
 0x3be   :  { %5942 = vmatpush3.xpose.msk.msra.mxu1 %vm686_vm4, %v7522_v6  ;;  %5850 = vmatprep.mubr.msk.f32.mxu1 %vm6916_vm0, %v10120_v0 }
 0x3bf   :  { %5943 = vmatprep.subr.mxu1 %v10120_v0 }
 0x3c1   :  { %v7629_v34 = vpop.permute.xlu1 %1687  ;;  %5851 = vmatmul.mubr.msk.f32.gmra.mxu1 %vm686_vm4, %v7354_v24  ;;  %v1057_v24 = vpop.permute.xlu0 %1056 }
 0x3c2   :  { %5944 = vmatpush3.xpose.msk.msra.mxu1 %vm686_vm4, %v7529_v8  ;;  %5853 = vmatprep.mubr.msk.f32.mxu1 %vm6916_vm0, %v10120_v0  ;;  %v7741_v8 = vld [vmem:[%s10112_s3 + $0x10] sm:$0xff] }
 0x3c3   :  { %5945 = vmatprep.subr.mxu1 %v10120_v0 }
 0x3c5   :  { %v7638_v47 = vpop.permute.xlu1 %1685  ;;  %5854 = vmatmul.mubr.msk.f32.gmra.mxu1 %vm686_vm4, %v7360_v27  ;;  %v1053_v27 = vpop.permute.xlu0 %1052 }
 0x3c6   :  { %5946 = vmatpush3.xpose.msk.msra.mxu1 %vm686_vm4, %v7526_v11  ;;  %5947 = vmatprep.mubr.msk.f32.mxu1 %vm6916_vm0, %v10120_v0 }
 0x3c7   :  { %6528 = vmatprep.subr.mxu1 %v10120_v0 }
 0x3c9   :  { %v7647_v32 = vpop.permute.xlu1 %1683  ;;  %5948 = vmatmul.mubr.msk.f32.vlgmr.msra.gmra.mxu1 %vm686_vm4, %v7540_v12  ;;  %v1051_v50 = vpop.permute.xlu0 %1050 }
 0x3ca   :  { %5950 = vmatprep.mubr.msk.f32.mxu1 %vm6916_vm0, %v10120_v0 }
 0x3cd   :  { %v7653_v49 = vpop.permute.xlu1 %1679  ;;  %5951 = vmatmul.mubr.msk.f32.gmra.mxu1 %vm686_vm4, %v7532_v9  ;;  %v1049_v30 = vpop.permute.xlu0 %1048 }
 0x3ce   :  { %5953 = vmatprep.mubr.msk.f32.mxu1 %vm6916_vm0, %v10120_v0 }
 0x3d1   :  { %v7659_v22 = vpop.permute.xlu1 %1677  ;;  %5954 = vmatmul.mubr.msk.f32.gmra.mxu1 %vm686_vm4, %v7557_v51  ;;  %v1045_v54 = vpop.permute.xlu0 %1044 }
 0x3d2   :  { %5956 = vmatprep.mubr.msk.f32.mxu1 %vm6916_vm0, %v10120_v0 }
 0x3d5   :  { %v1065_v52 = vpop.permute.xlu1 %1064  ;;  %5957 = vmatmul.mubr.msk.f32.gmra.mxu1 %vm686_vm4, %v7542_v14  ;;  %v1043_v55 = vpop.permute.xlu0 %1042 }
 0x3d6   :  { %5857 = vmatpush3.msk.msra.mxu0 %vm1117_vm5, %v1065_v52  ;;  %5959 = vmatprep.mubr.msk.f32.mxu1 %vm6916_vm0, %v10120_v0 }
 0x3d7   :  { %5858 = vmatprep.subr.mxu0 %v10120_v0 }
 0x3d8   :  { %5859 = vmatpush3.msra.mxu0 %v1063_v57  ;;  %v7771_v57 = vld [vmem:[%s10112_s3 + $0x28] sm:$0xff] }
 0x3d9   :  { %5860 = vmatprep.subr.mxu0 %v10120_v0  ;;  %5960 = vmatmul.mubr.msk.f32.gmra.mxu1 %vm686_vm4, %v7568_v19  ;;  %v1041_v56 = vpop.permute.xlu0 %1040 }
 0x3da   :  { %5861 = vmatpush3.msra.mxu0 %v1061_v29  ;;  %5962 = vmatprep.mubr.msk.f32.mxu1 %vm6916_vm0, %v10120_v0 }
 0x3db   :  { %5862 = vmatprep.subr.mxu0 %v10120_v0 }
 0x3dc   :  { %5863 = vmatpush3.msra.mxu0 %v1059_v44 }
 0x3dd   :  { %5864 = vmatprep.subr.mxu0 %v10120_v0  ;;  %5963 = vmatmul.mubr.msk.f32.gmra.mxu1 %vm686_vm4, %v7550_v16 }
 0x3de   :  { %5865 = vmatpush3.msra.mxu0 %v1057_v24  ;;  %5965 = vmatprep.mubr.msk.f32.mxu1 %vm6916_vm0, %v10120_v0 }
 0x3df   :  { %5866 = vmatprep.subr.mxu0 %v10120_v0 }
 0x3e0   :  { %5867 = vmatpush3.msra.mxu0 %v1055_v1 }
 0x3e1   :  { %5868 = vmatprep.subr.mxu0 %v10120_v0  ;;  %5966 = vmatmul.mubr.msk.f32.gmra.mxu1 %vm686_vm4, %v7585_v21 }
 0x3e2   :  { %5869 = vmatpush3.msra.mxu0 %v1053_v27  ;;  %5968 = vmatprep.mubr.msk.f32.mxu1 %vm6916_vm0, %v10120_v0 }
 0x3e3   :  { %5870 = vmatprep.subr.mxu0 %v10120_v0 }
 0x3e4   :  { %5871 = vmatpush3.msra.mxu0 %v1051_v50 }
 0x3e5   :  { %5872 = vmatprep.subr.mxu0 %v10120_v0  ;;  %5969 = vmatmul.mubr.msk.f32.gmra.mxu1 %vm686_vm4, %v7560_v17  ;;  %v7751_v17 = vld [vmem:[%s10112_s3 + $0x18] sm:$0xff] }
 0x3e6   :  { %5873 = vmatpush3.msra.mxu0 %v1049_v30  ;;  %5971 = vmatprep.mubr.msk.f32.mxu1 %vm6916_vm0, %v10120_v0 }
 0x3e7   :  { %5874 = vmatprep.subr.mxu0 %v10120_v0 }
 0x3e8   :  { %5875 = vmatpush3.msra.mxu0 %v7610_v35 }
 0x3e9   :  { %5876 = vmatprep.subr.mxu0 %v10120_v0  ;;  %5972 = vmatmul.mubr.msk.f32.gmra.mxu1 %vm686_vm4, %v7594_v26  ;;  %v7761_v26 = vld [vmem:[%s10112_s3 + $0x20] sm:$0xff] }
 0x3ea   :  { %5877 = vmatpush3.msra.mxu0 %v1045_v54  ;;  %5974 = vmatprep.mubr.msk.f32.mxu1 %vm6916_vm0, %v10120_v0  ;;  %v7781_v54 = vld [vmem:[%s10112_s3 + $0x30] sm:$0xff] }
 0x3eb   :  { %5878 = vmatprep.subr.mxu0 %v10120_v0 }
 0x3ec   :  { %5879 = vmatpush3.msra.mxu0 %v1043_v55 }
 0x3ed   :  { %5880 = vmatprep.subr.mxu0 %v10120_v0  ;;  %5975 = vmatmul.mubr.msk.f32.gmra.mxu1 %vm686_vm4, %v7570_v20 }
 0x3ee   :  { %5881 = vmatpush3.msra.mxu0 %v1041_v56  ;;  %5977 = vmatprep.mubr.msk.f32.mxu1 %vm6916_vm0, %v10120_v0 }
 0x3ef   :  { %5986 = vmatprep.subr.mxu0 %v10120_v0 }
 0x3f1   :  { %5978 = vmatmul.mubr.msk.f32.gmra.mxu1 %vm686_vm4, %v7607_v46 }
 0x3f2   :  { %5980 = vmatprep.mubr.msk.f32.mxu1 %vm6916_vm0, %v10120_v0 }
 0x3f5   :  { %5981 = vmatmul.mubr.msk.f32.gmra.mxu1 %vm686_vm4, %v7578_v25 }
 0x3f6   :  { %5983 = vmatprep.mubr.msk.f32.mxu1 %vm6916_vm0, %v10120_v0 }
 0x3f9   :  { %5984 = vmatmul.mubr.msk.f32.gmra.mxu1 %vm686_vm4, %v7618_v31 }
 0x3fa   :  { %6071 = vmatprep.mubr.msk.f32.mxu1 %vm6916_vm0, %v10120_v0 }
 0x455   :  { %v805_v39 = vpop.f32.mrf.mxu1 }
 0x456   :  { %v869_v37 = vmul.f32 0.5, %v805_v39 }
 0x457   :  { %v5819_v60 = vpop.f32.mrf.mxu1 }
 0x458   :  { %v7726_v61 = vadd.f32 %v869_v37, %v7723_v59 }
 0x459   :  { %v810_v62 = vpop.f32.mrf.mxu1 }
 0x45a   :  { %v870_v2 = vmul.f32 0.5, %v810_v62  ;;  %v896_v3 = vsel %vm895_vm6, %v7726_v61, -inf  ;;  %v7791_v62 = vld [vmem:[%s10112_s3 + $0x38] sm:$0xff] }
 0x45b   :  { %897 = vmax.xlane.f32.xlu1 %v896_v3  ;;  %v5822_v45 = vpop.f32.mrf.mxu1 }
 0x45c   :  { %v7736_v6 = vadd.f32 %v870_v2, %v7731_v4 }
 0x45d   :  { %v815_v11 = vpop.f32.mrf.mxu1 }
 0x45e   :  { %v871_v9 = vmul.f32 0.5, %v815_v11  ;;  %v899_v12 = vsel %vm895_vm6, %v7736_v6, -inf }
 0x45f   :  { %900 = vmax.xlane.f32.xlu0 %v899_v12  ;;  %v5825_v14 = vpop.f32.mrf.mxu1  ;;  %v7801_v12 = vld [vmem:[%s10112_s3 + $0x40] sm:$0xff] }
 0x460   :  { %v7746_v16 = vadd.f32 %v871_v9, %v7741_v8 }
 0x461   :  { %v820_v51 = vpop.f32.mrf.mxu1 }
 0x462   :  { %v872_v19 = vmul.f32 0.5, %v820_v51  ;;  %v902_v20 = vsel %vm895_vm6, %v7746_v16, -inf }
 0x463   :  { %903 = vmax.xlane.f32.xlu0 %v902_v20  ;;  %v5828_v25 = vpop.f32.mrf.mxu1 }
 0x464   :  { %v7756_v21 = vadd.f32 %v872_v19, %v7751_v17 }
 0x465   :  { %v825_v29 = vpop.f32.mrf.mxu1 }
 0x466   :  { %v873_v44 = vmul.f32 0.5, %v825_v29  ;;  %v905_v1 = vsel %vm895_vm6, %v7756_v21, -inf }
 0x467   :  { %906 = vmax.xlane.f32.xlu0 %v905_v1  ;;  %v5831_v46 = vpop.f32.mrf.mxu1 }
 0x468   :  { %v7766_v35 = vadd.f32 %v873_v44, %v7761_v26 }
 0x469   :  { %v830_v31 = vpop.f32.mrf.mxu1 }
 0x46a   :  { %v874_v24 = vmul.f32 0.5, %v830_v31  ;;  %v908_v27 = vsel %vm895_vm6, %v7766_v35, -inf }
 0x46b   :  { %909 = vmax.xlane.f32.xlu1 %v908_v27  ;;  %v5834_v50 = vpop.f32.mrf.mxu1 }
 0x46c   :  { %v7776_v52 = vadd.f32 %v874_v24, %v7771_v57 }
 0x46d   :  { %v835_v30 = vpop.f32.mrf.mxu1 }
 0x46e   :  { %v875_v55 = vmul.f32 0.5, %v835_v30  ;;  %v911_v56 = vsel %vm895_vm6, %v7776_v52, -inf }
 0x46f   :  { %912 = vmax.xlane.f32.xlu0 %v911_v56  ;;  %v5837_v39 = vpop.f32.mrf.mxu1 }
 0x470   :  { %v7786_v37 = vadd.f32 %v875_v55, %v7781_v54 }
 0x471   :  { %v840_v60 = vpop.f32.mrf.mxu1 }
 0x472   :  { %v876_v2 = vmul.f32 0.5, %v840_v60  ;;  %v914_v3 = vsel %vm895_vm6, %v7786_v37, -inf }
 0x473   :  { %915 = vmax.xlane.f32.xlu1 %v914_v3  ;;  %v5840_v45 = vpop.f32.mrf.mxu1 }
 0x474   :  { %v7796_v11 = vadd.f32 %v876_v2, %v7791_v62 }
 0x475   :  { %v845_v9 = vpop.f32.mrf.mxu1 }
 0x476   :  { %v877_v14 = vmul.f32 0.5, %v845_v9  ;;  %v917_v51 = vsel %vm895_vm6, %v7796_v11, -inf }
 0x477   :  { %918 = vmax.xlane.f32.xlu0 %v917_v51  ;;  %v5843_v19 = vpop.f32.mrf.mxu1 }
 0x478   :  { %v7806_v20 = vadd.f32 %v877_v14, %v7801_v12 }
 0x479   :  { %v850_v25 = vpop.f32.mrf.mxu1 }
 0x47a   :  { %v920_v29 = vsel %vm895_vm6, %v7806_v20, -inf }
 0x47b   :  { %921 = vmax.xlane.f32.xlu1 %v920_v29  ;;  %v5846_v44 = vpop.f32.mrf.mxu1 }
 0x47c   :  { %v878_v44 = vmul.f32 0.5, %v850_v25  ;;  %v58_v25 = vld [vmem:[%s10112_s3 + $0x58] sm:$0xff] }
 0x47d   :  { %v855_v1 = vpop.f32.mrf.mxu1 }
 0x47f   :  { %v5849_v46 = vpop.f32.mrf.mxu1 }
 0x481   :  { %v860_v31 = vpop.f32.mrf.mxu1 }
 0x483   :  { %v5852_v24 = vpop.f32.mrf.mxu1 }
 0x485   :  { %v865_v27 = vpop.f32.mrf.mxu1 }
 0x487   :  { %v5855_v50 = vpop.f32.mrf.mxu1 }
 0x488   :  { %v880_v50 = vmul.f32 0.5, %v860_v31  ;;  %v59_v31 = vld [vmem:[%s10112_s3 + $0x60] sm:$0xf] }
 0x489   :  { %v1434_v30 = vpop.f32.mrf.mxu1 }
 0x48b   :  { %v5949_v55 = vpop.f32.mrf.mxu1 }
 0x48c   :  { %1675 = vrot.lane.b32.xlu1 %v7382_v36, %s6921_s26  ;;  %v56_v36 = vld [vmem:[%s10112_s3 + $0x48] sm:$0xff] }
 0x48d   :  { %1673 = vrot.lane.b32.xlu0 %v7392_v41, %s6921_s26  ;;  %v1439_v56 = vpop.f32.mrf.mxu1  ;;  %v879_v41 = vmul.f32 0.5, %v855_v1  ;;  %v7834_v1 = vadd.f32 %v880_v50, %v58_v25 }
 0x48e   :  { %v1499_v10 = vmul.f32 0.5, %v1439_v56 }
 0x48f   :  { %v5952_v39 = vpop.f32.mrf.mxu1 }
 0x490   :  { %v7819_v39 = vadd.f32 %v878_v44, %v56_v36  ;;  %v1498_v44 = vmul.f32 0.5, %v1434_v30  ;;  %v929_v30 = vsel %vm895_vm6, %v7834_v1, -inf }
 0x491   :  { %v1444_v60 = vpop.f32.mrf.mxu1 }
 0x493   :  { %v5955_v2 = vpop.f32.mrf.mxu1 }
 0x494   :  { %v7824_v2 = vld [vmem:[%s10112_s3 + $0x50] sm:$0xff] }
 0x495   :  { %v1449_v3 = vpop.f32.mrf.mxu1 }
 0x497   :  { %v5958_v45 = vpop.f32.mrf.mxu1 }
 0x499   :  { %v1454_v9 = vpop.f32.mrf.mxu1 }
 0x49b   :  { %v5961_v14 = vpop.f32.mrf.mxu1 }
 0x49c   :  { %v881_v14 = vmul.f32 0.5, %v865_v27  ;;  %v7844_v27 = vadd.f32 %v1498_v44, %v7723_v59 }
 0x49d   :  { %v1459_v51 = vpop.f32.mrf.mxu1 }
 0x49e   :  { %v7841_v15 = vadd.f32 %v881_v14, %v59_v31  ;;  %v1502_v14 = vmul.f32 0.5, %v1454_v9 }
 0x49f   :  { %v5964_v19 = vpop.f32.mrf.mxu1 }
 0x4a0   :  { %v7832_v19 = vadd.f32 %v879_v41, %v7824_v2  ;;  %v1500_v41 = vmul.f32 0.5, %v1444_v60  ;;  %v933_v56 = vsel %vm932_vm7, %v7841_v15, -inf  ;;  %v1501_v60 = vmul.f32 0.5, %v1449_v3 }
 0x4a1   :  { %v7814_v29 = vpop.f32.mrf.mxu1 }
 0x4a2   :  { %v926_v5 = vsel %vm895_vm6, %v7832_v19, -inf  ;;  %v7856_v59 = vadd.f32 %v1500_v41, %v7741_v8  ;;  %v1503_v8 = vmul.f32 0.5, %v1459_v51 }
 0x4a3   :  { %v5967_v46 = vpop.f32.mrf.mxu1 }
 0x4a4   :  { %v1530_v3 = vsel %vm895_vm6, %v7856_v59, -inf }
 0x4a5   :  { %v1469_v24 = vpop.f32.mrf.mxu1 }
 0x4a7   :  { %v5970_v55 = vpop.f32.mrf.mxu1 }
 0x4a8   :  { %v923_v55 = vsel %vm895_vm6, %v7819_v39, -inf }
 0x4a9   :  { %v7829_v45 = vpop.f32.mrf.mxu1 }
 0x4ab   :  { %v5973_v46 = vpop.f32.mrf.mxu1 }
 0x4ac   :  { %924 = vmax.xlane.f32.xlu0 %v923_v55  ;;  %v7851_v55 = vadd.f32 %v1499_v10, %v7731_v4  ;;  %v7863_v10 = vadd.f32 %v1501_v60, %v7751_v17  ;;  %v7866_v4 = vadd.f32 %v1502_v14, %v7761_v26 }
 0x4ad   :  { %v1479_v0 = vpop.f32.mrf.mxu1 }
 0x4ae   :  { %v1533_v17 = vsel %vm895_vm6, %v7863_v10, -inf  ;;  %v1536_v26 = vsel %vm895_vm6, %v7866_v4, -inf  ;;  %v1507_v60 = vmul.f32 0.5, %v1479_v0 }
 0x4af   :  { %v5976_v50 = vpop.f32.mrf.mxu1 }
 0x4b0   :  { %927 = vmax.xlane.f32.xlu1 %v926_v5  ;;  %930 = vmax.xlane.f32.xlu0 %v929_v30  ;;  %v1524_v50 = vsel %vm895_vm6, %v7844_v27, -inf  ;;  %v1527_v30 = vsel %vm895_vm6, %v7851_v55, -inf }
 0x4b1   :  { %v1484_v46 = vpop.f32.mrf.mxu1 }
 0x4b3   :  { %v5979_v44 = vpop.f32.mrf.mxu1 }
 0x4b4   :  { %934 = vmax.xlane.f32.xlu1 %v933_v56  ;;  %1525 = vmax.xlane.f32.xlu0 %v1524_v50  ;;  %v7871_v56 = vadd.f32 %v1503_v8, %v7771_v57  ;;  %v1505_v44 = vmul.f32 0.5, %v1469_v24  ;;  %v7882_v57 = vadd.f32 %v1507_v60, %v56_v36 }
 0x4b5   :  { %v1489_v5 = vpop.f32.mrf.mxu1 }
 0x4b6   :  { %v7878_v51 = vadd.f32 %v1505_v44, %v7791_v62  ;;  %v1539_v14 = vsel %vm895_vm6, %v7871_v56, -inf  ;;  %v1509_v24 = vmul.f32 0.5, %v1489_v5 }
 0x4b7   :  { %v5982_v41 = vpop.f32.mrf.mxu1 }
 0x4b8   :  { %1528 = vmax.xlane.f32.xlu1 %v1527_v30  ;;  %1531 = vmax.xlane.f32.xlu0 %v1530_v3  ;;  %v1545_v30 = vsel %vm895_vm6, %v7878_v51, -inf  ;;  %v7886_v8 = vadd.f32 %v1509_v24, %v58_v25  ;;  %v1551_v3 = vsel %vm895_vm6, %v7882_v57, -inf  ;;  %v7898_v25 = vpop.permute.xlu0 %1681 }
 0x4b9   :  { %v1494_v9 = vpop.f32.mrf.mxu1 }
 0x4ba   :  { %v1510_v41 = vmul.f32 0.5, %v1494_v9  ;;  %v1557_v0 = vsel %vm895_vm6, %v7886_v8, -inf }
 0x4bb   :  { %v5985_v50 = vpop.f32.mrf.mxu1 }
 0x4bc   :  { %1534 = vmax.xlane.f32.xlu1 %v1533_v17  ;;  %1537 = vmax.xlane.f32.xlu0 %v1536_v26  ;;  %v7890_v62 = vadd.f32 %v1510_v41, %v59_v31  ;;  %v7900_v5 = vpop.permute.xlu0 %1691  ;;  %v1504_v31 = vmul.f32 0.5, %v7814_v29  ;;  %v1508_v29 = vmul.f32 0.5, %v1484_v46 }
 0x4be   :  { %v1560_v36 = vsel %vm932_vm7, %v7890_v62, -inf  ;;  %v7906_v60 = vadd.f32 %v1504_v31, %v7781_v54 }
 0x4c0   :  { %1540 = vmax.xlane.f32.xlu1 %v1539_v14  ;;  %v1506_v14 = vmul.f32 0.5, %v7829_v45  ;;  %v1542_v41 = vsel %vm895_vm6, %v7906_v60, -inf  ;;  %v7917_v45 = vadd.f32 %v1508_v29, %v7824_v2 }
 0x4c4   :  { %1546 = vmax.xlane.f32.xlu1 %v1545_v30 }
 0x4c8   :  { %1552 = vmax.xlane.f32.xlu1 %v1551_v3 }
 0x4cc   :  { %1558 = vmax.xlane.f32.xlu1 %v1557_v0 }
 0x4d0   :  { %1561 = vmax.xlane.f32.xlu1 %v1560_v36 }
 0x4d2   :  { %1671 = vrot.lane.b32.xlu0 %v7390_v40, %s6921_s26 }
 0x4e4   :  { %v898_v9 = vpop.xlane.xlu1 %897 }
 0x4e5   :  { %v936_v44 = vsub.f32 %v7726_v61, %v898_v9  ;;  %v7913_v61 = vadd.f32 %v1506_v14, %v7801_v12 }
 0x4e7   :  { %v949_v50 = vmul.f32 1.442695, %v936_v44  ;;  %v1554_v44 = vsel %vm895_vm6, %v7917_v45, -inf }
 0x4e8   :  { %v901_v17 = vpop.xlane.xlu0 %900 }
 0x4e9   :  { %v937_v26 = vsub.f32 %v7736_v6, %v901_v17  ;;  %6564 = vpow2.f32 %v949_v50 }
 0x4eb   :  { %v951_v40 = vmul.f32 1.442695, %v937_v26 }
 0x4ec   :  { %v904_v24 = vpop.xlane.xlu0 %903 }
 0x4ed   :  { %v938_v30 = vsub.f32 %v7746_v16, %v904_v24  ;;  %6566 = vpow2.f32 %v951_v40  ;;  %v1548_v16 = vsel %vm895_vm6, %v7913_v61, -inf }
 0x4ef   :  { %v953_v3 = vmul.f32 1.442695, %v938_v30 }
 0x4f0   :  { %v907_v6 = vpop.xlane.xlu0 %906 }
 0x4f1   :  { %v939_v54 = vsub.f32 %v7756_v21, %v907_v6  ;;  %1543 = vmax.xlane.f32.xlu0 %v1542_v41  ;;  %6568 = vpow2.f32 %v953_v3 }
 0x4f3   :  { %v955_v0 = vmul.f32 1.442695, %v939_v54 }
 0x4f4   :  { %v910_v36 = vpop.xlane.xlu1 %909 }
 0x4f5   :  { %v940_v9 = vsub.f32 %v7766_v35, %v910_v36  ;;  %1549 = vmax.xlane.f32.xlu0 %v1548_v16  ;;  %6570 = vpow2.f32 %v955_v0 }
 0x4f6   :  { %v7924_v21 = vpop.eup %6564 }
 0x4f7   :  { %v957_v12 = vmul.f32 1.442695, %v940_v9  ;;  %v975_v17 = vsel %vm895_vm6, %v7924_v21, 0.0 }
 0x4f8   :  { %v913_v46 = vpop.xlane.xlu0 %912 }
 0x4f9   :  { %6572 = vpow2.f32 %v957_v12  ;;  %v941_v2 = vsub.f32 %v7776_v52, %v913_v46  ;;  %1555 = vmax.xlane.f32.xlu0 %v1554_v44 }
 0x4fa   :  { %v7929_v26 = vpop.eup %6566 }
 0x4fb   :  { %v959_v31 = vmul.f32 1.442695, %v941_v2  ;;  %v978_v24 = vsel %vm895_vm6, %v7929_v26, 0.0 }
 0x4fc   :  { %v916_v50 = vpop.xlane.xlu1 %915 }
 0x4fd   :  { %6574 = vpow2.f32 %v959_v31  ;;  %v942_v35 = vsub.f32 %v7786_v37, %v916_v50  ;;  %976 = vadd.xlane.f32.xlu0 %v975_v17 }
 0x4fe   :  { %v7934_v30 = vpop.eup %6568 }
 0x4ff   :  { %v961_v14 = vmul.f32 1.442695, %v942_v35  ;;  %v981_v3 = vsel %vm895_vm6, %v7934_v30, 0.0 }
 0x500   :  { %v919_v40 = vpop.xlane.xlu0 %918 }
 0x501   :  { %6576 = vpow2.f32 %v961_v14  ;;  %v943_v52 = vsub.f32 %v7796_v11, %v919_v40  ;;  %979 = vadd.xlane.f32.xlu0 %v978_v24 }
 0x502   :  { %v7939_v6 = vpop.eup %6570 }
 0x503   :  { %v963_v41 = vmul.f32 1.442695, %v943_v52  ;;  %v984_v11 = vsel %vm895_vm6, %v7939_v6, 0.0 }
 0x504   :  { %v922_v29 = vpop.xlane.xlu1 %921  ;;  %v7964_v50 = vpop.permute.xlu0 %1673 }
 0x505   :  { %6578 = vpow2.f32 %v963_v41  ;;  %v944_v37 = vsub.f32 %v7806_v20, %v922_v29  ;;  %982 = vadd.xlane.f32.xlu0 %v981_v3 }
 0x506   :  { %v7942_v54 = vpop.eup %6572 }
 0x507   :  { %v965_v0 = vmul.f32 1.442695, %v944_v37  ;;  %v987_v36 = vsel %vm895_vm6, %v7942_v54, 0.0 }
 0x508   :  { %988 = vadd.xlane.f32.xlu1 %v987_v36  ;;  %v7966_v17 = vpop.permute.xlu1 %1675 }
 0x509   :  { %6580 = vpow2.f32 %v965_v0  ;;  %985 = vadd.xlane.f32.xlu0 %v984_v11 }
 0x50a   :  { %v7948_v16 = vpop.eup %6574 }
 0x50b   :  { %v990_v9 = vsel %vm895_vm6, %v7948_v16, 0.0 }
 0x50d   :  { %991 = vadd.xlane.f32.xlu0 %v990_v9 }
 0x50e   :  { %v7952_v20 = vpop.eup %6576 }
 0x50f   :  { %v993_v12 = vsel %vm895_vm6, %v7952_v20, 0.0 }
 0x510   :  { %994 = vadd.xlane.f32.xlu1 %v993_v12 }
 0x512   :  { %v7956_v46 = vpop.eup %6578 }
 0x513   :  { %v996_v44 = vsel %vm895_vm6, %v7956_v46, 0.0 }
 0x514   :  { %997 = vadd.xlane.f32.xlu0 %v996_v44 }
 0x516   :  { %v7960_v2 = vpop.eup %6580 }
 0x517   :  { %v999_v31 = vsel %vm895_vm6, %v7960_v2, 0.0 }
 0x518   :  { %1000 = vadd.xlane.f32.xlu1 %v999_v31 }
 0x535   :  { %v925_v35 = vpop.xlane.xlu0 %924 }
 0x536   :  { %v945_v14 = vsub.f32 %v7819_v39, %v925_v35 }
 0x538   :  { %v967_v40 = vmul.f32 1.442695, %v945_v14 }
 0x539   :  { %v928_v24 = vpop.xlane.xlu1 %927  ;;  %v931_v52 = vpop.xlane.xlu0 %930 }
 0x53a   :  { %6582 = vpow2.f32 %v967_v40  ;;  %v946_v41 = vsub.f32 %v7832_v19, %v928_v24  ;;  %v947_v29 = vsub.f32 %v7834_v1, %v931_v52 }
 0x53c   :  { %v969_v3 = vmul.f32 1.442695, %v946_v41  ;;  %v971_v37 = vmul.f32 1.442695, %v947_v29 }
 0x53d   :  { %v935_v0 = vpop.xlane.xlu1 %934  ;;  %v1526_v36 = vpop.xlane.xlu0 %1525 }
 0x53e   :  { %6584 = vpow2.f32 %v969_v3  ;;  %v948_v11 = vsub.f32 %v7841_v15, %v935_v0  ;;  %v1563_v9 = vsub.f32 %v7844_v27, %v1526_v36 }
 0x53f   :  { %6586 = vpow2.f32 %v971_v37 }
 0x540   :  { %v973_v12 = vmul.f32 1.442695, %v948_v11  ;;  %v1576_v31 = vmul.f32 1.442695, %v1563_v9 }
 0x541   :  { %v1529_v39 = vpop.xlane.xlu1 %1528  ;;  %v1532_v44 = vpop.xlane.xlu0 %1531 }
 0x542   :  { %v1565_v35 = vsub.f32 %v7856_v59, %v1532_v44  ;;  %6588 = vpow2.f32 %v973_v12  ;;  %v1564_v19 = vsub.f32 %v7851_v55, %v1529_v39 }
 0x543   :  { %6590 = vpow2.f32 %v1576_v31 }
 0x544   :  { %v1580_v1 = vmul.f32 1.442695, %v1565_v35  ;;  %v1578_v15 = vmul.f32 1.442695, %v1564_v19 }
 0x545   :  { %v1535_v14 = vpop.xlane.xlu1 %1534  ;;  %v1538_v40 = vpop.xlane.xlu0 %1537 }
 0x546   :  { %v1567_v24 = vsub.f32 %v7866_v4, %v1538_v40  ;;  %6592 = vpow2.f32 %v1580_v1  ;;  %v1566_v27 = vsub.f32 %v7863_v10, %v1535_v14 }
 0x547   :  { %v7976_v52 = vpop.eup %6582 }
 0x548   :  { %v1584_v41 = vmul.f32 1.442695, %v1567_v24  ;;  %v1002_v29 = vsel %vm895_vm6, %v7976_v52, 0.0  ;;  %v1582_v55 = vmul.f32 1.442695, %v1566_v27 }
 0x549   :  { %v1541_v59 = vpop.xlane.xlu1 %1540  ;;  %1003 = vadd.xlane.f32.xlu1 %v1002_v29 }
 0x54a   :  { %6594 = vpow2.f32 %v1584_v41  ;;  %v1568_v37 = vsub.f32 %v7871_v56, %v1541_v59  ;;  %v8020_v41 = vpop.permute.xlu0 %1671 }
 0x54b   :  { %v7981_v3 = vpop.eup %6584  ;;  %6596 = vpow2.f32 %v1578_v15 }
 0x54c   :  { %v1005_v4 = vsel %vm895_vm6, %v7981_v3, 0.0  ;;  %v7986_v0 = vpop.eup %6586  ;;  %6598 = vpow2.f32 %v1582_v55  ;;  %v1586_v10 = vmul.f32 1.442695, %v1568_v37 }
 0x54d   :  { %1006 = vadd.xlane.f32.xlu1 %v1005_v4  ;;  %v1008_v36 = vsel %vm895_vm6, %v7986_v0, 0.0  ;;  %v1547_v27 = vpop.xlane.xlu1 %1546 }
 0x54e   :  { %6600 = vpow2.f32 %v1586_v10  ;;  %v1570_v29 = vsub.f32 %v7878_v51, %v1547_v27 }
 0x54f   :  { %v7990_v11 = vpop.eup %6588 }
 0x550   :  { %v7992_v9 = vpop.eup %6590  ;;  %v1011_v56 = vsel %vm932_vm7, %v7990_v11, 0.0  ;;  %v1590_v55 = vmul.f32 1.442695, %v1570_v29 }
 0x551   :  { %1009 = vadd.xlane.f32.xlu1 %v1008_v36  ;;  %v1602_v31 = vsel %vm895_vm6, %v7992_v9, 0.0  ;;  %v1553_v59 = vpop.xlane.xlu1 %1552 }
 0x552   :  { %v1572_v37 = vsub.f32 %v7882_v57, %v1553_v59  ;;  %6602 = vpow2.f32 %v1590_v55 }
 0x553   :  { %v7994_v12 = vpop.eup %6592 }
 0x554   :  { %v1608_v39 = vsel %vm895_vm6, %v7994_v12, 0.0 }
 0x555   :  { %1012 = vadd.xlane.f32.xlu1 %v1011_v56  ;;  %1609 = vadd.xlane.f32.xlu0 %v1608_v39  ;;  %v1559_v36 = vpop.xlane.xlu1 %1558  ;;  %v1594_v39 = vmul.f32 1.442695, %v1572_v37 }
 0x557   :  { %v8000_v44 = vpop.eup %6594 }
 0x558   :  { %v8004_v35 = vpop.eup %6596  ;;  %v1614_v19 = vsel %vm895_vm6, %v8000_v44, 0.0 }
 0x559   :  { %1603 = vadd.xlane.f32.xlu1 %v1602_v31  ;;  %1615 = vadd.xlane.f32.xlu0 %v1614_v19  ;;  %v1605_v1 = vsel %vm895_vm6, %v8004_v35, 0.0  ;;  %v8010_v14 = vpop.eup %6598 }
 0x55a   :  { %v1611_v40 = vsel %vm895_vm6, %v8010_v14, 0.0 }
 0x55b   :  { %v8014_v24 = vpop.eup %6600 }
 0x55c   :  { %v1617_v15 = vsel %vm895_vm6, %v8014_v24, 0.0 }
 0x55d   :  { %1606 = vadd.xlane.f32.xlu1 %v1605_v1  ;;  %v1562_v1 = vpop.xlane.xlu1 %1561 }
 0x55e   :  { %v1575_v57 = vsub.f32 %v7890_v62, %v1562_v1 }
 0x55f   :  { %v8030_v59 = vpop.eup %6602 }
 0x561   :  { %1612 = vadd.xlane.f32.xlu1 %v1611_v40 }
 0x565   :  { %1618 = vadd.xlane.f32.xlu1 %v1617_v15 }
 0x56f   :  { %1669 = vrot.lane.b32.xlu0 %v7400_v42, %s6921_s26  ;;  %v1574_v42 = vsub.f32 %v7886_v8, %v1559_v36 }
 0x571   :  { %v1598_v15 = vmul.f32 1.442695, %v1574_v42 }
 0x57a   :  { %v1544_v4 = vpop.xlane.xlu0 %1543 }
 0x57b   :  { %v1569_v10 = vsub.f32 %v7906_v60, %v1544_v4  ;;  %v1600_v60 = vmul.f32 1.442695, %v1575_v57 }
 0x57d   :  { %v1588_v56 = vmul.f32 1.442695, %v1569_v10 }
 0x57e   :  { %v8025_v31 = vpop.xlane.xlu0 %1549 }
 0x57f   :  { %6604 = vpow2.f32 %v1588_v56 }
 0x580   :  { %6606 = vpow2.f32 %v1594_v39 }
 0x582   :  { %v1556_v19 = vpop.xlane.xlu0 %1555 }
 0x583   :  { %v1573_v51 = vsub.f32 %v7917_v45, %v1556_v19  ;;  %v1623_v45 = vsel %vm895_vm6, %v8030_v59, 0.0 }
 0x585   :  { %v1596_v40 = vmul.f32 1.442695, %v1573_v51 }
 0x586   :  { %v977_v27 = vpop.xlane.xlu0 %976 }
 0x587   :  { %6608 = vpow2.f32 %v1596_v40 }
 0x588   :  { %6610 = vrcp.f32 %v977_v27 }
 0x589   :  { %6612 = vpow2.f32 %v1598_v15  ;;  %v10132_v15 = vmov 0.0  }
 0x58a   :  { %v980_v29 = vpop.xlane.xlu0 %979 }
 0x58b   :  { %6614 = vrcp.f32 %v980_v29 }
 0x58c   :  { %v8032_v55 = vpop.eup %6604  ;;  %6616 = vpow2.f32 %v1600_v60 }
 0x58d   :  { %v1620_v8 = vsel %vm895_vm6, %v8032_v55, 0.0  ;;  %v8038_v62 = vpop.eup %6606 }
 0x58e   :  { %v983_v37 = vpop.xlane.xlu0 %982  ;;  %1621 = vadd.xlane.f32.xlu1 %v1620_v8  ;;  %1624 = vadd.xlane.f32.xlu0 %v1623_v45  ;;  %v1629_v4 = vsel %vm895_vm6, %v8038_v62, 0.0 }
 0x58f   :  { %6618 = vrcp.f32 %v983_v37 }
 0x591   :  { %v989_v36 = vpop.xlane.xlu1 %988 }
 0x592   :  { %v986_v10 = vpop.xlane.xlu0 %985  ;;  %1630 = vadd.xlane.f32.xlu0 %v1629_v4 }
 0x593   :  { %6620 = vrcp.f32 %v986_v10 }
 0x594   :  { %v8042_v56 = vpop.eup %6608  ;;  %6622 = vrcp.f32 %v989_v36 }
 0x595   :  { %v6611_v39 = vpop.eup %6610  ;;  %v1632_v42 = vsel %vm895_vm6, %v8042_v56, 0.0 }
 0x596   :  { %v1015_v19 = vmul.f32 %v6611_v39, %v7924_v21  ;;  %v8047_v1 = vpop.eup %6612  ;;  %1633 = vadd.xlane.f32.xlu0 %v1632_v42  ;;  %v992_v51 = vpop.xlane.xlu0 %991 }
 0x597   :  { %6624 = vrcp.f32 %v992_v51  ;;  %v1635_v21 = vsel %vm895_vm6, %v8047_v1, 0.0 }
 0x598   :  { %v6615_v40 = vpop.eup %6614  ;;  %5883 = vmatmul.mubr.msk.f32.vlgmr.msra.gmra.mxu0 %vm895_vm6, %v1015_v19 }
 0x599   :  { %5987 = vmatpush3.msk.msra.mxu0 %vm1117_vm5, %v7900_v5  ;;  %5885 = vmatprep.mubr.msk.f32.mxu0 %vm6916_vm0, %v10132_v15  ;;  %v1017_v57 = vmul.f32 %v6615_v40, %v7929_v26  ;;  %v8058_v27 = vpop.eup %6616  ;;  %v995_v60 = vpop.xlane.xlu1 %994 }
 0x59a   :  { %5988 = vmatprep.subr.mxu0 %v10132_v15  ;;  %1636 = vadd.xlane.f32.xlu0 %v1635_v21  ;;  %6626 = vrcp.f32 %v995_v60 }
 0x59b   :  { %5989 = vmatpush3.msra.mxu0 %v7620_v13  ;;  %v1638_v13 = vsel %vm932_vm7, %v8058_v27, 0.0 }
 0x59c   :  { %v6619_v29 = vpop.eup %6618  ;;  %5990 = vmatprep.subr.mxu0 %v10132_v15  ;;  %5886 = vmatmul.mubr.msk.f32.gmra.mxu0 %vm895_vm6, %v1017_v57 }
 0x59d   :  { %5991 = vmatpush3.msra.mxu0 %v7629_v34  ;;  %5888 = vmatprep.mubr.msk.f32.mxu0 %vm6916_vm0, %v10132_v15  ;;  %v1019_v5 = vmul.f32 %v6619_v29, %v7934_v30  ;;  %v998_v26 = vpop.xlane.xlu0 %997 }
 0x59e   :  { %5992 = vmatprep.subr.mxu0 %v10132_v15  ;;  %1639 = vadd.xlane.f32.xlu0 %v1638_v13  ;;  %6628 = vrcp.f32 %v998_v26 }
 0x59f   :  { %5993 = vmatpush3.msra.mxu0 %v7638_v47  ;;  %1667 = vrot.lane.b32.xlu1 %v7398_v7, %s6921_s26 }
 0x5a0   :  { %v6621_v8 = vpop.eup %6620  ;;  %5994 = vmatprep.subr.mxu0 %v10132_v15  ;;  %5889 = vmatmul.mubr.msk.f32.gmra.mxu0 %vm895_vm6, %v1019_v5 }
 0x5a1   :  { %5995 = vmatpush3.msra.mxu0 %v7647_v32  ;;  %v1021_v34 = vmul.f32 %v6621_v8, %v7939_v6  ;;  %5891 = vmatprep.mubr.msk.f32.mxu0 %vm6916_vm0, %v10132_v15  ;;  %v6623_v47 = vpop.eup %6622  ;;  %v1001_v30 = vpop.xlane.xlu1 %1000  ;;  %v1571_v6 = vsub.f32 %v7913_v61, %v8025_v31 }
 0x5a2   :  { %5996 = vmatprep.subr.mxu0 %v10132_v15  ;;  %6630 = vrcp.f32 %v1001_v30  ;;  %v1023_v7 = vmul.f32 %v6623_v47, %v7942_v54 }
 0x5a3   :  { %5997 = vmatpush3.msra.mxu0 %v7898_v25 }
 0x5a4   :  { %5998 = vmatprep.subr.mxu0 %v10132_v15  ;;  %5892 = vmatmul.mubr.msk.f32.gmra.mxu0 %vm895_vm6, %v1021_v34  ;;  %v6625_v32 = vpop.eup %6624 }
 0x5a5   :  { %5999 = vmatpush3.msra.mxu0 %v7653_v49  ;;  %5894 = vmatprep.mubr.msk.f32.mxu0 %vm6916_vm0, %v10132_v15  ;;  %v1025_v49 = vmul.f32 %v6625_v32, %v7948_v16  ;;  %v1592_v16 = vmul.f32 1.442695, %v1571_v6 }
 0x5a6   :  { %6000 = vmatprep.subr.mxu0 %v10132_v15 }
 0x5a7   :  { %6001 = vmatpush3.msra.mxu0 %v7659_v22  ;;  %v6627_v25 = vpop.eup %6626  ;;  %6632 = vpow2.f32 %v1592_v16 }
 0x5a8   :  { %6002 = vmatprep.subr.mxu0 %v10132_v15  ;;  %5895 = vmatmul.mubr.msk.f32.gmra.mxu0 %vm895_vm6, %v1023_v7  ;;  %v1027_v22 = vmul.f32 %v6627_v25, %v7952_v20 }
 0x5a9   :  { %6003 = vmatpush3.msra.mxu0 %v7966_v17  ;;  %5897 = vmatprep.mubr.msk.f32.mxu0 %vm6916_vm0, %v10132_v15 }
 0x5aa   :  { %6004 = vmatprep.subr.mxu0 %v10132_v15 }
 0x5ab   :  { %6005 = vmatpush3.msra.mxu0 %v7964_v50  ;;  %v6629_v54 = vpop.eup %6628 }
 0x5ac   :  { %6006 = vmatprep.subr.mxu0 %v10132_v15  ;;  %5898 = vmatmul.mubr.msk.f32.gmra.mxu0 %vm895_vm6, %v1025_v49  ;;  %v1029_v61 = vmul.f32 %v6629_v54, %v7956_v46 }
 0x5ad   :  { %6007 = vmatpush3.msra.mxu0 %v8020_v41  ;;  %5900 = vmatprep.mubr.msk.f32.mxu0 %vm6916_vm0, %v10132_v15 }
 0x5ae   :  { %6008 = vmatprep.subr.mxu0 %v10132_v15 }
 0x5af   :  { %v6631_v50 = vpop.eup %6630 }
 0x5b0   :  { %5901 = vmatmul.mubr.msk.f32.gmra.mxu0 %vm895_vm6, %v1027_v22  ;;  %v1031_v20 = vmul.f32 %v6631_v50, %v7960_v2 }
 0x5b1   :  { %5903 = vmatprep.mubr.msk.f32.mxu0 %vm6916_vm0, %v10132_v15 }
 0x5b4   :  { %5904 = vmatmul.mubr.msk.f32.gmra.mxu0 %vm895_vm6, %v1029_v61  ;;  %v8117_v17 = vpop.eup %6632 }
 0x5b5   :  { %5906 = vmatprep.mubr.msk.f32.mxu0 %vm6916_vm0, %v10132_v15  ;;  %v1626_v41 = vsel %vm895_vm6, %v8117_v17, 0.0 }
 0x5b8   :  { %5907 = vmatmul.mubr.msk.f32.gmra.mxu0 %vm895_vm6, %v1031_v20 }
 0x5b9   :  { %5909 = vmatprep.mubr.msk.f32.mxu0 %vm6916_vm0, %v10132_v15 }
 0x5c3   :  { %1627 = vadd.xlane.f32.xlu1 %v1626_v41 }
 0x5d2   :  { %v1004_v46 = vpop.xlane.xlu1 %1003 }
 0x5d3   :  { %6634 = vrcp.f32 %v1004_v46 }
 0x5d6   :  { %v1007_v31 = vpop.xlane.xlu1 %1006 }
 0x5d7   :  { %6636 = vrcp.f32 %v1007_v31 }
 0x5da   :  { %v1010_v45 = vpop.xlane.xlu1 %1009 }
 0x5db   :  { %6638 = vrcp.f32 %v1010_v45 }
 0x5de   :  { %v1013_v37 = vpop.xlane.xlu1 %1012  ;;  %v1610_v4 = vpop.xlane.xlu0 %1609 }
 0x5df   :  { %6640 = vrcp.f32 %v1013_v37 }
 0x5e0   :  { %v6635_v2 = vpop.eup %6634 }
 0x5e1   :  { %v1033_v10 = vmul.f32 %v6635_v2, %v7976_v52 }
 0x5e2   :  { %v1616_v36 = vpop.xlane.xlu0 %1615  ;;  %v1604_v57 = vpop.xlane.xlu1 %1603 }
 0x5e3   :  { %5910 = vmatmul.mubr.msk.f32.gmra.mxu0 %vm895_vm6, %v1033_v10  ;;  %6642 = vrcp.f32 %v1604_v57 }
 0x5e4   :  { %v6637_v39 = vpop.eup %6636  ;;  %5912 = vmatprep.mubr.msk.f32.mxu0 %vm6916_vm0, %v10132_v15 }
 0x5e5   :  { %v1035_v42 = vmul.f32 %v6637_v39, %v7981_v3 }
 0x5e6   :  { %v1670_v19 = vpop.permute.xlu0 %1669  ;;  %v1607_v21 = vpop.xlane.xlu1 %1606 }
 0x5e7   :  { %5913 = vmatmul.mubr.msk.f32.gmra.mxu0 %vm895_vm6, %v1035_v42  ;;  %6644 = vrcp.f32 %v1607_v21 }
 0x5e8   :  { %v6639_v51 = vpop.eup %6638  ;;  %6009 = vmatpush3.msra.mxu0 %v1670_v19  ;;  %5915 = vmatprep.mubr.msk.f32.mxu0 %vm6916_vm0, %v10132_v15  ;;  %6646 = vrcp.f32 %v1610_v4 }
 0x5e9   :  { %v1037_v40 = vmul.f32 %v6639_v51, %v7986_v0  ;;  %6010 = vmatprep.subr.mxu0 %v10132_v15 }
 0x5ea   :  { %v1613_v60 = vpop.xlane.xlu1 %1612 }
 0x5eb   :  { %5916 = vmatmul.mubr.msk.f32.gmra.mxu0 %vm895_vm6, %v1037_v40  ;;  %6648 = vrcp.f32 %v1613_v60 }
 0x5ec   :  { %v6641_v52 = vpop.eup %6640  ;;  %5918 = vmatprep.mubr.msk.f32.mxu0 %vm6916_vm0, %v10132_v15  ;;  %6650 = vrcp.f32 %v1616_v36 }
 0x5ed   :  { %v1039_v3 = vmul.f32 %v6641_v52, %v7990_v11 }
 0x5ee   :  { %v1619_v0 = vpop.xlane.xlu1 %1618 }
 0x5ef   :  { %5919 = vmatmul.mubr.msk.f32.gmra.mxu0 %vm895_vm6, %v1039_v3  ;;  %6652 = vrcp.f32 %v1619_v0 }
 0x5f0   :  { %6012 = vmatprep.mubr.msk.f32.mxu0 %vm6916_vm0, %v10132_v15  ;;  %v6643_v5 = vpop.eup %6642 }
 0x5f1   :  { %v1642_v13 = vmul.f32 %v6643_v5, %v7992_v9 }
 0x5f4   :  { %v6645_v11 = vpop.eup %6644 }
 0x5f5   :  { %v1644_v8 = vmul.f32 %v6645_v11, %v8004_v35  ;;  %v6647_v34 = vpop.eup %6646 }
 0x5f6   :  { %v1646_v9 = vmul.f32 %v6647_v34, %v7994_v12 }
 0x5f8   :  { %v6649_v47 = vpop.eup %6648 }
 0x5f9   :  { %v1648_v7 = vmul.f32 %v6649_v47, %v8010_v14  ;;  %v6651_v35 = vpop.eup %6650 }
 0x5fa   :  { %v1650_v32 = vmul.f32 %v6651_v35, %v8000_v44 }
 0x5fc   :  { %v6653_v49 = vpop.eup %6652 }
 0x5fd   :  { %v1652_v12 = vmul.f32 %v6653_v49, %v8014_v24 }
 0x617   :  { %v1622_v29 = vpop.xlane.xlu1 %1621  ;;  %v1625_v30 = vpop.xlane.xlu0 %1624 }
 0x618   :  { %6654 = vrcp.f32 %v1622_v29 }
 0x619   :  { %6656 = vrcp.f32 %v1625_v30 }
 0x61b   :  { %v1668_v26 = vpop.permute.xlu1 %1667  ;;  %v1631_v24 = vpop.xlane.xlu0 %1630 }
 0x61c   :  { %6011 = vmatpush3.msra.mxu0 %v1668_v26 }
 0x61d   :  { %6013 = vmatmul.mubr.msk.f32.vlgmr.msra.gmra.mxu0 %vm895_vm6, %v1642_v13  ;;  %6051 = vmatprep.subr.mxu0 %v10132_v15 }
 0x61e   :  { %6015 = vmatprep.mubr.msk.f32.mxu0 %vm6916_vm0, %v10132_v15 }
 0x61f   :  { %v1634_v22 = vpop.xlane.xlu0 %1633 }
 0x621   :  { %6016 = vmatmul.mubr.msk.f32.gmra.mxu0 %vm895_vm6, %v1644_v8 }
 0x622   :  { %6018 = vmatprep.mubr.msk.f32.mxu0 %vm6916_vm0, %v10132_v15 }
 0x623   :  { %v1637_v16 = vpop.xlane.xlu0 %1636 }
 0x625   :  { %6019 = vmatmul.mubr.msk.f32.gmra.mxu0 %vm895_vm6, %v1646_v9  ;;  %v6655_v25 = vpop.eup %6654 }
 0x626   :  { %6021 = vmatprep.mubr.msk.f32.mxu0 %vm6916_vm0, %v10132_v15  ;;  %v1654_v14 = vmul.f32 %v6655_v25, %v8032_v55  ;;  %v6657_v6 = vpop.eup %6656 }
 0x627   :  { %v1656_v44 = vmul.f32 %v6657_v6, %v8030_v59  ;;  %v1640_v61 = vpop.xlane.xlu0 %1639 }
 0x629   :  { %6022 = vmatmul.mubr.msk.f32.gmra.mxu0 %vm895_vm6, %v1648_v7 }
 0x62a   :  { %6024 = vmatprep.mubr.msk.f32.mxu0 %vm6916_vm0, %v10132_v15 }
 0x62d   :  { %6025 = vmatmul.mubr.msk.f32.gmra.mxu0 %vm895_vm6, %v1650_v32 }
 0x62e   :  { %6027 = vmatprep.mubr.msk.f32.mxu0 %vm6916_vm0, %v10132_v15 }
 0x631   :  { %6028 = vmatmul.mubr.msk.f32.gmra.mxu0 %vm895_vm6, %v1652_v12 }
 0x632   :  { %6030 = vmatprep.mubr.msk.f32.mxu0 %vm6916_vm0, %v10132_v15 }
 0x635   :  { %6031 = vmatmul.mubr.msk.f32.gmra.mxu0 %vm895_vm6, %v1654_v14 }
 0x636   :  { %6033 = vmatprep.mubr.msk.f32.mxu0 %vm6916_vm0, %v10132_v15 }
 0x639   :  { %6034 = vmatmul.mubr.msk.f32.gmra.mxu0 %vm895_vm6, %v1656_v44 }
 0x63a   :  { %6036 = vmatprep.mubr.msk.f32.mxu0 %vm6916_vm0, %v10132_v15 }
 0x64c   :  { %v1628_v54 = vpop.xlane.xlu1 %1627 }
 0x64d   :  { %6658 = vrcp.f32 %v1628_v54 }
 0x64e   :  { %6660 = vrcp.f32 %v1631_v24 }
 0x64f   :  { %6662 = vrcp.f32 %v1634_v22 }
 0x650   :  { %6664 = vrcp.f32 %v1637_v16 }
 0x651   :  { %6666 = vrcp.f32 %v1640_v61 }
 0x658   :  { %v1186_v55 = vpop.f32.mrf.mxu0 }
 0x659   :  { %1250 = vst.msk [vmem:[#allocation2] sm:$0xff] %vm686_vm4, %v1186_v55 }
 0x65a   :  { %v5884_v50 = vpop.f32.mrf.mxu0  ;;  %v6659_v20 = vpop.eup %6658 }
 0x65b   :  { %v1658_v41 = vmul.f32 %v6659_v20, %v8117_v17  ;;  %v6661_v46 = vpop.eup %6660 }
 0x65c   :  { %v1191_v59 = vpop.f32.mrf.mxu0  ;;  %v1660_v37 = vmul.f32 %v6661_v46, %v8038_v62  ;;  %v6663_v4 = vpop.eup %6662 }
 0x65d   :  { %1251 = vst.msk [vmem:[#allocation2 + $0x8] sm:$0xff] %vm686_vm4, %v1191_v59  ;;  %6037 = vmatmul.mubr.msk.f32.gmra.mxu0 %vm895_vm6, %v1658_v41  ;;  %v1662_v17 = vmul.f32 %v6663_v4, %v8042_v56  ;;  %v6665_v36 = vpop.eup %6664 }
 0x65e   :  { %v5887_v31 = vpop.f32.mrf.mxu0  ;;  %6039 = vmatprep.mubr.msk.f32.mxu0 %vm6916_vm0, %v10132_v15  ;;  %v1664_v62 = vmul.f32 %v6665_v36, %v8047_v1  ;;  %v6667_v19 = vpop.eup %6666 }
 0x65f   :  { %v1666_v56 = vmul.f32 %v6667_v19, %v8058_v27 }
 0x660   :  { %v1196_v45 = vpop.f32.mrf.mxu0 }
 0x661   :  { %1252 = vst.msk [vmem:[#allocation2 + $0x10] sm:$0xff] %vm686_vm4, %v1196_v45  ;;  %6040 = vmatmul.mubr.msk.f32.gmra.mxu0 %vm895_vm6, %v1660_v37 }
 0x662   :  { %v5890_v2 = vpop.f32.mrf.mxu0  ;;  %6042 = vmatprep.mubr.msk.f32.mxu0 %vm6916_vm0, %v10132_v15 }
 0x664   :  { %v1201_v10 = vpop.f32.mrf.mxu0 }
 0x665   :  { %1253 = vst.msk [vmem:[#allocation2 + $0x18] sm:$0xff] %vm686_vm4, %v1201_v10  ;;  %6043 = vmatmul.mubr.msk.f32.gmra.mxu0 %vm895_vm6, %v1662_v17 }
 0x666   :  { %v5893_v39 = vpop.f32.mrf.mxu0  ;;  %6045 = vmatprep.mubr.msk.f32.mxu0 %vm6916_vm0, %v10132_v15 }
 0x668   :  { %v1206_v42 = vpop.f32.mrf.mxu0 }
 0x669   :  { %1254 = vst.msk [vmem:[#allocation2 + $0x20] sm:$0xff] %vm686_vm4, %v1206_v42  ;;  %6046 = vmatmul.mubr.msk.f32.gmra.mxu0 %vm895_vm6, %v1664_v62 }
 0x66a   :  { %v5896_v51 = vpop.f32.mrf.mxu0  ;;  %6048 = vmatprep.mubr.msk.f32.mxu0 %vm6916_vm0, %v10132_v15 }
 0x66c   :  { %v1211_v40 = vpop.f32.mrf.mxu0 }
 0x66d   :  { %1255 = vst.msk [vmem:[#allocation2 + $0x28] sm:$0xff] %vm686_vm4, %v1211_v40  ;;  %6049 = vmatmul.mubr.msk.f32.gmra.mxu0 %vm895_vm6, %v1666_v56 }
 0x66e   :  { %v5899_v52 = vpop.f32.mrf.mxu0  ;;  %6053 = vmatprep.mubr.msk.f32.mxu0 %vm6916_vm0, %v10132_v15 }
 0x670   :  { %v1216_v3 = vpop.f32.mrf.mxu0 }
 0x671   :  { %1256 = vst.msk [vmem:[#allocation2 + $0x30] sm:$0xff] %vm686_vm4, %v1216_v3 }
 0x672   :  { %v5902_v1 = vpop.f32.mrf.mxu0 }
 0x674   :  { %v1221_v57 = vpop.f32.mrf.mxu0 }
 0x675   :  { %1257 = vst.msk [vmem:[#allocation2 + $0x38] sm:$0xff] %vm686_vm4, %v1221_v57 }
 0x676   :  { %v5905_v21 = vpop.f32.mrf.mxu0 }
 0x678   :  { %v1226_v60 = vpop.f32.mrf.mxu0 }
 0x679   :  { %1258 = vst.msk [vmem:[#allocation2 + $0x40] sm:$0xff] %vm686_vm4, %v1226_v60 }
 0x67a   :  { %v5908_v0 = vpop.f32.mrf.mxu0 }
 0x6a3   :  { %v1231_v29 = vpop.f32.mrf.mxu0 }
 0x6a4   :  { %1259 = vst.msk [vmem:[#allocation2 + $0x48] sm:$0xff] %vm686_vm4, %v1231_v29 }
 0x6a5   :  { %v5911_v27 = vpop.f32.mrf.mxu0 }
 0x6a7   :  { %v1236_v5 = vpop.f32.mrf.mxu0 }
 0x6a8   :  { %1260 = vst.msk [vmem:[#allocation2 + $0x50] sm:$0xff] %vm686_vm4, %v1236_v5 }
 0x6a9   :  { %v5914_v13 = vpop.f32.mrf.mxu0 }
 0x6ab   :  { %v1241_v26 = vpop.f32.mrf.mxu0 }
 0x6ac   :  { %1261 = vst.msk [vmem:[#allocation2 + $0x58] sm:$0xff] %vm686_vm4, %v1241_v26 }
 0x6ad   :  { %v5917_v11 = vpop.f32.mrf.mxu0 }
 0x6af   :  { %v1246_v8 = vpop.f32.mrf.mxu0 }
 0x6b0   :  { %1263 = vst.msk [vmem:[#allocation2 + $0x60] sm:$0xf] %vm1262_vm8, %v1246_v8 }
 0x6b1   :  { %v5920_v34 = vpop.f32.mrf.mxu0 }
 0x6dd   :  { %v1812_v9 = vpop.f32.mrf.mxu0 }
 0x6de   :  { %1889 = vrot.lane.b32.xlu0 %v1812_v9, %s6922_s20 }
 0x6df   :  { %v6014_v47 = vpop.f32.mrf.mxu0 }
 0x6e1   :  { %v1817_v30 = vpop.f32.mrf.mxu0 }
 0x6e2   :  { %1891 = vrot.lane.b32.xlu1 %v1817_v30, %s6922_s20 }
 0x6e3   :  { %v6017_v7 = vpop.f32.mrf.mxu0 }
 0x6e5   :  { %v1822_v35 = vpop.f32.mrf.mxu0 }
 0x6e6   :  { %1893 = vrot.lane.b32.xlu1 %v1822_v35, %s6922_s20 }
 0x6e7   :  { %v6020_v32 = vpop.f32.mrf.mxu0 }
 0x6e9   :  { %v1827_v49 = vpop.f32.mrf.mxu0 }
 0x6ea   :  { %1895 = vrot.lane.b32.xlu0 %v1827_v49, %s6922_s20 }
 0x6eb   :  { %v6023_v12 = vpop.f32.mrf.mxu0 }
 0x6ed   :  { %v1832_v25 = vpop.f32.mrf.mxu0 }
 0x6ee   :  { %1897 = vrot.lane.b32.xlu1 %v1832_v25, %s6922_s20 }
 0x6ef   :  { %v6026_v14 = vpop.f32.mrf.mxu0 }
 0x6f1   :  { %v1837_v6 = vpop.f32.mrf.mxu0 }
 0x6f2   :  { %1899 = vrot.lane.b32.xlu0 %v1837_v6, %s6922_s20 }
 0x6f3   :  { %v6029_v44 = vpop.f32.mrf.mxu0 }
 0x6f5   :  { %v1842_v24 = vpop.f32.mrf.mxu0 }
 0x6f6   :  { %1901 = vrot.lane.b32.xlu1 %v1842_v24, %s6922_s20  ;;  %v10134_v24 = vld [vmem:[#allocation4_spill] sm:$0xff] }
 0x6f7   :  { %v6032_v22 = vpop.f32.mrf.mxu0 }
 0x6f9   :  { %v1847_v54 = vpop.f32.mrf.mxu0 }
 0x6fa   :  { %1903 = vrot.lane.b32.xlu0 %v1847_v54, %s6922_s20 }
 0x6fb   :  { %v6035_v16 = vpop.f32.mrf.mxu0 }
 0x6fc   :  { %v10135_v16 = vld [vmem:[#allocation5_spill] sm:$0xff] }
 0x71d   :  { %v1852_v55 = vpop.f32.mrf.mxu0 }
 0x71e   :  { %1905 = vrot.lane.b32.xlu1 %v1852_v55, %s6922_s20 }
 0x71f   :  { %v6038_v61 = vpop.f32.mrf.mxu0 }
 0x721   :  { %v1857_v50 = vpop.f32.mrf.mxu0 }
 0x722   :  { %1907 = vrot.lane.b32.xlu0 %v1857_v50, %s6922_s20 }
 0x723   :  { %v6041_v20 = vpop.f32.mrf.mxu0 }
 0x725   :  { %v1862_v59 = vpop.f32.mrf.mxu0 }
 0x726   :  { %1909 = vrot.lane.b32.xlu1 %v1862_v59, %s6922_s20 }
 0x727   :  { %v6044_v41 = vpop.f32.mrf.mxu0 }
 0x729   :  { %v1867_v46 = vpop.f32.mrf.mxu0 }
 0x72a   :  { %1911 = vrot.lane.b32.xlu0 %v1867_v46, %s6922_s20 }
 0x72b   :  { %v6047_v31 = vpop.f32.mrf.mxu0 }
 0x72d   :  { %v1872_v45 = vpop.f32.mrf.mxu0 }
 0x72e   :  { %1913 = vrot.lane.b32.xlu1 %v1872_v45, %s6922_s20 }
 0x72f   :  { %v6050_v37 = vpop.f32.mrf.mxu0 }
 0x750   :  { %v1890_v4 = vpop.permute.xlu0 %1889 }
 0x751   :  { %1929 = vst.msk [vmem:[#allocation2] sm:$0xff] %vm1928_vm9, %v1890_v4 }
 0x754   :  { %v1892_v2 = vpop.permute.xlu1 %1891 }
 0x755   :  { %1930 = vst.msk [vmem:[#allocation2 + $0x8] sm:$0xff] %vm1928_vm9, %v1892_v2 }
 0x758   :  { %v1894_v10 = vpop.permute.xlu1 %1893  ;;  %v1943_v17 = vld [vmem:[#allocation2] sm:$0xff] }
 0x759   :  { %1931 = vst.msk [vmem:[#allocation2 + $0x10] sm:$0xff] %vm1928_vm9, %v1894_v10  ;;  %v8221_v36 = vadd.f32 %v1943_v17, %v7093_v18 }
 0x75b   :  { %v1971_v39 = vsel %vm260_vm2, %v8221_v36, 0.0 }
 0x75c   :  { %v1896_v42 = vpop.permute.xlu0 %1895  ;;  %1972 = vadd.xlane.f32.xlu0 %v1971_v39  ;;  %v1944_v62 = vld [vmem:[#allocation2 + $0x8] sm:$0xff] }
 0x75d   :  { %1932 = vst.msk [vmem:[#allocation2 + $0x18] sm:$0xff] %vm1928_vm9, %v1896_v42  ;;  %v8227_v19 = vadd.f32 %v1944_v62, %v7100_v23 }
 0x75f   :  { %v1974_v51 = vsel %vm260_vm2, %v8227_v19, 0.0 }
 0x760   :  { %v1898_v40 = vpop.permute.xlu1 %1897  ;;  %1975 = vadd.xlane.f32.xlu1 %v1974_v51  ;;  %v1945_v56 = vld [vmem:[#allocation2 + $0x10] sm:$0xff] }
 0x761   :  { %1933 = vst.msk [vmem:[#allocation2 + $0x20] sm:$0xff] %vm1928_vm9, %v1898_v40  ;;  %v8233_v18 = vadd.f32 %v1945_v56, %v7107_v28 }
 0x763   :  { %v1977_v52 = vsel %vm260_vm2, %v8233_v18, 0.0 }
 0x764   :  { %v1900_v3 = vpop.permute.xlu0 %1899  ;;  %1978 = vadd.xlane.f32.xlu0 %v1977_v52  ;;  %v1946_v1 = vld [vmem:[#allocation2 + $0x18] sm:$0xff] }
 0x765   :  { %1934 = vst.msk [vmem:[#allocation2 + $0x28] sm:$0xff] %vm1928_vm9, %v1900_v3  ;;  %v8239_v23 = vadd.f32 %v1946_v1, %v7114_v33 }
 0x767   :  { %v1980_v57 = vsel %vm260_vm2, %v8239_v23, 0.0 }
 0x768   :  { %v1902_v21 = vpop.permute.xlu1 %1901  ;;  %1981 = vadd.xlane.f32.xlu0 %v1980_v57  ;;  %v1947_v60 = vld [vmem:[#allocation2 + $0x20] sm:$0xff] }
 0x769   :  { %1935 = vst.msk [vmem:[#allocation2 + $0x30] sm:$0xff] %vm1928_vm9, %v1902_v21  ;;  %v8245_v28 = vadd.f32 %v1947_v60, %v7121_v38 }
 0x76b   :  { %v1983_v0 = vsel %vm260_vm2, %v8245_v28, 0.0 }
 0x76c   :  { %v1904_v29 = vpop.permute.xlu0 %1903  ;;  %1984 = vadd.xlane.f32.xlu0 %v1983_v0  ;;  %v1948_v27 = vld [vmem:[#allocation2 + $0x28] sm:$0xff] }
 0x76d   :  { %1936 = vst.msk [vmem:[#allocation2 + $0x38] sm:$0xff] %vm1928_vm9, %v1904_v29  ;;  %v8251_v33 = vadd.f32 %v1948_v27, %v7128_v43 }
 0x76f   :  { %v1986_v5 = vsel %vm260_vm2, %v8251_v33, 0.0 }
 0x770   :  { %1987 = vadd.xlane.f32.xlu1 %v1986_v5  ;;  %v1949_v13 = vld [vmem:[#allocation2 + $0x30] sm:$0xff] }
 0x771   :  { %v8256_v26 = vadd.f32 %v1949_v13, %v7135_v48 }
 0x773   :  { %v1989_v38 = vsel %vm260_vm2, %v8256_v26, 0.0 }
 0x774   :  { %1990 = vadd.xlane.f32.xlu0 %v1989_v38  ;;  %v1950_v11 = vld [vmem:[#allocation2 + $0x38] sm:$0xff] }
 0x775   :  { %v8261_v8 = vadd.f32 %v1950_v11, %v7142_v53 }
 0x777   :  { %v1992_v43 = vsel %vm260_vm2, %v8261_v8, 0.0 }
 0x778   :  { %1993 = vadd.xlane.f32.xlu1 %v1992_v43 }
 0x790   :  { %v1906_v34 = vpop.permute.xlu1 %1905 }
 0x791   :  { %1937 = vst.msk [vmem:[#allocation2 + $0x40] sm:$0xff] %vm1928_vm9, %v1906_v34 }
 0x794   :  { %v1908_v9 = vpop.permute.xlu0 %1907 }
 0x795   :  { %1938 = vst.msk [vmem:[#allocation2 + $0x48] sm:$0xff] %vm1928_vm9, %v1908_v9 }
 0x798   :  { %v1910_v48 = vpop.permute.xlu1 %1909  ;;  %v1951_v47 = vld [vmem:[#allocation2 + $0x40] sm:$0xff] }
 0x799   :  { %1939 = vst.msk [vmem:[#allocation2 + $0x50] sm:$0xff] %vm1928_vm9, %v1910_v48  ;;  %v8269_v30 = vadd.f32 %v1951_v47, %v7149_v58  ;;  %v10133_v58 = vld [vmem:[#allocation3_spill] sm:$0xff] }
 0x79b   :  { %v1995_v53 = vsel %vm260_vm2, %v8269_v30, 0.0 }
 0x79c   :  { %1996 = vadd.xlane.f32.xlu0 %v1995_v53  ;;  %v1912_v7 = vpop.permute.xlu0 %1911  ;;  %v1952_v35 = vld [vmem:[#allocation2 + $0x48] sm:$0xff] }
 0x79d   :  { %1940 = vst.msk [vmem:[#allocation2 + $0x58] sm:$0xff] %vm1928_vm9, %v1912_v7  ;;  %v8275_v32 = vadd.f32 %v1952_v35, %v7156_v63 }
 0x79f   :  { %v1998_v49 = vsel %vm260_vm2, %v8275_v32, 0.0 }
 0x7a0   :  { %1999 = vadd.xlane.f32.xlu1 %v1998_v49  ;;  %v1914_v12 = vpop.permute.xlu1 %1913  ;;  %v1953_v25 = vld [vmem:[#allocation2 + $0x50] sm:$0xff] }
 0x7a1   :  { %1942 = vst.msk [vmem:[#allocation2 + $0x60] sm:$0xf] %vm1941_vm10, %v1914_v12  ;;  %v8281_v14 = vadd.f32 %v1953_v25, %v10133_v58  ;;  %v2178_v12 = vld [vmem:[%s10113_s10] sm:$0xff] }
 0x7a2   :  { %6052 = vmatpush3.msra.mxu0 %v2178_v12  ;;  %6529 = vmatpush3.msra.mxu1 %v2178_v12 }
 0x7a3   :  { %v2001_v6 = vsel %vm260_vm2, %v8281_v14, 0.0  ;;  %6092 = vmatprep.subr.mxu0 %v10132_v15  ;;  %6139 = vmatprep.subr.mxu1 %v10132_v15 }
 0x7a4   :  { %2002 = vadd.xlane.f32.xlu0 %v2001_v6  ;;  %v1954_v44 = vld [vmem:[#allocation2 + $0x58] sm:$0xff] }
 0x7a5   :  { %v8286_v63 = vadd.f32 %v1954_v44, %v10134_v24 }
 0x7a7   :  { %v2004_v22 = vsel %vm260_vm2, %v8286_v63, 0.0 }
 0x7a8   :  { %2005 = vadd.xlane.f32.xlu1 %v2004_v22  ;;  %v1955_v54 = vld [vmem:[#allocation2 + $0x60] sm:$0xf] }
 0x7a9   :  { %v8291_v55 = vadd.f32 %v1955_v54, %v10135_v16 }
 0x7ab   :  { %v2007_v61 = vsel %vm297_vm3, %v8291_v55, 0.0 }
 0x7ac   :  { %2008 = vadd.xlane.f32.xlu0 %v2007_v61 }
 0x7e5   :  { %v1973_v50 = vpop.xlane.xlu0 %1972 }
 0x7e6   :  { %v2010_v20 = vmul.f32 0.125, %v1973_v50 }
 0x7e8   :  { %v8296_v59 = vsub.f32 %v8221_v36, %v2010_v20 }
 0x7e9   :  { %v1976_v41 = vpop.xlane.xlu1 %1975 }
 0x7ea   :  { %v2011_v46 = vmul.f32 0.125, %v1976_v41  ;;  %v2036_v31 = vmul.f32 %v8296_v59, %v8296_v59 }
 0x7ec   :  { %v8301_v45 = vsub.f32 %v8227_v19, %v2011_v46  ;;  %v2049_v37 = vsel %vm260_vm2, %v2036_v31, 0.0 }
 0x7ed   :  { %v1979_v4 = vpop.xlane.xlu0 %1978  ;;  %2050 = vadd.xlane.f32.xlu1 %v2049_v37 }
 0x7ee   :  { %v2012_v2 = vmul.f32 0.125, %v1979_v4  ;;  %v2037_v10 = vmul.f32 %v8301_v45, %v8301_v45 }
 0x7f0   :  { %v8307_v17 = vsub.f32 %v8233_v18, %v2012_v2  ;;  %v2052_v39 = vsel %vm260_vm2, %v2037_v10, 0.0 }
 0x7f1   :  { %v1982_v42 = vpop.xlane.xlu0 %1981  ;;  %2053 = vadd.xlane.f32.xlu0 %v2052_v39 }
 0x7f2   :  { %v2013_v62 = vmul.f32 0.125, %v1982_v42  ;;  %v2038_v51 = vmul.f32 %v8307_v17, %v8307_v17 }
 0x7f4   :  { %v8313_v40 = vsub.f32 %v8239_v23, %v2013_v62  ;;  %v2055_v56 = vsel %vm260_vm2, %v2038_v51, 0.0 }
 0x7f5   :  { %v1985_v52 = vpop.xlane.xlu0 %1984  ;;  %2056 = vadd.xlane.f32.xlu1 %v2055_v56 }
 0x7f6   :  { %v2014_v3 = vmul.f32 0.125, %v1985_v52  ;;  %v2039_v1 = vmul.f32 %v8313_v40, %v8313_v40 }
 0x7f8   :  { %v8319_v57 = vsub.f32 %v8245_v28, %v2014_v3  ;;  %v2058_v21 = vsel %vm260_vm2, %v2039_v1, 0.0 }
 0x7f9   :  { %2059 = vadd.xlane.f32.xlu0 %v2058_v21  ;;  %v1988_v60 = vpop.xlane.xlu1 %1987 }
 0x7fa   :  { %v2015_v0 = vmul.f32 0.125, %v1988_v60  ;;  %v2040_v29 = vmul.f32 %v8319_v57, %v8319_v57 }
 0x7fc   :  { %v8325_v27 = vsub.f32 %v8251_v33, %v2015_v0  ;;  %v2061_v5 = vsel %vm260_vm2, %v2040_v29, 0.0 }
 0x7fd   :  { %v1991_v13 = vpop.xlane.xlu0 %1990  ;;  %2062 = vadd.xlane.f32.xlu1 %v2061_v5 }
 0x7fe   :  { %v2016_v38 = vmul.f32 0.125, %v1991_v13  ;;  %v2041_v11 = vmul.f32 %v8325_v27, %v8325_v27 }
 0x800   :  { %v8331_v43 = vsub.f32 %v8256_v26, %v2016_v38  ;;  %v2064_v34 = vsel %vm260_vm2, %v2041_v11, 0.0 }
 0x801   :  { %2065 = vadd.xlane.f32.xlu0 %v2064_v34  ;;  %v1994_v9 = vpop.xlane.xlu1 %1993 }
 0x802   :  { %v2017_v48 = vmul.f32 0.125, %v1994_v9  ;;  %v2042_v47 = vmul.f32 %v8331_v43, %v8331_v43 }
 0x804   :  { %v8337_v53 = vsub.f32 %v8261_v8, %v2017_v48  ;;  %v2067_v7 = vsel %vm260_vm2, %v2042_v47, 0.0 }
 0x805   :  { %2068 = vadd.xlane.f32.xlu1 %v2067_v7 }
 0x806   :  { %v2043_v35 = vmul.f32 %v8337_v53, %v8337_v53 }
 0x808   :  { %v2070_v49 = vsel %vm260_vm2, %v2043_v35, 0.0 }
 0x809   :  { %2071 = vadd.xlane.f32.xlu0 %v2070_v49  ;;  %v8381_v49 = vld [vmem:[%s10114_s8] ss:$0 sm:$0xff] }
 0x825   :  { %v1997_v25 = vpop.xlane.xlu0 %1996 }
 0x826   :  { %v2018_v58 = vmul.f32 0.125, %v1997_v25 }
 0x828   :  { %v8349_v6 = vsub.f32 %v8269_v30, %v2018_v58 }
 0x829   :  { %v2000_v44 = vpop.xlane.xlu1 %1999 }
 0x82a   :  { %v2019_v24 = vmul.f32 0.125, %v2000_v44  ;;  %v2044_v22 = vmul.f32 %v8349_v6, %v8349_v6  ;;  %v8387_v44 = vld [vmem:[%s10115_s9] ss:$0 sm:$0xff] }
 0x82c   :  { %v8354_v54 = vsub.f32 %v8275_v32, %v2019_v24  ;;  %v2073_v16 = vsel %vm260_vm2, %v2044_v22, 0.0 }
 0x82d   :  { %v2003_v61 = vpop.xlane.xlu0 %2002  ;;  %2074 = vadd.xlane.f32.xlu1 %v2073_v16 }
 0x82e   :  { %v2020_v50 = vmul.f32 0.125, %v2003_v61  ;;  %v2045_v20 = vmul.f32 %v8354_v54, %v8354_v54 }
 0x830   :  { %v8360_v41 = vsub.f32 %v8281_v14, %v2020_v50  ;;  %v2076_v46 = vsel %vm260_vm2, %v2045_v20, 0.0 }
 0x831   :  { %2077 = vadd.xlane.f32.xlu0 %v2076_v46  ;;  %v2006_v31 = vpop.xlane.xlu1 %2005 }
 0x832   :  { %v2021_v37 = vmul.f32 0.125, %v2006_v31  ;;  %v2046_v4 = vmul.f32 %v8360_v41, %v8360_v41 }
 0x834   :  { %v8366_v2 = vsub.f32 %v8286_v63, %v2021_v37  ;;  %v2079_v10 = vsel %vm260_vm2, %v2046_v4, 0.0 }
 0x835   :  { %2080 = vadd.xlane.f32.xlu1 %v2079_v10  ;;  %v2009_v39 = vpop.xlane.xlu0 %2008 }
 0x836   :  { %v2022_v42 = vmul.f32 0.125, %v2009_v39  ;;  %v2047_v62 = vmul.f32 %v8366_v2, %v8366_v2 }
 0x838   :  { %v8372_v51 = vsub.f32 %v8291_v55, %v2022_v42  ;;  %v2082_v56 = vsel %vm260_vm2, %v2047_v62, 0.0 }
 0x839   :  { %2083 = vadd.xlane.f32.xlu0 %v2082_v56 }
 0x83a   :  { %v2048_v52 = vmul.f32 %v8372_v51, %v8372_v51 }
 0x83c   :  { %v2085_v3 = vsel %vm297_vm3, %v2048_v52, 0.0 }
 0x83d   :  { %2086 = vadd.xlane.f32.xlu1 %v2085_v3 }
 0x876   :  { %v2051_v1 = vpop.xlane.xlu1 %2050 }
 0x877   :  { %v2088_v21 = vmul.f32 0.125, %v2051_v1 }
 0x879   :  { %v2101_v60 = vadd.f32 1e-05, %v2088_v21 }
 0x87a   :  { %v2054_v0 = vpop.xlane.xlu0 %2053 }
 0x87b   :  { %6668 = vrsqrt.f32 %v2101_v60  ;;  %v2089_v29 = vmul.f32 0.125, %v2054_v0 }
 0x87d   :  { %v2102_v5 = vadd.f32 1e-05, %v2089_v29 }
 0x87e   :  { %v2057_v13 = vpop.xlane.xlu1 %2056 }
 0x87f   :  { %6670 = vrsqrt.f32 %v2102_v5  ;;  %v2090_v38 = vmul.f32 0.125, %v2057_v13 }
 0x881   :  { %v2103_v11 = vadd.f32 1e-05, %v2090_v38 }
 0x882   :  { %v2060_v34 = vpop.xlane.xlu0 %2059 }
 0x883   :  { %6672 = vrsqrt.f32 %v2103_v11  ;;  %v2091_v9 = vmul.f32 0.125, %v2060_v34 }
 0x885   :  { %v2104_v48 = vadd.f32 1e-05, %v2091_v9 }
 0x886   :  { %v2063_v47 = vpop.xlane.xlu1 %2062 }
 0x887   :  { %6674 = vrsqrt.f32 %v2104_v48  ;;  %v2092_v7 = vmul.f32 0.125, %v2063_v47 }
 0x888   :  { %v6669_v35 = vpop.eup %6668 }
 0x889   :  { %v2127_v12 = vmul.f32 %v6669_v35, %v8296_v59  ;;  %v2105_v25 = vadd.f32 1e-05, %v2092_v7 }
 0x88a   :  { %v2066_v58 = vpop.xlane.xlu0 %2065 }
 0x88b   :  { %v2146_v24 = vmul.f32 %v8381_v49, %v2127_v12  ;;  %6676 = vrsqrt.f32 %v2105_v25  ;;  %v2093_v22 = vmul.f32 0.125, %v2066_v58 }
 0x88c   :  { %v6671_v16 = vpop.eup %6670 }
 0x88d   :  { %v2106_v61 = vadd.f32 1e-05, %v2093_v22  ;;  %v2165_v50 = vadd.f32 %v8387_v44, %v2146_v24  ;;  %v2128_v20 = vmul.f32 %v6671_v16, %v8301_v45 }
 0x88e   :  { %v2069_v46 = vpop.xlane.xlu1 %2068 }
 0x88f   :  { %6678 = vrsqrt.f32 %v2106_v61  ;;  %v2094_v59 = vmul.f32 0.125, %v2069_v46  ;;  %6054 = vmatmul.mubr.msk.f32.vlgmr.msra.gmra.mxu0 %vm260_vm2, %v2165_v50  ;;  %v2147_v31 = vmul.f32 %v8381_v49, %v2128_v20 }
 0x890   :  { %v6673_v37 = vpop.eup %6672  ;;  %6056 = vmatprep.mubr.msk.f32.mxu0 %vm6916_vm0, %v10132_v15 }
 0x891   :  { %v2107_v4 = vadd.f32 1e-05, %v2094_v59  ;;  %v2166_v10 = vadd.f32 %v8387_v44, %v2147_v31  ;;  %v2129_v39 = vmul.f32 %v6673_v37, %v8307_v17 }
 0x892   :  { %v2072_v42 = vpop.xlane.xlu0 %2071 }
 0x893   :  { %6680 = vrsqrt.f32 %v2107_v4  ;;  %v2095_v62 = vmul.f32 0.125, %v2072_v42  ;;  %6057 = vmatmul.mubr.msk.f32.gmra.mxu0 %vm260_vm2, %v2166_v10  ;;  %v2148_v45 = vmul.f32 %v8381_v49, %v2129_v39 }
 0x894   :  { %v6675_v56 = vpop.eup %6674  ;;  %6059 = vmatprep.mubr.msk.f32.mxu0 %vm6916_vm0, %v10132_v15 }
 0x895   :  { %v2108_v52 = vadd.f32 1e-05, %v2095_v62  ;;  %v2167_v3 = vadd.f32 %v8387_v44, %v2148_v45  ;;  %v2130_v1 = vmul.f32 %v6675_v56, %v8313_v40 }
 0x897   :  { %6682 = vrsqrt.f32 %v2108_v52  ;;  %6060 = vmatmul.mubr.msk.f32.gmra.mxu0 %vm260_vm2, %v2167_v3  ;;  %v2149_v17 = vmul.f32 %v8381_v49, %v2130_v1 }
 0x898   :  { %v6677_v21 = vpop.eup %6676  ;;  %6062 = vmatprep.mubr.msk.f32.mxu0 %vm6916_vm0, %v10132_v15 }
 0x899   :  { %v2168_v60 = vadd.f32 %v8387_v44, %v2149_v17  ;;  %v2131_v0 = vmul.f32 %v6677_v21, %v8319_v57 }
 0x89b   :  { %6063 = vmatmul.mubr.msk.f32.gmra.mxu0 %vm260_vm2, %v2168_v60  ;;  %v2150_v29 = vmul.f32 %v8381_v49, %v2131_v0 }
 0x89c   :  { %v6679_v5 = vpop.eup %6678  ;;  %6065 = vmatprep.mubr.msk.f32.mxu0 %vm6916_vm0, %v10132_v15 }
 0x89d   :  { %v2169_v40 = vadd.f32 %v8387_v44, %v2150_v29  ;;  %v2132_v13 = vmul.f32 %v6679_v5, %v8325_v27  ;;  %v5259_v27 = vld [vmem:[%s10108_s6 + $0x8] sm:$0xff] }
 0x89f   :  { %6066 = vmatmul.mubr.msk.f32.gmra.mxu0 %vm260_vm2, %v2169_v40  ;;  %v2151_v38 = vmul.f32 %v8381_v49, %v2132_v13  ;;  %v2475_v13 = vld [vmem:[%s10116_s12 + $0x18] sm:$0xff] }
 0x8a0   :  { %v6681_v11 = vpop.eup %6680  ;;  %6068 = vmatprep.mubr.msk.f32.mxu0 %vm6916_vm0, %v10132_v15  ;;  %6093 = vmatpush3.msra.mxu0 %v2475_v13 }
 0x8a1   :  { %v2133_v57 = vmul.f32 %v6681_v11, %v8331_v43  ;;  %v2170_v34 = vadd.f32 %v8387_v44, %v2151_v38  ;;  %6094 = vmatprep.subr.mxu0 %v10132_v15  ;;  %v8489_v38 = vld [vmem:[%s10117_s11] ss:$0 sm:$0xff] }
 0x8a3   :  { %v2152_v9 = vmul.f32 %v8381_v49, %v2133_v57  ;;  %6069 = vmatmul.mubr.msk.f32.gmra.mxu0 %vm260_vm2, %v2170_v34 }
 0x8a4   :  { %v6683_v48 = vpop.eup %6682  ;;  %6100 = vmatprep.mubr.msk.f32.mxu0 %vm6916_vm0, %v10132_v15 }
 0x8a5   :  { %v2171_v47 = vadd.f32 %v8387_v44, %v2152_v9  ;;  %v2134_v7 = vmul.f32 %v6683_v48, %v8337_v53 }
 0x8a7   :  { %6072 = vmatmul.mubr.msk.f32.vlgmr.msra.gmra.mxu1 %vm260_vm2, %v2171_v47  ;;  %v2153_v43 = vmul.f32 %v8381_v49, %v2134_v7 }
 0x8a8   :  { %6074 = vmatprep.mubr.msk.f32.mxu1 %vm6916_vm0, %v10132_v15  ;;  %6140 = vmatpush3.msra.mxu1 %v5259_v27 }
 0x8a9   :  { %v2172_v35 = vadd.f32 %v8387_v44, %v2153_v43  ;;  %6245 = vmatprep.subr.mxu1 %v10132_v15 }
 0x8ab   :  { %6075 = vmatmul.mubr.msk.f32.gmra.mxu1 %vm260_vm2, %v2172_v35 }
 0x8ac   :  { %6077 = vmatprep.mubr.msk.f32.mxu1 %vm6916_vm0, %v10132_v15 }
 0x8b6   :  { %v2075_v12 = vpop.xlane.xlu1 %2074 }
 0x8b7   :  { %v2096_v25 = vmul.f32 0.125, %v2075_v12 }
 0x8b9   :  { %v2109_v53 = vadd.f32 1e-05, %v2096_v25 }
 0x8ba   :  { %v2078_v58 = vpop.xlane.xlu0 %2077 }
 0x8bb   :  { %6684 = vrsqrt.f32 %v2109_v53  ;;  %v2097_v24 = vmul.f32 0.125, %v2078_v58 }
 0x8bd   :  { %v2110_v22 = vadd.f32 1e-05, %v2097_v24 }
 0x8be   :  { %v2081_v16 = vpop.xlane.xlu1 %2080 }
 0x8bf   :  { %6686 = vrsqrt.f32 %v2110_v22  ;;  %v2098_v61 = vmul.f32 0.125, %v2081_v16 }
 0x8c1   :  { %v2111_v50 = vadd.f32 1e-05, %v2098_v61 }
 0x8c2   :  { %v2084_v20 = vpop.xlane.xlu0 %2083 }
 0x8c3   :  { %6688 = vrsqrt.f32 %v2111_v50  ;;  %v2099_v46 = vmul.f32 0.125, %v2084_v20 }
 0x8c5   :  { %v2112_v59 = vadd.f32 1e-05, %v2099_v46 }
 0x8c6   :  { %v2087_v31 = vpop.xlane.xlu1 %2086 }
 0x8c7   :  { %6690 = vrsqrt.f32 %v2112_v59  ;;  %v2100_v37 = vmul.f32 0.125, %v2087_v31 }
 0x8c8   :  { %v6685_v4 = vpop.eup %6684 }
 0x8c9   :  { %v2113_v10 = vadd.f32 1e-05, %v2100_v37  ;;  %v2135_v39 = vmul.f32 %v6685_v4, %v8349_v6 }
 0x8cb   :  { %6692 = vrsqrt.f32 %v2113_v10  ;;  %v2154_v42 = vmul.f32 %v8381_v49, %v2135_v39 }
 0x8cc   :  { %v6687_v62 = vpop.eup %6686 }
 0x8cd   :  { %v2173_v45 = vadd.f32 %v8387_v44, %v2154_v42  ;;  %v2136_v56 = vmul.f32 %v6687_v62, %v8354_v54 }
 0x8cf   :  { %6078 = vmatmul.mubr.msk.f32.gmra.mxu1 %vm260_vm2, %v2173_v45  ;;  %v2155_v52 = vmul.f32 %v8381_v49, %v2136_v56 }
 0x8d0   :  { %v6689_v3 = vpop.eup %6688  ;;  %6080 = vmatprep.mubr.msk.f32.mxu1 %vm6916_vm0, %v10132_v15 }
 0x8d1   :  { %v2174_v1 = vadd.f32 %v8387_v44, %v2155_v52  ;;  %v2137_v6 = vmul.f32 %v6689_v3, %v8360_v41 }
 0x8d3   :  { %6081 = vmatmul.mubr.msk.f32.gmra.mxu1 %vm260_vm2, %v2174_v1  ;;  %v2156_v17 = vmul.f32 %v8381_v49, %v2137_v6 }
 0x8d4   :  { %v6691_v21 = vpop.eup %6690  ;;  %6083 = vmatprep.mubr.msk.f32.mxu1 %vm6916_vm0, %v10132_v15 }
 0x8d5   :  { %v2175_v54 = vadd.f32 %v8387_v44, %v2156_v17  ;;  %v2138_v60 = vmul.f32 %v6691_v21, %v8366_v2 }
 0x8d7   :  { %6084 = vmatmul.mubr.msk.f32.gmra.mxu1 %vm260_vm2, %v2175_v54  ;;  %v2157_v0 = vmul.f32 %v8381_v49, %v2138_v60 }
 0x8d8   :  { %v6693_v29 = vpop.eup %6692  ;;  %6086 = vmatprep.mubr.msk.f32.mxu1 %vm6916_vm0, %v10132_v15 }
 0x8d9   :  { %v2176_v41 = vadd.f32 %v8387_v44, %v2157_v0  ;;  %v2139_v5 = vmul.f32 %v6693_v29, %v8372_v51  ;;  %v2474_v51 = vld [vmem:[%s10116_s12 + $0x10] sm:$0xff] }
 0x8da   :  { %6095 = vmatpush3.msra.mxu0 %v2474_v51 }
 0x8db   :  { %6087 = vmatmul.mubr.msk.f32.gmra.mxu1 %vm260_vm2, %v2176_v41  ;;  %v2158_v40 = vmul.f32 %v8381_v49, %v2139_v5  ;;  %6096 = vmatprep.subr.mxu0 %v10132_v15  ;;  %v2473_v49 = vld [vmem:[%s10116_s12 + $0x8] sm:$0xff] }
 0x8dc   :  { %6089 = vmatprep.mubr.msk.f32.mxu1 %vm6916_vm0, %v10132_v15  ;;  %6097 = vmatpush3.msra.mxu0 %v2473_v49 }
 0x8dd   :  { %v2177_v2 = vadd.f32 %v8387_v44, %v2158_v40  ;;  %6098 = vmatprep.subr.mxu0 %v10132_v15  ;;  %v2472_v44 = vld [vmem:[%s10116_s12] sm:$0xff] }
 0x8de   :  { %6099 = vmatpush3.msra.mxu0 %v2472_v44 }
 0x8df   :  { %6090 = vmatmul.mubr.msk.f32.gmra.mxu1 %vm260_vm2, %v2177_v2  ;;  %6180 = vmatprep.subr.mxu0 %v10132_v15 }
 0x8e0   :  { %6141 = vmatprep.mubr.msk.f32.mxu1 %vm6916_vm0, %v10132_v15 }
 0x94f   :  { %v2291_v11 = vpop.f32.mrf.mxu0 }
 0x950   :  { %v2292_v57 = vadd.f32 %v8489_v38, %v2291_v11 }
 0x951   :  { %v6055_v34 = vpop.f32.mrf.mxu0 }
 0x952   :  { %v2368_v9 = vmul.f32 0.044715, %v2292_v57  ;;  %v2355_v49 = vmul.f32 0.5, %v2292_v57 }
 0x953   :  { %v2296_v48 = vpop.f32.mrf.mxu0 }
 0x954   :  { %v2381_v27 = vmul.f32 %v2368_v9, %v2292_v57  ;;  %v2297_v47 = vadd.f32 %v8489_v38, %v2296_v48 }
 0x955   :  { %v6058_v7 = vpop.f32.mrf.mxu0 }
 0x956   :  { %v2394_v43 = vmul.f32 %v2381_v27, %v2292_v57  ;;  %v2369_v35 = vmul.f32 0.044715, %v2297_v47 }
 0x957   :  { %v2301_v12 = vpop.f32.mrf.mxu0 }
 0x958   :  { %v2407_v25 = vadd.f32 %v2394_v43, %v2292_v57  ;;  %v2382_v53 = vmul.f32 %v2369_v35, %v2297_v47  ;;  %v8494_v58 = vadd.f32 %v8489_v38, %v2301_v12 }
 0x959   :  { %v6061_v24 = vpop.f32.mrf.mxu0 }
 0x95a   :  { %v2420_v22 = vmul.f32 0.7978846, %v2407_v25  ;;  %v2395_v16 = vmul.f32 %v2382_v53, %v2297_v47  ;;  %v2370_v61 = vmul.f32 0.044715, %v8494_v58  ;;  %v2356_v24 = vmul.f32 0.5, %v2297_v47 }
 0x95b   :  { %v2306_v50 = vpop.f32.mrf.mxu0 }
 0x95c   :  { %6694 = vtanh.f32 %v2420_v22  ;;  %v2408_v20 = vadd.f32 %v2395_v16, %v2297_v47  ;;  %v2383_v46 = vmul.f32 %v2370_v61, %v8494_v58  ;;  %v8499_v59 = vadd.f32 %v8489_v38, %v2306_v50 }
 0x95d   :  { %v6064_v31 = vpop.f32.mrf.mxu0  ;;  %v2357_v47 = vmul.f32 0.5, %v8494_v58 }
 0x95e   :  { %v2396_v37 = vmul.f32 %v2383_v46, %v8494_v58  ;;  %v2371_v4 = vmul.f32 0.044715, %v8499_v59  ;;  %v2421_v10 = vmul.f32 0.7978846, %v2408_v20 }
 0x95f   :  { %v2311_v39 = vpop.f32.mrf.mxu0 }
 0x960   :  { %v2409_v42 = vadd.f32 %v2396_v37, %v8494_v58  ;;  %v2384_v62 = vmul.f32 %v2371_v4, %v8499_v59  ;;  %v8506_v45 = vadd.f32 %v8489_v38, %v2311_v39  ;;  %6696 = vtanh.f32 %v2421_v10 }
 0x961   :  { %v6067_v56 = vpop.f32.mrf.mxu0 }
 0x962   :  { %v2397_v52 = vmul.f32 %v2384_v62, %v8499_v59  ;;  %v2372_v3 = vmul.f32 0.044715, %v8506_v45  ;;  %v2422_v1 = vmul.f32 0.7978846, %v2409_v42  ;;  %v2358_v56 = vmul.f32 0.5, %v8499_v59 }
 0x963   :  { %v2316_v6 = vpop.f32.mrf.mxu0 }
 0x964   :  { %v2410_v17 = vadd.f32 %v2397_v52, %v8499_v59  ;;  %v2385_v21 = vmul.f32 %v2372_v3, %v8506_v45  ;;  %v8513_v54 = vadd.f32 %v8489_v38, %v2316_v6  ;;  %6698 = vtanh.f32 %v2422_v1 }
 0x965   :  { %v6070_v60 = vpop.f32.mrf.mxu0  ;;  %v2359_v6 = vmul.f32 0.5, %v8506_v45 }
 0x966   :  { %v2398_v0 = vmul.f32 %v2385_v21, %v8506_v45  ;;  %v2373_v29 = vmul.f32 0.044715, %v8513_v54  ;;  %v2423_v41 = vmul.f32 0.7978846, %v2410_v17  ;;  %v2360_v59 = vmul.f32 0.5, %v8513_v54 }
 0x967   :  { %v2321_v5 = vpop.f32.mrf.mxu1 }
 0x968   :  { %v2411_v40 = vadd.f32 %v2398_v0, %v8506_v45  ;;  %v2386_v2 = vmul.f32 %v2373_v29, %v8513_v54  ;;  %v2322_v13 = vadd.f32 %v8489_v38, %v2321_v5  ;;  %6700 = vtanh.f32 %v2423_v41 }
 0x969   :  { %v6695_v51 = vpop.eup %6694  ;;  %v6073_v44 = vpop.f32.mrf.mxu1 }
 0x96a   :  { %v2446_v11 = vadd.f32 1.0, %v6695_v51  ;;  %v2399_v34 = vmul.f32 %v2386_v2, %v8513_v54  ;;  %v2374_v9 = vmul.f32 0.044715, %v2322_v13  ;;  %v2424_v48 = vmul.f32 0.7978846, %v2411_v40 }
 0x96b   :  { %v2326_v27 = vpop.f32.mrf.mxu1  ;;  %v2361_v5 = vmul.f32 0.5, %v2322_v13 }
 0x96c   :  { %v2459_v7 = vmul.f32 %v2446_v11, %v2355_v49  ;;  %v2412_v43 = vadd.f32 %v2399_v34, %v8513_v54  ;;  %v2387_v35 = vmul.f32 %v2374_v9, %v2322_v13  ;;  %v2327_v12 = vadd.f32 %v8489_v38, %v2326_v27 }
 0x96d   :  { %v6697_v25 = vpop.eup %6696  ;;  %v6076_v53 = vpop.f32.mrf.mxu1  ;;  %6702 = vtanh.f32 %v2424_v48 }
 0x96e   :  { %v2400_v22 = vmul.f32 %v2387_v35, %v2322_v13  ;;  %v2375_v57 = vmul.f32 0.044715, %v2327_v12  ;;  %6101 = vmatmul.mubr.msk.f32.vlgmr.msra.gmra.mxu0 %vm2476_vm11, %v2459_v7  ;;  %v2447_v16 = vadd.f32 1.0, %v6697_v25  ;;  %v2425_v61 = vmul.f32 0.7978846, %v2412_v43 }
 0x96f   :  { %6103 = vmatprep.mubr.msk.f32.mxu0 %vm6916_vm0, %v10132_v15  ;;  %v2362_v51 = vmul.f32 0.5, %v2327_v12 }
 0x970   :  { %v2413_v50 = vadd.f32 %v2400_v22, %v2322_v13  ;;  %v2388_v20 = vmul.f32 %v2375_v57, %v2327_v12  ;;  %v2460_v46 = vmul.f32 %v2447_v16, %v2356_v24  ;;  %6704 = vtanh.f32 %v2425_v61 }
 0x971   :  { %v6699_v31 = vpop.eup %6698 }
 0x972   :  { %v2401_v37 = vmul.f32 %v2388_v20, %v2327_v12  ;;  %6104 = vmatmul.mubr.msk.f32.gmra.mxu0 %vm2476_vm11, %v2460_v46  ;;  %v2448_v4 = vadd.f32 1.0, %v6699_v31  ;;  %v2426_v10 = vmul.f32 0.7978846, %v2413_v50 }
 0x973   :  { %6106 = vmatprep.mubr.msk.f32.mxu0 %vm6916_vm0, %v10132_v15 }
 0x974   :  { %v2414_v39 = vadd.f32 %v2401_v37, %v2327_v12  ;;  %v2461_v42 = vmul.f32 %v2448_v4, %v2357_v47  ;;  %6706 = vtanh.f32 %v2426_v10 }
 0x975   :  { %v6701_v62 = vpop.eup %6700 }
 0x976   :  { %6107 = vmatmul.mubr.msk.f32.gmra.mxu0 %vm2476_vm11, %v2461_v42  ;;  %v2449_v52 = vadd.f32 1.0, %v6701_v62  ;;  %v2427_v3 = vmul.f32 0.7978846, %v2414_v39 }
 0x977   :  { %6109 = vmatprep.mubr.msk.f32.mxu0 %vm6916_vm0, %v10132_v15 }
 0x978   :  { %v2462_v1 = vmul.f32 %v2449_v52, %v2358_v56  ;;  %6708 = vtanh.f32 %v2427_v3 }
 0x97a   :  { %v6703_v58 = vpop.eup %6702  ;;  %6110 = vmatmul.mubr.msk.f32.gmra.mxu0 %vm2476_vm11, %v2462_v1 }
 0x97b   :  { %6112 = vmatprep.mubr.msk.f32.mxu0 %vm6916_vm0, %v10132_v15  ;;  %v2450_v17 = vadd.f32 1.0, %v6703_v58 }
 0x97d   :  { %v6705_v21 = vpop.eup %6704  ;;  %v2463_v60 = vmul.f32 %v2450_v17, %v2359_v6 }
 0x97e   :  { %v2451_v0 = vadd.f32 1.0, %v6705_v21 }
 0x97f   :  { %6113 = vmatmul.mubr.msk.f32.gmra.mxu0 %vm2476_vm11, %v2463_v60 }
 0x980   :  { %6115 = vmatprep.mubr.msk.f32.mxu0 %vm6916_vm0, %v10132_v15  ;;  %v2464_v29 = vmul.f32 %v2451_v0, %v2360_v59 }
 0x981   :  { %v6707_v41 = vpop.eup %6706 }
 0x982   :  { %v2452_v40 = vadd.f32 1.0, %v6707_v41 }
 0x983   :  { %6116 = vmatmul.mubr.msk.f32.gmra.mxu0 %vm2476_vm11, %v2464_v29 }
 0x984   :  { %6118 = vmatprep.mubr.msk.f32.mxu0 %vm6916_vm0, %v10132_v15  ;;  %v2465_v45 = vmul.f32 %v2452_v40, %v2361_v5 }
 0x985   :  { %v6709_v2 = vpop.eup %6708 }
 0x986   :  { %v2453_v49 = vadd.f32 1.0, %v6709_v2 }
 0x987   :  { %6119 = vmatmul.mubr.msk.f32.gmra.mxu0 %vm2476_vm11, %v2465_v45 }
 0x988   :  { %6121 = vmatprep.mubr.msk.f32.mxu0 %vm6916_vm0, %v10132_v15  ;;  %v2466_v54 = vmul.f32 %v2453_v49, %v2362_v51 }
 0x98b   :  { %6122 = vmatmul.mubr.msk.f32.gmra.mxu0 %vm2476_vm11, %v2466_v54 }
 0x98c   :  { %6124 = vmatprep.mubr.msk.f32.mxu0 %vm6916_vm0, %v10132_v15 }
 0x98f   :  { %v2331_v13 = vpop.f32.mrf.mxu1 }
 0x990   :  { %v2332_v44 = vadd.f32 %v8489_v38, %v2331_v13 }
 0x991   :  { %v6079_v11 = vpop.f32.mrf.mxu1 }
 0x992   :  { %v2376_v34 = vmul.f32 0.044715, %v2332_v44  ;;  %v2363_v41 = vmul.f32 0.5, %v2332_v44 }
 0x993   :  { %v2336_v9 = vpop.f32.mrf.mxu1 }
 0x994   :  { %v2389_v48 = vmul.f32 %v2376_v34, %v2332_v44  ;;  %v2337_v27 = vadd.f32 %v8489_v38, %v2336_v9 }
 0x995   :  { %v6082_v7 = vpop.f32.mrf.mxu1 }
 0x996   :  { %v2402_v43 = vmul.f32 %v2389_v48, %v2332_v44  ;;  %v2377_v35 = vmul.f32 0.044715, %v2337_v27 }
 0x997   :  { %v2341_v12 = vpop.f32.mrf.mxu1 }
 0x998   :  { %v2415_v25 = vadd.f32 %v2402_v43, %v2332_v44  ;;  %v2390_v53 = vmul.f32 %v2377_v35, %v2337_v27  ;;  %v2342_v24 = vadd.f32 %v8489_v38, %v2341_v12 }
 0x999   :  { %v6085_v22 = vpop.f32.mrf.mxu1 }
 0x99a   :  { %v2403_v57 = vmul.f32 %v2390_v53, %v2337_v27  ;;  %v2378_v16 = vmul.f32 0.044715, %v2342_v24  ;;  %v2428_v61 = vmul.f32 0.7978846, %v2415_v25  ;;  %v2365_v54 = vmul.f32 0.5, %v2342_v24 }
 0x99b   :  { %v2346_v50 = vpop.f32.mrf.mxu1  ;;  %v8574_v25 = vld [vmem:[%s10118_s13] ss:$0 sm:$0xff] }
 0x99c   :  { %v2416_v20 = vadd.f32 %v2403_v57, %v2337_v27  ;;  %v2391_v46 = vmul.f32 %v2378_v16, %v2342_v24  ;;  %v2347_v31 = vadd.f32 %v8489_v38, %v2346_v50  ;;  %6710 = vtanh.f32 %v2428_v61 }
 0x99d   :  { %v6088_v37 = vpop.f32.mrf.mxu1 }
 0x99e   :  { %v2404_v47 = vmul.f32 %v2391_v46, %v2342_v24  ;;  %v2379_v4 = vmul.f32 0.044715, %v2347_v31  ;;  %v2429_v10 = vmul.f32 0.7978846, %v2416_v20  ;;  %v2366_v34 = vmul.f32 0.5, %v2347_v31 }
 0x99f   :  { %v2351_v39 = vpop.f32.mrf.mxu1 }
 0x9a0   :  { %v2417_v42 = vadd.f32 %v2404_v47, %v2342_v24  ;;  %v2392_v62 = vmul.f32 %v2379_v4, %v2347_v31  ;;  %v2352_v56 = vadd.f32 %v8489_v38, %v2351_v39  ;;  %6712 = vtanh.f32 %v2429_v10 }
 0x9a1   :  { %v6091_v52 = vpop.f32.mrf.mxu1  ;;  %v2364_v38 = vmul.f32 0.5, %v2337_v27 }
 0x9a2   :  { %v2405_v3 = vmul.f32 %v2392_v62, %v2347_v31  ;;  %v2380_v1 = vmul.f32 0.044715, %v2352_v56  ;;  %v2430_v58 = vmul.f32 0.7978846, %v2417_v42  ;;  %v2367_v7 = vmul.f32 0.5, %v2352_v56 }
 0x9a4   :  { %v2418_v6 = vadd.f32 %v2405_v3, %v2347_v31  ;;  %v2393_v17 = vmul.f32 %v2380_v1, %v2352_v56  ;;  %6714 = vtanh.f32 %v2430_v58 }
 0x9a6   :  { %v2431_v21 = vmul.f32 0.7978846, %v2418_v6  ;;  %v2406_v60 = vmul.f32 %v2393_v17, %v2352_v56 }
 0x9a8   :  { %6716 = vtanh.f32 %v2431_v21  ;;  %v2419_v59 = vadd.f32 %v2406_v60, %v2352_v56 }
 0x9a9   :  { %v6711_v0 = vpop.eup %6710 }
 0x9aa   :  { %v2432_v29 = vmul.f32 0.7978846, %v2419_v59  ;;  %v2454_v5 = vadd.f32 1.0, %v6711_v0 }
 0x9ac   :  { %6718 = vtanh.f32 %v2432_v29  ;;  %v2467_v40 = vmul.f32 %v2454_v5, %v2363_v41 }
 0x9ad   :  { %v6713_v45 = vpop.eup %6712 }
 0x9ae   :  { %6125 = vmatmul.mubr.msk.f32.gmra.mxu0 %vm2476_vm11, %v2467_v40  ;;  %v2455_v2 = vadd.f32 1.0, %v6713_v45 }
 0x9af   :  { %6127 = vmatprep.mubr.msk.f32.mxu0 %vm6916_vm0, %v10132_v15 }
 0x9b0   :  { %v2468_v51 = vmul.f32 %v2455_v2, %v2364_v38 }
 0x9b1   :  { %v6715_v49 = vpop.eup %6714 }
 0x9b2   :  { %6128 = vmatmul.mubr.msk.f32.gmra.mxu0 %vm2476_vm11, %v2468_v51  ;;  %v2456_v13 = vadd.f32 1.0, %v6715_v49 }
 0x9b3   :  { %6130 = vmatprep.mubr.msk.f32.mxu0 %vm6916_vm0, %v10132_v15 }
 0x9b4   :  { %v2469_v44 = vmul.f32 %v2456_v13, %v2365_v54 }
 0x9b5   :  { %v6717_v11 = vpop.eup %6716 }
 0x9b6   :  { %6131 = vmatmul.mubr.msk.f32.gmra.mxu0 %vm2476_vm11, %v2469_v44  ;;  %v2457_v9 = vadd.f32 1.0, %v6717_v11 }
 0x9b7   :  { %6133 = vmatprep.mubr.msk.f32.mxu0 %vm6916_vm0, %v10132_v15 }
 0x9b8   :  { %v2470_v48 = vmul.f32 %v2457_v9, %v2366_v34 }
 0x9b9   :  { %v6719_v27 = vpop.eup %6718 }
 0x9ba   :  { %6134 = vmatmul.mubr.msk.f32.gmra.mxu0 %vm2476_vm11, %v2470_v48  ;;  %v2458_v43 = vadd.f32 1.0, %v6719_v27 }
 0x9bb   :  { %6136 = vmatprep.mubr.msk.f32.mxu0 %vm6916_vm0, %v10132_v15 }
 0x9bc   :  { %v2471_v35 = vmul.f32 %v2458_v43, %v2367_v7 }
 0x9be   :  { %6137 = vmatmul.mubr.msk.f32.gmra.mxu0 %vm2476_vm11, %v2471_v35 }
 0x9bf   :  { %6206 = vmatprep.mubr.msk.f32.mxu0 %vm6916_vm0, %v10132_v15 }
 0xa2e   :  { %v2582_v12 = vpop.f32.mrf.mxu0 }
 0xa2f   :  { %v2646_v53 = vadd.f32 %v2582_v12, %v8221_v36 }
 0xa30   :  { %v6102_v24 = vpop.f32.mrf.mxu0 }
 0xa31   :  { %v8578_v22 = vadd.f32 %v8574_v25, %v2646_v53 }
 0xa32   :  { %v2587_v57 = vpop.f32.mrf.mxu0 }
 0xa33   :  { %v2647_v16 = vadd.f32 %v2587_v57, %v8227_v19  ;;  %v2683_v61 = vsel %vm260_vm2, %v8578_v22, 0.0 }
 0xa34   :  { %2684 = vadd.xlane.f32.xlu0 %v2683_v61  ;;  %v6105_v50 = vpop.f32.mrf.mxu0 }
 0xa35   :  { %v8584_v20 = vadd.f32 %v8574_v25, %v2647_v16 }
 0xa36   :  { %v2592_v46 = vpop.f32.mrf.mxu0 }
 0xa37   :  { %v2648_v31 = vadd.f32 %v2592_v46, %v8233_v18  ;;  %v2686_v36 = vsel %vm260_vm2, %v8584_v20, 0.0 }
 0xa38   :  { %2687 = vadd.xlane.f32.xlu1 %v2686_v36  ;;  %v6108_v37 = vpop.f32.mrf.mxu0 }
 0xa39   :  { %v8590_v47 = vadd.f32 %v8574_v25, %v2648_v31 }
 0xa3a   :  { %v2597_v19 = vpop.f32.mrf.mxu0 }
 0xa3b   :  { %v2649_v4 = vadd.f32 %v2597_v19, %v8239_v23  ;;  %v2689_v10 = vsel %vm260_vm2, %v8590_v47, 0.0 }
 0xa3c   :  { %2690 = vadd.xlane.f32.xlu0 %v2689_v10  ;;  %v6111_v39 = vpop.f32.mrf.mxu0 }
 0xa3d   :  { %v8596_v42 = vadd.f32 %v8574_v25, %v2649_v4 }
 0xa3f   :  { %v2602_v18 = vpop.f32.mrf.mxu0  ;;  %v2692_v62 = vsel %vm260_vm2, %v8596_v42, 0.0 }
 0xa40   :  { %v2650_v56 = vadd.f32 %v2602_v18, %v8245_v28  ;;  %2693 = vadd.xlane.f32.xlu1 %v2692_v62 }
 0xa41   :  { %v6114_v52 = vpop.f32.mrf.mxu0 }
 0xa42   :  { %v8602_v3 = vadd.f32 %v8574_v25, %v2650_v56 }
 0xa43   :  { %v2607_v23 = vpop.f32.mrf.mxu0 }
 0xa44   :  { %v2651_v1 = vadd.f32 %v2607_v23, %v8251_v33  ;;  %v2695_v58 = vsel %vm260_vm2, %v8602_v3, 0.0 }
 0xa45   :  { %2696 = vadd.xlane.f32.xlu0 %v2695_v58  ;;  %v6117_v6 = vpop.f32.mrf.mxu0 }
 0xa46   :  { %v8608_v17 = vadd.f32 %v8574_v25, %v2651_v1 }
 0xa47   :  { %v2612_v21 = vpop.f32.mrf.mxu0 }
 0xa48   :  { %v2652_v60 = vadd.f32 %v2612_v21, %v8256_v26  ;;  %v2698_v28 = vsel %vm260_vm2, %v8608_v17, 0.0 }
 0xa49   :  { %2699 = vadd.xlane.f32.xlu1 %v2698_v28  ;;  %v6120_v59 = vpop.f32.mrf.mxu0 }
 0xa4a   :  { %v8614_v0 = vadd.f32 %v8574_v25, %v2652_v60 }
 0xa4b   :  { %v2617_v33 = vpop.f32.mrf.mxu0 }
 0xa4c   :  { %v2653_v29 = vadd.f32 %v2617_v33, %v8261_v8  ;;  %v2701_v41 = vsel %vm260_vm2, %v8614_v0, 0.0 }
 0xa4d   :  { %2702 = vadd.xlane.f32.xlu0 %v2701_v41  ;;  %v6123_v5 = vpop.f32.mrf.mxu0 }
 0xa4e   :  { %v8620_v40 = vadd.f32 %v8574_v25, %v2653_v29 }
 0xa50   :  { %v2704_v26 = vsel %vm260_vm2, %v8620_v40, 0.0 }
 0xa51   :  { %2705 = vadd.xlane.f32.xlu1 %v2704_v26 }
 0xa6e   :  { %v2622_v45 = vpop.f32.mrf.mxu0 }
 0xa6f   :  { %v2654_v38 = vadd.f32 %v2622_v45, %v8269_v30 }
 0xa70   :  { %v6126_v2 = vpop.f32.mrf.mxu0 }
 0xa71   :  { %v8626_v51 = vadd.f32 %v8574_v25, %v2654_v38 }
 0xa72   :  { %v2627_v8 = vpop.f32.mrf.mxu0 }
 0xa73   :  { %v2655_v49 = vadd.f32 %v2627_v8, %v8275_v32  ;;  %v2707_v54 = vsel %vm260_vm2, %v8626_v51, 0.0 }
 0xa74   :  { %2708 = vadd.xlane.f32.xlu0 %v2707_v54  ;;  %v6129_v13 = vpop.f32.mrf.mxu0 }
 0xa75   :  { %v8632_v44 = vadd.f32 %v8574_v25, %v2655_v49 }
 0xa76   :  { %v2632_v11 = vpop.f32.mrf.mxu0 }
 0xa77   :  { %10136 = vst [vmem:[#allocation3_spill] sm:$0xff] %v8632_v44  ;;  %v2656_v34 = vadd.f32 %v2632_v11, %v8281_v14  ;;  %v2710_v30 = vsel %vm260_vm2, %v8632_v44, 0.0 }
 0xa78   :  { %2711 = vadd.xlane.f32.xlu1 %v2710_v30  ;;  %v6132_v9 = vpop.f32.mrf.mxu0 }
 0xa79   :  { %v8638_v48 = vadd.f32 %v8574_v25, %v2656_v34 }
 0xa7a   :  { %v2637_v32 = vpop.f32.mrf.mxu0 }
 0xa7b   :  { %10137 = vst [vmem:[#allocation4_spill] sm:$0xff] %v8638_v48  ;;  %v2657_v27 = vadd.f32 %v2637_v32, %v8286_v63  ;;  %v2713_v7 = vsel %vm260_vm2, %v8638_v48, 0.0 }
 0xa7c   :  { %2714 = vadd.xlane.f32.xlu0 %v2713_v7  ;;  %v6135_v43 = vpop.f32.mrf.mxu0 }
 0xa7d   :  { %v8644_v35 = vadd.f32 %v8574_v25, %v2657_v27 }
 0xa7e   :  { %v2642_v14 = vpop.f32.mrf.mxu0 }
 0xa7f   :  { %10138 = vst [vmem:[#allocation5_spill] sm:$0xff] %v8644_v35  ;;  %v2658_v12 = vadd.f32 %v2642_v14, %v8291_v55  ;;  %v2716_v53 = vsel %vm260_vm2, %v8644_v35, 0.0 }
 0xa80   :  { %2717 = vadd.xlane.f32.xlu1 %v2716_v53  ;;  %v6138_v24 = vpop.f32.mrf.mxu0 }
 0xa81   :  { %v8650_v57 = vadd.f32 %v8574_v25, %v2658_v12 }
 0xa83   :  { %10139 = vst [vmem:[#allocation6_spill] sm:$0xff] %v8650_v57  ;;  %v2719_v63 = vsel %vm297_vm3, %v8650_v57, 0.0 }
 0xa84   :  { %2720 = vadd.xlane.f32.xlu0 %v2719_v63 }
 0xabd   :  { %v2685_v16 = vpop.xlane.xlu0 %2684 }
 0xabe   :  { %v2722_v61 = vmul.f32 0.125, %v2685_v16 }
 0xac0   :  { %v8655_v50 = vsub.f32 %v8578_v22, %v2722_v61 }
 0xac1   :  { %v2688_v46 = vpop.xlane.xlu1 %2687 }
 0xac2   :  { %v2723_v31 = vmul.f32 0.125, %v2688_v46  ;;  %v2748_v55 = vmul.f32 %v8655_v50, %v8655_v50 }
 0xac4   :  { %v8660_v36 = vsub.f32 %v8584_v20, %v2723_v31  ;;  %v2761_v25 = vsel %vm260_vm2, %v2748_v55, 0.0 }
 0xac5   :  { %v2691_v37 = vpop.xlane.xlu0 %2690  ;;  %2762 = vadd.xlane.f32.xlu1 %v2761_v25 }
 0xac6   :  { %v2724_v19 = vmul.f32 0.125, %v2691_v37  ;;  %v2749_v4 = vmul.f32 %v8660_v36, %v8660_v36 }
 0xac8   :  { %v8666_v10 = vsub.f32 %v8590_v47, %v2724_v19  ;;  %v2764_v39 = vsel %vm260_vm2, %v2749_v4, 0.0 }
 0xac9   :  { %v2694_v18 = vpop.xlane.xlu1 %2693  ;;  %2765 = vadd.xlane.f32.xlu0 %v2764_v39 }
 0xaca   :  { %v2725_v62 = vmul.f32 0.125, %v2694_v18  ;;  %v2750_v56 = vmul.f32 %v8666_v10, %v8666_v10 }
 0xacc   :  { %v8672_v52 = vsub.f32 %v8596_v42, %v2725_v62  ;;  %v2767_v23 = vsel %vm260_vm2, %v2750_v56, 0.0 }
 0xacd   :  { %2768 = vadd.xlane.f32.xlu1 %v2767_v23 }
 0xace   :  { %v2697_v1 = vpop.xlane.xlu0 %2696  ;;  %v2751_v58 = vmul.f32 %v8672_v52, %v8672_v52 }
 0xacf   :  { %v2726_v6 = vmul.f32 0.125, %v2697_v1 }
 0xad0   :  { %v2770_v21 = vsel %vm260_vm2, %v2751_v58, 0.0 }
 0xad1   :  { %v8679_v60 = vsub.f32 %v8602_v3, %v2726_v6  ;;  %2771 = vadd.xlane.f32.xlu0 %v2770_v21 }
 0xad2   :  { %v2700_v28 = vpop.xlane.xlu1 %2699 }
 0xad3   :  { %v2727_v59 = vmul.f32 0.125, %v2700_v28  ;;  %v2752_v33 = vmul.f32 %v8679_v60, %v8679_v60 }
 0xad5   :  { %v8684_v29 = vsub.f32 %v8608_v17, %v2727_v59  ;;  %v2773_v41 = vsel %vm260_vm2, %v2752_v33, 0.0 }
 0xad6   :  { %v2703_v5 = vpop.xlane.xlu0 %2702  ;;  %2774 = vadd.xlane.f32.xlu1 %v2773_v41 }
 0xad7   :  { %v2728_v26 = vmul.f32 0.125, %v2703_v5  ;;  %v2753_v45 = vmul.f32 %v8684_v29, %v8684_v29 }
 0xad9   :  { %v8690_v38 = vsub.f32 %v8614_v0, %v2728_v26  ;;  %v2776_v2 = vsel %vm260_vm2, %v2753_v45, 0.0 }
 0xada   :  { %v2706_v8 = vpop.xlane.xlu1 %2705  ;;  %2777 = vadd.xlane.f32.xlu0 %v2776_v2 }
 0xadb   :  { %v2729_v49 = vmul.f32 0.125, %v2706_v8  ;;  %v2754_v54 = vmul.f32 %v8690_v38, %v8690_v38 }
 0xadd   :  { %v8696_v13 = vsub.f32 %v8620_v40, %v2729_v49  ;;  %v2779_v11 = vsel %vm260_vm2, %v2754_v54, 0.0 }
 0xade   :  { %2780 = vadd.xlane.f32.xlu1 %v2779_v11  ;;  %v8735_v11 = vld [vmem:[%s10109_s4 + $0x1] ss:$0 sm:$0xff] }
 0xadf   :  { %v2755_v34 = vmul.f32 %v8696_v13, %v8696_v13 }
 0xae1   :  { %v2782_v30 = vsel %vm260_vm2, %v2755_v34, 0.0 }
 0xae2   :  { %2783 = vadd.xlane.f32.xlu0 %v2782_v30 }
 0xafd   :  { %v2709_v9 = vpop.xlane.xlu0 %2708 }
 0xafe   :  { %v2730_v32 = vmul.f32 0.125, %v2709_v9  ;;  %v8741_v9 = vld [vmem:[%s10110_s5 + $0x1] ss:$0 sm:$0xff] }
 0xb00   :  { %v8703_v27 = vsub.f32 %v8626_v51, %v2730_v32 }
 0xb01   :  { %v2712_v7 = vpop.xlane.xlu1 %2711 }
 0xb02   :  { %v2731_v43 = vmul.f32 0.125, %v2712_v7  ;;  %v2756_v14 = vmul.f32 %v8703_v27, %v8703_v27 }
 0xb04   :  { %v8708_v12 = vsub.f32 %v8632_v44, %v2731_v43  ;;  %v2785_v53 = vsel %vm260_vm2, %v2756_v14, 0.0 }
 0xb05   :  { %v2715_v24 = vpop.xlane.xlu0 %2714  ;;  %2786 = vadd.xlane.f32.xlu1 %v2785_v53 }
 0xb06   :  { %v2732_v63 = vmul.f32 0.125, %v2715_v24  ;;  %v2757_v16 = vmul.f32 %v8708_v12, %v8708_v12 }
 0xb08   :  { %v8714_v61 = vsub.f32 %v8638_v48, %v2732_v63  ;;  %v2788_v46 = vsel %vm260_vm2, %v2757_v16, 0.0 }
 0xb09   :  { %v2718_v31 = vpop.xlane.xlu1 %2717  ;;  %2789 = vadd.xlane.f32.xlu0 %v2788_v46 }
 0xb0a   :  { %v2733_v55 = vmul.f32 0.125, %v2718_v31  ;;  %v2758_v25 = vmul.f32 %v8714_v61, %v8714_v61 }
 0xb0c   :  { %v8720_v37 = vsub.f32 %v8644_v35, %v2733_v55  ;;  %v2791_v19 = vsel %vm260_vm2, %v2758_v25, 0.0 }
 0xb0d   :  { %2792 = vadd.xlane.f32.xlu1 %v2791_v19  ;;  %v2721_v4 = vpop.xlane.xlu0 %2720 }
 0xb0e   :  { %v2734_v39 = vmul.f32 0.125, %v2721_v4  ;;  %v2759_v18 = vmul.f32 %v8720_v37, %v8720_v37 }
 0xb10   :  { %v8726_v62 = vsub.f32 %v8650_v57, %v2734_v39  ;;  %v2794_v56 = vsel %vm260_vm2, %v2759_v18, 0.0 }
 0xb11   :  { %2795 = vadd.xlane.f32.xlu0 %v2794_v56 }
 0xb12   :  { %v2760_v23 = vmul.f32 %v8726_v62, %v8726_v62 }
 0xb14   :  { %v2797_v1 = vsel %vm297_vm3, %v2760_v23, 0.0 }
 0xb15   :  { %2798 = vadd.xlane.f32.xlu1 %v2797_v1 }
 0xb4e   :  { %v2763_v58 = vpop.xlane.xlu1 %2762 }
 0xb4f   :  { %v2800_v6 = vmul.f32 0.125, %v2763_v58 }
 0xb51   :  { %v2813_v21 = vadd.f32 1e-05, %v2800_v6 }
 0xb52   :  { %v2766_v28 = vpop.xlane.xlu0 %2765 }
 0xb53   :  { %6720 = vrsqrt.f32 %v2813_v21  ;;  %v2801_v59 = vmul.f32 0.125, %v2766_v28 }
 0xb55   :  { %v2814_v33 = vadd.f32 1e-05, %v2801_v59 }
 0xb56   :  { %v2769_v41 = vpop.xlane.xlu1 %2768 }
 0xb57   :  { %6722 = vrsqrt.f32 %v2814_v33  ;;  %v2802_v5 = vmul.f32 0.125, %v2769_v41 }
 0xb59   :  { %v2815_v26 = vadd.f32 1e-05, %v2802_v5 }
 0xb5a   :  { %v2772_v45 = vpop.xlane.xlu0 %2771 }
 0xb5b   :  { %6724 = vrsqrt.f32 %v2815_v26  ;;  %v2803_v2 = vmul.f32 0.125, %v2772_v45 }
 0xb5d   :  { %v2816_v8 = vadd.f32 1e-05, %v2803_v2 }
 0xb5f   :  { %6726 = vrsqrt.f32 %v2816_v8  ;;  %v2775_v49 = vpop.xlane.xlu1 %2774 }
 0xb60   :  { %v6721_v54 = vpop.eup %6720  ;;  %v2804_v34 = vmul.f32 0.125, %v2775_v49 }
 0xb61   :  { %v2839_v30 = vmul.f32 %v6721_v54, %v8655_v50 }
 0xb62   :  { %v2817_v32 = vadd.f32 1e-05, %v2804_v34 }
 0xb63   :  { %v2858_v7 = vmul.f32 %v8735_v11, %v2839_v30  ;;  %v2778_v43 = vpop.xlane.xlu0 %2777 }
 0xb64   :  { %v6723_v14 = vpop.eup %6722  ;;  %6728 = vrsqrt.f32 %v2817_v32  ;;  %v2805_v53 = vmul.f32 0.125, %v2778_v43 }
 0xb65   :  { %v2877_v24 = vadd.f32 %v8741_v9, %v2858_v7  ;;  %v2840_v63 = vmul.f32 %v6723_v14, %v8660_v36 }
 0xb66   :  { %v2818_v16 = vadd.f32 1e-05, %v2805_v53 }
 0xb67   :  { %v2781_v46 = vpop.xlane.xlu1 %2780  ;;  %6142 = vmatmul.mubr.msk.f32.vlgmr.msra.gmra.mxu1 %vm260_vm2, %v2877_v24  ;;  %v2859_v50 = vmul.f32 %v8735_v11, %v2840_v63 }
 0xb68   :  { %v6725_v31 = vpop.eup %6724  ;;  %6730 = vrsqrt.f32 %v2818_v16  ;;  %v2806_v55 = vmul.f32 0.125, %v2781_v46  ;;  %6144 = vmatprep.mubr.msk.f32.mxu1 %vm6916_vm0, %v10132_v15 }
 0xb69   :  { %v2878_v25 = vadd.f32 %v8741_v9, %v2859_v50  ;;  %v2841_v19 = vmul.f32 %v6725_v31, %v8666_v10 }
 0xb6a   :  { %v2819_v4 = vadd.f32 1e-05, %v2806_v55 }
 0xb6b   :  { %v2784_v39 = vpop.xlane.xlu0 %2783  ;;  %6145 = vmatmul.mubr.msk.f32.gmra.mxu1 %vm260_vm2, %v2878_v25  ;;  %v2860_v36 = vmul.f32 %v8735_v11, %v2841_v19 }
 0xb6c   :  { %v6727_v18 = vpop.eup %6726  ;;  %6732 = vrsqrt.f32 %v2819_v4  ;;  %v2807_v56 = vmul.f32 0.125, %v2784_v39  ;;  %6147 = vmatprep.mubr.msk.f32.mxu1 %vm6916_vm0, %v10132_v15 }
 0xb6d   :  { %v2879_v23 = vadd.f32 %v8741_v9, %v2860_v36  ;;  %v2842_v1 = vmul.f32 %v6727_v18, %v8672_v52 }
 0xb6e   :  { %v2820_v58 = vadd.f32 1e-05, %v2807_v56 }
 0xb6f   :  { %6148 = vmatmul.mubr.msk.f32.gmra.mxu1 %vm260_vm2, %v2879_v23  ;;  %v2861_v10 = vmul.f32 %v8735_v11, %v2842_v1 }
 0xb70   :  { %6734 = vrsqrt.f32 %v2820_v58  ;;  %6150 = vmatprep.mubr.msk.f32.mxu1 %vm6916_vm0, %v10132_v15 }
 0xb71   :  { %v6729_v6 = vpop.eup %6728  ;;  %v2880_v21 = vadd.f32 %v8741_v9, %v2861_v10 }
 0xb72   :  { %v2843_v28 = vmul.f32 %v6729_v6, %v8679_v60 }
 0xb73   :  { %6151 = vmatmul.mubr.msk.f32.gmra.mxu1 %vm260_vm2, %v2880_v21 }
 0xb74   :  { %6153 = vmatprep.mubr.msk.f32.mxu1 %vm6916_vm0, %v10132_v15  ;;  %v2862_v52 = vmul.f32 %v8735_v11, %v2843_v28 }
 0xb75   :  { %v6731_v59 = vpop.eup %6730 }
 0xb76   :  { %v2881_v33 = vadd.f32 %v8741_v9, %v2862_v52  ;;  %v2844_v41 = vmul.f32 %v6731_v59, %v8684_v29 }
 0xb78   :  { %6154 = vmatmul.mubr.msk.f32.gmra.mxu1 %vm260_vm2, %v2881_v33  ;;  %v2863_v5 = vmul.f32 %v8735_v11, %v2844_v41 }
 0xb79   :  { %v6733_v26 = vpop.eup %6732  ;;  %6156 = vmatprep.mubr.msk.f32.mxu1 %vm6916_vm0, %v10132_v15 }
 0xb7a   :  { %v2882_v60 = vadd.f32 %v8741_v9, %v2863_v5  ;;  %v2845_v45 = vmul.f32 %v6733_v26, %v8690_v38 }
 0xb7c   :  { %6157 = vmatmul.mubr.msk.f32.gmra.mxu1 %vm260_vm2, %v2882_v60  ;;  %v2864_v2 = vmul.f32 %v8735_v11, %v2845_v45 }
 0xb7d   :  { %v6735_v8 = vpop.eup %6734  ;;  %6159 = vmatprep.mubr.msk.f32.mxu1 %vm6916_vm0, %v10132_v15 }
 0xb7e   :  { %v2883_v29 = vadd.f32 %v8741_v9, %v2864_v2  ;;  %v2846_v49 = vmul.f32 %v6735_v8, %v8696_v13 }
 0xb80   :  { %6160 = vmatmul.mubr.msk.f32.gmra.mxu1 %vm260_vm2, %v2883_v29  ;;  %v2865_v54 = vmul.f32 %v8735_v11, %v2846_v49 }
 0xb81   :  { %6162 = vmatprep.mubr.msk.f32.mxu1 %vm6916_vm0, %v10132_v15 }
 0xb82   :  { %v2884_v38 = vadd.f32 %v8741_v9, %v2865_v54 }
 0xb84   :  { %6163 = vmatmul.mubr.msk.f32.gmra.mxu1 %vm260_vm2, %v2884_v38 }
 0xb85   :  { %6165 = vmatprep.mubr.msk.f32.mxu1 %vm6916_vm0, %v10132_v15 }
 0xb8e   :  { %v2787_v34 = vpop.xlane.xlu1 %2786 }
 0xb8f   :  { %v2808_v30 = vmul.f32 0.125, %v2787_v34 }
 0xb91   :  { %v2821_v32 = vadd.f32 1e-05, %v2808_v30 }
 0xb92   :  { %v2790_v7 = vpop.xlane.xlu0 %2789 }
 0xb93   :  { %6736 = vrsqrt.f32 %v2821_v32  ;;  %v2809_v13 = vmul.f32 0.125, %v2790_v7 }
 0xb95   :  { %v2822_v43 = vadd.f32 1e-05, %v2809_v13 }
 0xb96   :  { %v2793_v14 = vpop.xlane.xlu1 %2792 }
 0xb97   :  { %6738 = vrsqrt.f32 %v2822_v43  ;;  %v2810_v53 = vmul.f32 0.125, %v2793_v14 }
 0xb99   :  { %v2823_v24 = vadd.f32 1e-05, %v2810_v53  ;;  %v5261_v53 = vld [vmem:[%s10111_s7 + $0x1] ss:$0 sm:$0xff] }
 0xb9a   :  { %v2796_v63 = vpop.xlane.xlu0 %2795 }
 0xb9b   :  { %6740 = vrsqrt.f32 %v2823_v24  ;;  %v2811_v16 = vmul.f32 0.125, %v2796_v63 }
 0xb9d   :  { %v2824_v46 = vadd.f32 1e-05, %v2811_v16 }
 0xb9e   :  { %v2799_v50 = vpop.xlane.xlu1 %2798 }
 0xb9f   :  { %6742 = vrsqrt.f32 %v2824_v46  ;;  %v2812_v31 = vmul.f32 0.125, %v2799_v50 }
 0xba0   :  { %v6737_v55 = vpop.eup %6736 }
 0xba1   :  { %v2825_v25 = vadd.f32 1e-05, %v2812_v31  ;;  %v2847_v19 = vmul.f32 %v6737_v55, %v8703_v27 }
 0xba3   :  { %6744 = vrsqrt.f32 %v2825_v25  ;;  %v2866_v4 = vmul.f32 %v8735_v11, %v2847_v19 }
 0xba4   :  { %v6739_v39 = vpop.eup %6738 }
 0xba5   :  { %v2885_v36 = vadd.f32 %v8741_v9, %v2866_v4  ;;  %v2848_v18 = vmul.f32 %v6739_v39, %v8708_v12 }
 0xba7   :  { %6166 = vmatmul.mubr.msk.f32.gmra.mxu1 %vm260_vm2, %v2885_v36  ;;  %v2867_v56 = vmul.f32 %v8735_v11, %v2848_v18 }
 0xba8   :  { %v6741_v23 = vpop.eup %6740  ;;  %6168 = vmatprep.mubr.msk.f32.mxu1 %vm6916_vm0, %v10132_v15 }
 0xba9   :  { %v2886_v1 = vadd.f32 %v8741_v9, %v2867_v56  ;;  %v2849_v27 = vmul.f32 %v6741_v23, %v8714_v61 }
 0xbab   :  { %6169 = vmatmul.mubr.msk.f32.gmra.mxu1 %vm260_vm2, %v2886_v1  ;;  %v2868_v58 = vmul.f32 %v8735_v11, %v2849_v27 }
 0xbac   :  { %v6743_v10 = vpop.eup %6742  ;;  %6171 = vmatprep.mubr.msk.f32.mxu1 %vm6916_vm0, %v10132_v15 }
 0xbad   :  { %v2887_v12 = vadd.f32 %v8741_v9, %v2868_v58  ;;  %v2850_v6 = vmul.f32 %v6743_v10, %v8720_v37 }
 0xbaf   :  { %6172 = vmatmul.mubr.msk.f32.gmra.mxu1 %vm260_vm2, %v2887_v12  ;;  %v2869_v21 = vmul.f32 %v8735_v11, %v2850_v6 }
 0xbb0   :  { %v6745_v28 = vpop.eup %6744  ;;  %6174 = vmatprep.mubr.msk.f32.mxu1 %vm6916_vm0, %v10132_v15 }
 0xbb1   :  { %v2888_v61 = vadd.f32 %v8741_v9, %v2869_v21  ;;  %v2851_v52 = vmul.f32 %v6745_v28, %v8726_v62 }
 0xbb3   :  { %6175 = vmatmul.mubr.msk.f32.gmra.mxu1 %vm260_vm2, %v2888_v61  ;;  %v2870_v59 = vmul.f32 %v8735_v11, %v2851_v52 }
 0xbb4   :  { %6177 = vmatprep.mubr.msk.f32.mxu1 %vm6916_vm0, %v10132_v15 }
 0xbb5   :  { %v2889_v37 = vadd.f32 %v8741_v9, %v2870_v59 }
 0xbb7   :  { %6178 = vmatmul.mubr.msk.f32.gmra.mxu1 %vm260_vm2, %v2889_v37 }
 0xbb8   :  { %6271 = vmatprep.mubr.msk.f32.mxu1 %vm6916_vm0, %v10132_v15 }
 0xc27   :  { %v3005_v33 = vpop.f32.mrf.mxu1 }
 0xc28   :  { %v8867_v1 = vadd.f32 %v5261_v53, %v3005_v33 }
 0xc29   :  { %v6143_v41 = vpop.f32.mrf.mxu1 }
 0xc2b   :  { %v3010_v5 = vpop.f32.mrf.mxu1 }
 0xc2c   :  { %v8869_v27 = vadd.f32 %v5261_v53, %v3010_v5 }
 0xc2d   :  { %v6146_v26 = vpop.f32.mrf.mxu1 }
 0xc2f   :  { %v3015_v60 = vpop.f32.mrf.mxu1 }
 0xc30   :  { %v8859_v56 = vadd.f32 %v5261_v53, %v3015_v60 }
 0xc31   :  { %v6149_v62 = vpop.f32.mrf.mxu1 }
 0xc33   :  { %v3020_v45 = vpop.f32.mrf.mxu1 }
 0xc34   :  { %v8861_v23 = vadd.f32 %v5261_v53, %v3020_v45 }
 0xc35   :  { %v6152_v2 = vpop.f32.mrf.mxu1 }
 0xc38   :  { %v3025_v8 = vpop.f32.mrf.mxu1 }
 0xc39   :  { %v8851_v36 = vadd.f32 %v5261_v53, %v3025_v8 }
 0xc3a   :  { %v6155_v11 = vpop.f32.mrf.mxu1 }
 0xc3c   :  { %v3030_v29 = vpop.f32.mrf.mxu1 }
 0xc3d   :  { %v8853_v18 = vadd.f32 %v5261_v53, %v3030_v29 }
 0xc3e   :  { %v6158_v49 = vpop.f32.mrf.mxu1 }
 0xc40   :  { %v3035_v54 = vpop.f32.mrf.mxu1 }
 0xc41   :  { %v8843_v4 = vadd.f32 %v5261_v53, %v3035_v54 }
 0xc42   :  { %v6161_v38 = vpop.f32.mrf.mxu1 }
 0xc44   :  { %v3040_v9 = vpop.f32.mrf.mxu1 }
 0xc45   :  { %v8845_v39 = vadd.f32 %v5261_v53, %v3040_v9 }
 0xc46   :  { %v6164_v34 = vpop.f32.mrf.mxu1 }
 0xc67   :  { %v3045_v30 = vpop.f32.mrf.mxu1 }
 0xc68   :  { %v8835_v25 = vadd.f32 %v5261_v53, %v3045_v30 }
 0xc69   :  { %v6167_v32 = vpop.f32.mrf.mxu1 }
 0xc6b   :  { %v3050_v7 = vpop.f32.mrf.mxu1 }
 0xc6c   :  { %v8837_v19 = vadd.f32 %v5261_v53, %v3050_v7 }
 0xc6d   :  { %v6170_v13 = vpop.f32.mrf.mxu1 }
 0xc6f   :  { %v3055_v43 = vpop.f32.mrf.mxu1 }
 0xc70   :  { %v8827_v50 = vadd.f32 %v5261_v53, %v3055_v43 }
 0xc71   :  { %v6173_v14 = vpop.f32.mrf.mxu1 }
 0xc73   :  { %v3060_v24 = vpop.f32.mrf.mxu1 }
 0xc74   :  { %v8823_v63 = vadd.f32 %v5261_v53, %v3060_v24 }
 0xc75   :  { %v6176_v16 = vpop.f32.mrf.mxu1 }
 0xc76   :  { %3104 = vrot.lane.b32.xlu1 %v8823_v63, %s6917_s22 }
 0xc77   :  { %v3065_v46 = vpop.f32.mrf.mxu1 }
 0xc78   :  { %v8829_v31 = vadd.f32 %v5261_v53, %v3065_v46 }
 0xc79   :  { %v6179_v55 = vpop.f32.mrf.mxu1 }
 0xc7a   :  { %3102 = vrot.lane.b32.xlu1 %v8827_v50, %s6917_s22  ;;  %3106 = vrot.lane.b32.xlu0 %v8829_v31, %s6917_s22 }
 0xc7e   :  { %3100 = vrot.lane.b32.xlu1 %v8837_v19, %s6917_s22  ;;  %3098 = vrot.lane.b32.xlu0 %v8835_v25, %s6917_s22 }
 0xc82   :  { %3096 = vrot.lane.b32.xlu1 %v8845_v39, %s6917_s22  ;;  %3094 = vrot.lane.b32.xlu0 %v8843_v4, %s6917_s22 }
 0xc86   :  { %3092 = vrot.lane.b32.xlu1 %v8853_v18, %s6917_s22  ;;  %3090 = vrot.lane.b32.xlu0 %v8851_v36, %s6917_s22 }
 0xc8a   :  { %3088 = vrot.lane.b32.xlu1 %v8861_v23, %s6917_s22  ;;  %3086 = vrot.lane.b32.xlu0 %v8859_v56, %s6917_s22 }
 0xc8e   :  { %3084 = vrot.lane.b32.xlu1 %v8869_v27, %s6917_s22  ;;  %3082 = vrot.lane.b32.xlu0 %v8867_v1, %s6917_s22 }
 0xc92   :  { %3731 = vrot.lane.b32.xlu1 %v8829_v31, %s6918_s23  ;;  %3729 = vrot.lane.b32.xlu0 %v8823_v63, %s6918_s23 }
 0xc96   :  { %3727 = vrot.lane.b32.xlu1 %v8827_v50, %s6918_s23  ;;  %3725 = vrot.lane.b32.xlu0 %v8837_v19, %s6918_s23 }
 0xc9a   :  { %3723 = vrot.lane.b32.xlu1 %v8835_v25, %s6918_s23  ;;  %3721 = vrot.lane.b32.xlu0 %v8845_v39, %s6918_s23 }
 0xc9e   :  { %3719 = vrot.lane.b32.xlu1 %v8843_v4, %s6918_s23  ;;  %3717 = vrot.lane.b32.xlu0 %v8853_v18, %s6918_s23 }
 0xca2   :  { %3715 = vrot.lane.b32.xlu1 %v8851_v36, %s6918_s23  ;;  %3713 = vrot.lane.b32.xlu0 %v8861_v23, %s6918_s23 }
 0xca6   :  { %3711 = vrot.lane.b32.xlu1 %v8859_v56, %s6918_s23  ;;  %3709 = vrot.lane.b32.xlu0 %v8869_v27, %s6918_s23 }
 0xcaa   :  { %3707 = vrot.lane.b32.xlu1 %v8867_v1, %s6918_s23  ;;  %3681 = vrot.lane.b32.xlu0 %v8867_v1, %s6919_s24 }
 0xcae   :  { %3683 = vrot.lane.b32.xlu1 %v8869_v27, %s6919_s24  ;;  %3685 = vrot.lane.b32.xlu0 %v8859_v56, %s6919_s24 }
 0xcb2   :  { %3687 = vrot.lane.b32.xlu1 %v8861_v23, %s6919_s24  ;;  %3689 = vrot.lane.b32.xlu0 %v8851_v36, %s6919_s24 }
 0xcb6   :  { %3691 = vrot.lane.b32.xlu1 %v8853_v18, %s6919_s24  ;;  %3693 = vrot.lane.b32.xlu0 %v8843_v4, %s6919_s24 }
 0xcba   :  { %3695 = vrot.lane.b32.xlu1 %v8845_v39, %s6919_s24  ;;  %3697 = vrot.lane.b32.xlu0 %v8835_v25, %s6919_s24 }
 0xcbe   :  { %3699 = vrot.lane.b32.xlu1 %v8837_v19, %s6919_s24  ;;  %3701 = vrot.lane.b32.xlu0 %v8827_v50, %s6919_s24 }
 0xcc2   :  { %3703 = vrot.lane.b32.xlu1 %v8823_v63, %s6919_s24  ;;  %3705 = vrot.lane.b32.xlu0 %v8829_v31, %s6919_s24 }
 0xcc6   :  { %3479 = vrot.lane.b32.xlu1 %v8827_v50, %s6920_s25  ;;  %3481 = vrot.lane.b32.xlu0 %v8823_v63, %s6920_s25 }
 0xcca   :  { %3477 = vrot.lane.b32.xlu1 %v8837_v19, %s6920_s25  ;;  %3475 = vrot.lane.b32.xlu0 %v8835_v25, %s6920_s25 }
 0xcce   :  { %3473 = vrot.lane.b32.xlu1 %v8845_v39, %s6920_s25  ;;  %3471 = vrot.lane.b32.xlu0 %v8843_v4, %s6920_s25 }
 0xcd2   :  { %3465 = vrot.lane.b32.xlu1 %v8861_v23, %s6920_s25  ;;  %3469 = vrot.lane.b32.xlu0 %v8853_v18, %s6920_s25 }
 0xcd6   :  { %4106 = vrot.lane.b32.xlu1 %v8823_v63, %s6921_s26  ;;  %3467 = vrot.lane.b32.xlu0 %v8851_v36, %s6920_s25 }
 0xcda   :  { %4104 = vrot.lane.b32.xlu1 %v8827_v50, %s6921_s26  ;;  %3463 = vrot.lane.b32.xlu0 %v8859_v56, %s6920_s25 }
 0xcde   :  { %4102 = vrot.lane.b32.xlu1 %v8837_v19, %s6921_s26  ;;  %3461 = vrot.lane.b32.xlu0 %v8869_v27, %s6920_s25 }
 0xce2   :  { %4100 = vrot.lane.b32.xlu1 %v8835_v25, %s6921_s26  ;;  %3459 = vrot.lane.b32.xlu0 %v8867_v1, %s6920_s25 }
 0xce6   :  { %4096 = vrot.lane.b32.xlu1 %v8843_v4, %s6921_s26  ;;  %4098 = vrot.lane.b32.xlu0 %v8845_v39, %s6921_s26 }
 0xce8   :  { %v3105_v58 = vpop.permute.xlu1 %3104 }
 0xcea   :  { %4094 = vrot.lane.b32.xlu1 %v8853_v18, %s6921_s26  ;;  %4108 = vrot.lane.b32.xlu0 %v8829_v31, %s6921_s26 }
 0xcec   :  { %v3103_v10 = vpop.permute.xlu1 %3102  ;;  %v3107_v12 = vpop.permute.xlu0 %3106 }
 0xced   :  { %6181 = vmatpush3.xpose.msk.msra.mxu0 %vm686_vm4, %v3107_v12 }
 0xcee   :  { %3483 = vrot.lane.b32.xlu1 %v8829_v31, %s6920_s25  ;;  %6182 = vmatprep.subr.mxu0 %v10132_v15 }
 0xcf0   :  { %v3101_v6 = vpop.permute.xlu1 %3100  ;;  %v3099_v21 = vpop.permute.xlu0 %3098 }
 0xcf1   :  { %6183 = vmatpush3.xpose.msk.msra.mxu0 %vm686_vm4, %v3105_v58 }
 0xcf2   :  { %6184 = vmatprep.subr.mxu0 %v10132_v15 }
 0xcf4   :  { %v3097_v28 = vpop.permute.xlu1 %3096  ;;  %v3095_v61 = vpop.permute.xlu0 %3094 }
 0xcf5   :  { %6185 = vmatpush3.xpose.msk.msra.mxu0 %vm686_vm4, %v3103_v10 }
 0xcf6   :  { %6186 = vmatprep.subr.mxu0 %v10132_v15 }
 0xcf8   :  { %v3093_v52 = vpop.permute.xlu1 %3092  ;;  %v3091_v59 = vpop.permute.xlu0 %3090 }
 0xcf9   :  { %6187 = vmatpush3.xpose.msk.msra.mxu0 %vm686_vm4, %v3101_v6 }
 0xcfa   :  { %6188 = vmatprep.subr.mxu0 %v10132_v15 }
 0xcfc   :  { %v3089_v37 = vpop.permute.xlu1 %3088  ;;  %v3087_v33 = vpop.permute.xlu0 %3086 }
 0xcfd   :  { %6189 = vmatpush3.xpose.msk.msra.mxu0 %vm686_vm4, %v3099_v21 }
 0xcfe   :  { %6190 = vmatprep.subr.mxu0 %v10132_v15 }
 0xd00   :  { %v3085_v41 = vpop.permute.xlu1 %3084  ;;  %v3083_v5 = vpop.permute.xlu0 %3082 }
 0xd01   :  { %6191 = vmatpush3.xpose.msk.msra.mxu0 %vm686_vm4, %v3097_v28 }
 0xd02   :  { %6192 = vmatprep.subr.mxu0 %v10132_v15 }
 0xd04   :  { %v3732_v26 = vpop.permute.xlu1 %3731  ;;  %v3730_v60 = vpop.permute.xlu0 %3729 }
 0xd05   :  { %6193 = vmatpush3.xpose.msk.msra.mxu0 %vm686_vm4, %v3095_v61 }
 0xd06   :  { %6194 = vmatprep.subr.mxu0 %v10132_v15 }
 0xd08   :  { %v3728_v62 = vpop.permute.xlu1 %3727  ;;  %v3726_v45 = vpop.permute.xlu0 %3725 }
 0xd09   :  { %6195 = vmatpush3.xpose.msk.msra.mxu0 %vm686_vm4, %v3093_v52 }
 0xd0a   :  { %6196 = vmatprep.subr.mxu0 %v10132_v15 }
 0xd0c   :  { %v3724_v2 = vpop.permute.xlu1 %3723  ;;  %v3722_v8 = vpop.permute.xlu0 %3721 }
 0xd0d   :  { %6197 = vmatpush3.xpose.msk.msra.mxu0 %vm686_vm4, %v3091_v59 }
 0xd0e   :  { %6198 = vmatprep.subr.mxu0 %v10132_v15 }
 0xd10   :  { %v3720_v11 = vpop.permute.xlu1 %3719  ;;  %v3718_v29 = vpop.permute.xlu0 %3717 }
 0xd11   :  { %6199 = vmatpush3.xpose.msk.msra.mxu0 %vm686_vm4, %v3089_v37 }
 0xd12   :  { %6200 = vmatprep.subr.mxu0 %v10132_v15 }
 0xd14   :  { %v3716_v49 = vpop.permute.xlu1 %3715  ;;  %v3714_v54 = vpop.permute.xlu0 %3713 }
 0xd15   :  { %6201 = vmatpush3.xpose.msk.msra.mxu0 %vm686_vm4, %v3087_v33 }
 0xd16   :  { %6202 = vmatprep.subr.mxu0 %v10132_v15 }
 0xd18   :  { %v8991_v38 = vpop.permute.xlu1 %3711  ;;  %v8998_v34 = vpop.permute.xlu0 %3709 }
 0xd19   :  { %6203 = vmatpush3.xpose.msk.msra.mxu0 %vm686_vm4, %v3085_v41 }
 0xd1a   :  { %6204 = vmatprep.subr.mxu0 %v10132_v15 }
 0xd1c   :  { %v8995_v9 = vpop.permute.xlu1 %3707  ;;  %v9009_v32 = vpop.permute.xlu0 %3681 }
 0xd1d   :  { %6205 = vmatpush3.xpose.msk.msra.mxu0 %vm686_vm4, %v3083_v5 }
 0xd1e   :  { %6310 = vmatprep.subr.mxu0 %v10132_v15 }
 0xd20   :  { %v9001_v30 = vpop.permute.xlu1 %3683  ;;  %6207 = vmatmul.mubr.msk.f32.vlgmr.msra.gmra.mxu0 %vm686_vm4, %v8867_v1  ;;  %v9026_v43 = vpop.permute.xlu0 %3685 }
 0xd21   :  { %6311 = vmatpush3.xpose.msk.msra.mxu0 %vm686_vm4, %v3732_v26  ;;  %6209 = vmatprep.mubr.msk.f32.mxu0 %vm6916_vm0, %v10132_v15 }
 0xd22   :  { %6312 = vmatprep.subr.mxu0 %v10132_v15 }
 0xd24   :  { %v9011_v7 = vpop.permute.xlu1 %3687  ;;  %6210 = vmatmul.mubr.msk.f32.gmra.mxu0 %vm686_vm4, %v8869_v27  ;;  %v9037_v53 = vpop.permute.xlu0 %3689 }
 0xd25   :  { %6313 = vmatpush3.xpose.msk.msra.mxu0 %vm686_vm4, %v3730_v60  ;;  %6212 = vmatprep.mubr.msk.f32.mxu0 %vm6916_vm0, %v10132_v15 }
 0xd26   :  { %6314 = vmatprep.subr.mxu0 %v10132_v15 }
 0xd28   :  { %v9019_v13 = vpop.permute.xlu1 %3691  ;;  %6213 = vmatmul.mubr.msk.f32.gmra.mxu0 %vm686_vm4, %v8859_v56  ;;  %v9054_v46 = vpop.permute.xlu0 %3693 }
 0xd29   :  { %6315 = vmatpush3.xpose.msk.msra.mxu0 %vm686_vm4, %v3728_v62  ;;  %6215 = vmatprep.mubr.msk.f32.mxu0 %vm6916_vm0, %v10132_v15 }
 0xd2a   :  { %6316 = vmatprep.subr.mxu0 %v10132_v15 }
 0xd2c   :  { %v9029_v14 = vpop.permute.xlu1 %3695  ;;  %6216 = vmatmul.mubr.msk.f32.gmra.mxu0 %vm686_vm4, %v8861_v23 }
 0xd2d   :  { %6317 = vmatpush3.xpose.msk.msra.mxu0 %vm686_vm4, %v3726_v45  ;;  %6218 = vmatprep.mubr.msk.f32.mxu0 %vm6916_vm0, %v10132_v15  ;;  %v9192_v45 = vld [vmem:[%s10112_s3] sm:$0xff] }
 0xd2e   :  { %6318 = vmatprep.subr.mxu0 %v10132_v15 }
 0xd30   :  { %v9039_v24 = vpop.permute.xlu1 %3699  ;;  %6219 = vmatmul.mubr.msk.f32.gmra.mxu0 %vm686_vm4, %v8851_v36 }
 0xd31   :  { %6319 = vmatpush3.xpose.msk.msra.mxu0 %vm686_vm4, %v3724_v2  ;;  %6221 = vmatprep.mubr.msk.f32.mxu0 %vm6916_vm0, %v10132_v15 }
 0xd32   :  { %6320 = vmatprep.subr.mxu0 %v10132_v15 }
 0xd34   :  { %v9047_v16 = vpop.permute.xlu1 %3703  ;;  %6222 = vmatmul.mubr.msk.f32.gmra.mxu0 %vm686_vm4, %v8853_v18  ;;  %v9063_v18 = vpop.permute.xlu0 %3697 }
 0xd35   :  { %6321 = vmatpush3.xpose.msk.msra.mxu0 %vm686_vm4, %v3722_v8  ;;  %6224 = vmatprep.mubr.msk.f32.mxu0 %vm6916_vm0, %v10132_v15 }
 0xd36   :  { %6322 = vmatprep.subr.mxu0 %v10132_v15 }
 0xd38   :  { %v3480_v55 = vpop.permute.xlu1 %3479  ;;  %6225 = vmatmul.mubr.msk.f32.gmra.mxu0 %vm686_vm4, %v8843_v4  ;;  %v9076_v10 = vpop.permute.xlu0 %3701 }
 0xd39   :  { %6323 = vmatpush3.xpose.msk.msra.mxu0 %vm686_vm4, %v3720_v11  ;;  %6227 = vmatprep.mubr.msk.f32.mxu0 %vm6916_vm0, %v10132_v15 }
 0xd3a   :  { %6324 = vmatprep.subr.mxu0 %v10132_v15 }
 0xd3c   :  { %v3478_v58 = vpop.permute.xlu1 %3477  ;;  %6228 = vmatmul.mubr.msk.f32.gmra.mxu0 %vm686_vm4, %v8845_v39 }
 0xd3d   :  { %6325 = vmatpush3.xpose.msk.msra.mxu0 %vm686_vm4, %v3718_v29  ;;  %6230 = vmatprep.mubr.msk.f32.mxu0 %vm6916_vm0, %v10132_v15 }
 0xd3e   :  { %6326 = vmatprep.subr.mxu0 %v10132_v15 }
 0xd40   :  { %v3474_v4 = vpop.permute.xlu1 %3473  ;;  %6231 = vmatmul.mubr.msk.f32.gmra.mxu0 %vm686_vm4, %v8835_v25  ;;  %v9087_v25 = vpop.permute.xlu0 %3705 }
 0xd41   :  { %6327 = vmatpush3.xpose.msk.msra.mxu0 %vm686_vm4, %v3716_v49  ;;  %6233 = vmatprep.mubr.msk.f32.mxu0 %vm6916_vm0, %v10132_v15 }
 0xd42   :  { %6328 = vmatprep.subr.mxu0 %v10132_v15 }
 0xd44   :  { %v9079_v39 = vpop.permute.xlu1 %3465  ;;  %6234 = vmatmul.mubr.msk.f32.gmra.mxu0 %vm686_vm4, %v8837_v19 }
 0xd45   :  { %6329 = vmatpush3.xpose.msk.msra.mxu0 %vm686_vm4, %v3714_v54  ;;  %6236 = vmatprep.mubr.msk.f32.mxu0 %vm6916_vm0, %v10132_v15  ;;  %v9202_v54 = vld [vmem:[%s10112_s3 + $0x8] sm:$0xff] }
 0xd46   :  { %6330 = vmatprep.subr.mxu0 %v10132_v15 }
 0xd48   :  { %v9089_v12 = vpop.permute.xlu1 %4106  ;;  %6237 = vmatmul.mubr.msk.f32.gmra.mxu0 %vm686_vm4, %v8827_v50  ;;  %v3482_v50 = vpop.permute.xlu0 %3481 }
 0xd49   :  { %6331 = vmatpush3.xpose.msk.msra.mxu0 %vm686_vm4, %v8991_v38  ;;  %6239 = vmatprep.mubr.msk.f32.mxu0 %vm6916_vm0, %v10132_v15 }
 0xd4a   :  { %6332 = vmatprep.subr.mxu0 %v10132_v15 }
 0xd4c   :  { %v9098_v19 = vpop.permute.xlu1 %4104  ;;  %6240 = vmatmul.mubr.msk.f32.gmra.mxu0 %vm686_vm4, %v8823_v63  ;;  %v3476_v63 = vpop.permute.xlu0 %3475 }
 0xd4d   :  { %6333 = vmatpush3.xpose.msk.msra.mxu0 %vm686_vm4, %v8998_v34  ;;  %6242 = vmatprep.mubr.msk.f32.mxu0 %vm6916_vm0, %v10132_v15 }
 0xd4e   :  { %6334 = vmatprep.subr.mxu0 %v10132_v15 }
 0xd50   :  { %v9107_v6 = vpop.permute.xlu1 %4102  ;;  %6243 = vmatmul.mubr.msk.f32.gmra.mxu0 %vm686_vm4, %v8829_v31  ;;  %v3472_v31 = vpop.permute.xlu0 %3471 }
 0xd51   :  { %6335 = vmatpush3.xpose.msk.msra.mxu0 %vm686_vm4, %v8995_v9  ;;  %6336 = vmatprep.mubr.msk.f32.mxu0 %vm6916_vm0, %v10132_v15 }
 0xd52   :  { %6440 = vmatprep.subr.mxu0 %v10132_v15 }
 0xd54   :  { %v9116_v21 = vpop.permute.xlu1 %4100  ;;  %6337 = vmatmul.mubr.msk.f32.vlgmr.msra.gmra.mxu0 %vm686_vm4, %v9009_v32  ;;  %v3470_v52 = vpop.permute.xlu0 %3469 }
 0xd55   :  { %6339 = vmatprep.mubr.msk.f32.mxu0 %vm6916_vm0, %v10132_v15 }
 0xd58   :  { %v9122_v28 = vpop.permute.xlu1 %4096  ;;  %6340 = vmatmul.mubr.msk.f32.gmra.mxu0 %vm686_vm4, %v9001_v30  ;;  %v3468_v37 = vpop.permute.xlu0 %3467 }
 0xd59   :  { %6342 = vmatprep.mubr.msk.f32.mxu0 %vm6916_vm0, %v10132_v15 }
 0xd5c   :  { %v9128_v61 = vpop.permute.xlu1 %4094  ;;  %6343 = vmatmul.mubr.msk.f32.gmra.mxu0 %vm686_vm4, %v9026_v43  ;;  %v3464_v33 = vpop.permute.xlu0 %3463 }
 0xd5d   :  { %6345 = vmatprep.mubr.msk.f32.mxu0 %vm6916_vm0, %v10132_v15 }
 0xd60   :  { %v3484_v59 = vpop.permute.xlu1 %3483  ;;  %6346 = vmatmul.mubr.msk.f32.gmra.mxu0 %vm686_vm4, %v9011_v7  ;;  %v3462_v41 = vpop.permute.xlu0 %3461  ;;  %v9212_v7 = vld [vmem:[%s10112_s3 + $0x10] sm:$0xff] }
 0xd61   :  { %6246 = vmatpush3.msk.msra.mxu1 %vm1117_vm5, %v3484_v59  ;;  %6348 = vmatprep.mubr.msk.f32.mxu0 %vm6916_vm0, %v10132_v15 }
 0xd62   :  { %6247 = vmatprep.subr.mxu1 %v10132_v15 }
 0xd63   :  { %6248 = vmatpush3.msra.mxu1 %v3482_v50 }
 0xd64   :  { %6249 = vmatprep.subr.mxu1 %v10132_v15  ;;  %6349 = vmatmul.mubr.msk.f32.gmra.mxu0 %vm686_vm4, %v9037_v53  ;;  %v3460_v5 = vpop.permute.xlu0 %3459 }
 0xd65   :  { %6250 = vmatpush3.msra.mxu1 %v3480_v55  ;;  %6351 = vmatprep.mubr.msk.f32.mxu0 %vm6916_vm0, %v10132_v15 }
 0xd66   :  { %6251 = vmatprep.subr.mxu1 %v10132_v15 }
 0xd67   :  { %6252 = vmatpush3.msra.mxu1 %v3478_v58 }
 0xd68   :  { %6253 = vmatprep.subr.mxu1 %v10132_v15  ;;  %6352 = vmatmul.mubr.msk.f32.gmra.mxu0 %vm686_vm4, %v9019_v13 }
 0xd69   :  { %6254 = vmatpush3.msra.mxu1 %v3476_v63  ;;  %6354 = vmatprep.mubr.msk.f32.mxu0 %vm6916_vm0, %v10132_v15 }
 0xd6a   :  { %6255 = vmatprep.subr.mxu1 %v10132_v15 }
 0xd6b   :  { %6256 = vmatpush3.msra.mxu1 %v3474_v4 }
 0xd6c   :  { %6257 = vmatprep.subr.mxu1 %v10132_v15  ;;  %6355 = vmatmul.mubr.msk.f32.gmra.mxu0 %vm686_vm4, %v9054_v46 }
 0xd6d   :  { %6258 = vmatpush3.msra.mxu1 %v3472_v31  ;;  %6357 = vmatprep.mubr.msk.f32.mxu0 %vm6916_vm0, %v10132_v15 }
 0xd6e   :  { %6259 = vmatprep.subr.mxu1 %v10132_v15 }
 0xd6f   :  { %6260 = vmatpush3.msra.mxu1 %v3470_v52  ;;  %v9242_v52 = vld [vmem:[%s10112_s3 + $0x28] sm:$0xff] }
 0xd70   :  { %6261 = vmatprep.subr.mxu1 %v10132_v15  ;;  %6358 = vmatmul.mubr.msk.f32.gmra.mxu0 %vm686_vm4, %v9029_v14 }
 0xd71   :  { %6262 = vmatpush3.msra.mxu1 %v3468_v37  ;;  %6360 = vmatprep.mubr.msk.f32.mxu0 %vm6916_vm0, %v10132_v15 }
 0xd72   :  { %6263 = vmatprep.subr.mxu1 %v10132_v15 }
 0xd73   :  { %6264 = vmatpush3.msra.mxu1 %v9079_v39 }
 0xd74   :  { %6265 = vmatprep.subr.mxu1 %v10132_v15  ;;  %6361 = vmatmul.mubr.msk.f32.gmra.mxu0 %vm686_vm4, %v9063_v18 }
 0xd75   :  { %6266 = vmatpush3.msra.mxu1 %v3464_v33  ;;  %6363 = vmatprep.mubr.msk.f32.mxu0 %vm6916_vm0, %v10132_v15 }
 0xd76   :  { %6267 = vmatprep.subr.mxu1 %v10132_v15 }
 0xd77   :  { %6268 = vmatpush3.msra.mxu1 %v3462_v41 }
 0xd78   :  { %6269 = vmatprep.subr.mxu1 %v10132_v15  ;;  %6364 = vmatmul.mubr.msk.f32.gmra.mxu0 %vm686_vm4, %v9039_v24 }
 0xd79   :  { %6270 = vmatpush3.msra.mxu1 %v3460_v5  ;;  %6366 = vmatprep.mubr.msk.f32.mxu0 %vm6916_vm0, %v10132_v15 }
 0xd7a   :  { %6375 = vmatprep.subr.mxu1 %v10132_v15 }
 0xd7c   :  { %6367 = vmatmul.mubr.msk.f32.gmra.mxu0 %vm686_vm4, %v9076_v10  ;;  %v9232_v10 = vld [vmem:[%s10112_s3 + $0x20] sm:$0xff] }
 0xd7d   :  { %6369 = vmatprep.mubr.msk.f32.mxu0 %vm6916_vm0, %v10132_v15 }
 0xd80   :  { %6370 = vmatmul.mubr.msk.f32.gmra.mxu0 %vm686_vm4, %v9047_v16  ;;  %v9222_v16 = vld [vmem:[%s10112_s3 + $0x18] sm:$0xff] }
 0xd81   :  { %6372 = vmatprep.mubr.msk.f32.mxu0 %vm6916_vm0, %v10132_v15 }
 0xd84   :  { %6373 = vmatmul.mubr.msk.f32.gmra.mxu0 %vm686_vm4, %v9087_v25 }
 0xd85   :  { %6442 = vmatprep.mubr.msk.f32.mxu0 %vm6916_vm0, %v10132_v15 }
 0xde0   :  { %v3226_v26 = vpop.f32.mrf.mxu0 }
 0xde1   :  { %v3290_v60 = vmul.f32 0.5, %v3226_v26  ;;  %v9252_v26 = vld [vmem:[%s10112_s3 + $0x30] sm:$0xff] }
 0xde2   :  { %v6208_v62 = vpop.f32.mrf.mxu0 }
 0xde3   :  { %v9195_v2 = vadd.f32 %v9192_v45, %v3290_v60 }
 0xde4   :  { %v3231_v8 = vpop.f32.mrf.mxu0 }
 0xde5   :  { %v3291_v11 = vmul.f32 0.5, %v3231_v8  ;;  %v3316_v29 = vsel %vm895_vm6, %v9195_v2, -inf }
 0xde6   :  { %3317 = vmax.xlane.f32.xlu1 %v3316_v29  ;;  %v6211_v49 = vpop.f32.mrf.mxu0 }
 0xde7   :  { %v9205_v38 = vadd.f32 %v9202_v54, %v3291_v11  ;;  %v9262_v49 = vld [vmem:[%s10112_s3 + $0x38] sm:$0xff] }
 0xde8   :  { %v3236_v9 = vpop.f32.mrf.mxu0 }
 0xde9   :  { %v3292_v34 = vmul.f32 0.5, %v3236_v9  ;;  %v3319_v30 = vsel %vm895_vm6, %v9205_v38, -inf }
 0xdea   :  { %3320 = vmax.xlane.f32.xlu0 %v3319_v30  ;;  %v6214_v32 = vpop.f32.mrf.mxu0 }
 0xdeb   :  { %v9215_v13 = vadd.f32 %v9212_v7, %v3292_v34 }
 0xdec   :  { %v3241_v43 = vpop.f32.mrf.mxu0 }
 0xded   :  { %v3293_v14 = vmul.f32 0.5, %v3241_v43  ;;  %v3322_v53 = vsel %vm895_vm6, %v9215_v13, -inf }
 0xdee   :  { %3323 = vmax.xlane.f32.xlu0 %v3322_v53  ;;  %v6217_v24 = vpop.f32.mrf.mxu0 }
 0xdef   :  { %v9225_v46 = vadd.f32 %v9222_v16, %v3293_v14  ;;  %v9272_v14 = vld [vmem:[%s10112_s3 + $0x40] sm:$0xff] }
 0xdf0   :  { %v3246_v55 = vpop.f32.mrf.mxu0 }
 0xdf1   :  { %v3294_v18 = vmul.f32 0.5, %v3246_v55  ;;  %v3325_v58 = vsel %vm895_vm6, %v9225_v46, -inf }
 0xdf2   :  { %3326 = vmax.xlane.f32.xlu0 %v3325_v58  ;;  %v6220_v4 = vpop.f32.mrf.mxu0 }
 0xdf3   :  { %v9235_v39 = vadd.f32 %v9232_v10, %v3294_v18 }
 0xdf4   :  { %v3251_v25 = vpop.f32.mrf.mxu0 }
 0xdf5   :  { %v3295_v50 = vmul.f32 0.5, %v3251_v25  ;;  %v3328_v63 = vsel %vm895_vm6, %v9235_v39, -inf }
 0xdf6   :  { %3329 = vmax.xlane.f32.xlu1 %v3328_v63  ;;  %v6223_v31 = vpop.f32.mrf.mxu0 }
 0xdf7   :  { %v9245_v59 = vadd.f32 %v9242_v52, %v3295_v50 }
 0xdf8   :  { %v3256_v37 = vpop.f32.mrf.mxu0 }
 0xdf9   :  { %v3296_v33 = vmul.f32 0.5, %v3256_v37  ;;  %v3331_v41 = vsel %vm895_vm6, %v9245_v59, -inf }
 0xdfa   :  { %3332 = vmax.xlane.f32.xlu0 %v3331_v41  ;;  %v6226_v5 = vpop.f32.mrf.mxu0 }
 0xdfb   :  { %v9255_v60 = vadd.f32 %v9252_v26, %v3296_v33 }
 0xdfc   :  { %v3261_v62 = vpop.f32.mrf.mxu0 }
 0xdfd   :  { %v3297_v8 = vmul.f32 0.5, %v3261_v62  ;;  %v3334_v11 = vsel %vm895_vm6, %v9255_v60, -inf }
 0xdfe   :  { %3335 = vmax.xlane.f32.xlu1 %v3334_v11  ;;  %v6229_v29 = vpop.f32.mrf.mxu0 }
 0xdff   :  { %v9265_v9 = vadd.f32 %v9262_v49, %v3297_v8 }
 0xe00   :  { %v3266_v34 = vpop.f32.mrf.mxu0 }
 0xe01   :  { %v3298_v30 = vmul.f32 0.5, %v3266_v34  ;;  %v3337_v32 = vsel %vm895_vm6, %v9265_v9, -inf }
 0xe02   :  { %3338 = vmax.xlane.f32.xlu0 %v3337_v32  ;;  %v6232_v43 = vpop.f32.mrf.mxu0 }
 0xe03   :  { %v9275_v53 = vadd.f32 %v9272_v14, %v3298_v30 }
 0xe04   :  { %v3271_v24 = vpop.f32.mrf.mxu0 }
 0xe05   :  { %v3340_v55 = vsel %vm895_vm6, %v9275_v53, -inf }
 0xe06   :  { %3341 = vmax.xlane.f32.xlu1 %v3340_v55  ;;  %v6235_v18 = vpop.f32.mrf.mxu0 }
 0xe07   :  { %v3299_v18 = vmul.f32 0.5, %v3271_v24 }
 0xe08   :  { %v3276_v58 = vpop.f32.mrf.mxu0 }
 0xe0a   :  { %v6238_v4 = vpop.f32.mrf.mxu0 }
 0xe0c   :  { %v3281_v25 = vpop.f32.mrf.mxu0 }
 0xe0e   :  { %v6241_v50 = vpop.f32.mrf.mxu0 }
 0xe10   :  { %v3286_v63 = vpop.f32.mrf.mxu0 }
 0xe12   :  { %v6244_v31 = vpop.f32.mrf.mxu0 }
 0xe13   :  { %v3300_v31 = vmul.f32 0.5, %v3276_v58 }
 0xe14   :  { %v3851_v37 = vpop.f32.mrf.mxu0 }
 0xe15   :  { %v3915_v58 = vmul.f32 0.5, %v3851_v37 }
 0xe16   :  { %v6338_v33 = vpop.f32.mrf.mxu0 }
 0xe17   :  { %4092 = vrot.lane.b32.xlu1 %v8851_v36, %s6921_s26  ;;  %v6911_v36 = vld [vmem:[%s10112_s3 + $0x48] sm:$0xff]  ;;  %v3301_v33 = vmul.f32 0.5, %v3281_v25  ;;  %v9313_v35 = vadd.f32 %v9192_v45, %v3915_v58 }
 0xe18   :  { %4090 = vrot.lane.b32.xlu0 %v8861_v23, %s6921_s26  ;;  %v3856_v41 = vpop.f32.mrf.mxu0  ;;  %v9288_v23 = vadd.f32 %v6911_v36, %v3299_v18 }
 0xe1a   :  { %v6341_v5 = vpop.f32.mrf.mxu0 }
 0xe1c   :  { %v3861_v62 = vpop.f32.mrf.mxu0 }
 0xe1d   :  { %v3917_v48 = vmul.f32 0.5, %v3861_v62 }
 0xe1e   :  { %v6344_v8 = vpop.f32.mrf.mxu0 }
 0xe1f   :  { %v9325_v45 = vadd.f32 %v9212_v7, %v3917_v48 }
 0xe20   :  { %v3866_v11 = vpop.f32.mrf.mxu0 }
 0xe21   :  { %v3918_v62 = vmul.f32 0.5, %v3866_v11  ;;  %v3947_v11 = vsel %vm895_vm6, %v9325_v45, -inf }
 0xe22   :  { %v6347_v29 = vpop.f32.mrf.mxu0 }
 0xe23   :  { %v3302_v29 = vmul.f32 0.5, %v3286_v63 }
 0xe24   :  { %v3871_v34 = vpop.f32.mrf.mxu0 }
 0xe26   :  { %v6350_v30 = vpop.f32.mrf.mxu0 }
 0xe27   :  { %v9295_v30 = vld [vmem:[%s10112_s3 + $0x50] sm:$0xff] }
 0xe28   :  { %v3876_v32 = vpop.f32.mrf.mxu0  ;;  %v9298_v24 = vadd.f32 %v9295_v30, %v3300_v31  ;;  %v3916_v31 = vmul.f32 0.5, %v3856_v41 }
 0xe29   :  { %v3920_v48 = vmul.f32 0.5, %v3876_v32 }
 0xe2a   :  { %v6353_v43 = vpop.f32.mrf.mxu0  ;;  %v3346_v37 = vsel %vm895_vm6, %v9298_v24, -inf  ;;  %v9320_v44 = vadd.f32 %v9202_v54, %v3916_v31  ;;  %v9332_v54 = vadd.f32 %v9222_v16, %v3918_v62 }
 0xe2b   :  { %v6913_v43 = vld [vmem:[%s10112_s3 + $0x58] sm:$0xff] }
 0xe2c   :  { %v9283_v55 = vpop.f32.mrf.mxu0  ;;  %v9303_v18 = vadd.f32 %v6913_v43, %v3301_v33  ;;  %v3950_v16 = vsel %vm895_vm6, %v9332_v54, -inf }
 0xe2e   :  { %v6356_v4 = vpop.f32.mrf.mxu0 }
 0xe2f   :  { %v3343_v4 = vsel %vm895_vm6, %v9288_v23, -inf }
 0xe30   :  { %v3886_v50 = vpop.f32.mrf.mxu0 }
 0xe32   :  { %v6359_v5 = vpop.f32.mrf.mxu0 }
 0xe33   :  { %v6914_v5 = vld [vmem:[%s10112_s3 + $0x60] sm:$0xf] }
 0xe34   :  { %v9290_v8 = vpop.f32.mrf.mxu0  ;;  %v9310_v57 = vadd.f32 %v6914_v5, %v3302_v29  ;;  %v3919_v29 = vmul.f32 0.5, %v3871_v34 }
 0xe36   :  { %v6362_v25 = vpop.f32.mrf.mxu0  ;;  %v3352_v41 = vsel %vm932_vm7, %v9310_v57, -inf  ;;  %v9335_v31 = vadd.f32 %v9232_v10, %v3919_v29 }
 0xe37   :  { %3344 = vmax.xlane.f32.xlu0 %v3343_v4  ;;  %v3349_v25 = vsel %vm895_vm6, %v9303_v18, -inf }
 0xe38   :  { %v3896_v63 = vpop.f32.mrf.mxu0  ;;  %v3953_v10 = vsel %vm895_vm6, %v9335_v31, -inf }
 0xe39   :  { %v3924_v62 = vmul.f32 0.5, %v3896_v63 }
 0xe3a   :  { %v6365_v33 = vpop.f32.mrf.mxu0 }
 0xe3b   :  { %3347 = vmax.xlane.f32.xlu1 %v3346_v37  ;;  %3350 = vmax.xlane.f32.xlu0 %v3349_v25  ;;  %v3941_v33 = vsel %vm895_vm6, %v9313_v35, -inf  ;;  %v3944_v25 = vsel %vm895_vm6, %v9320_v44, -inf }
 0xe3c   :  { %v3901_v4 = vpop.f32.mrf.mxu0 }
 0xe3e   :  { %v6368_v58 = vpop.f32.mrf.mxu0 }
 0xe3f   :  { %3353 = vmax.xlane.f32.xlu1 %v3352_v41  ;;  %3942 = vmax.xlane.f32.xlu0 %v3941_v33  ;;  %v9340_v41 = vadd.f32 %v9242_v52, %v3920_v48  ;;  %v3922_v58 = vmul.f32 0.5, %v3886_v50  ;;  %v9351_v52 = vadd.f32 %v6911_v36, %v3924_v62 }
 0xe40   :  { %v3906_v37 = vpop.f32.mrf.mxu0 }
 0xe41   :  { %v9347_v32 = vadd.f32 %v9262_v49, %v3922_v58  ;;  %v3956_v29 = vsel %vm895_vm6, %v9340_v41, -inf  ;;  %v3926_v50 = vmul.f32 0.5, %v3906_v37 }
 0xe42   :  { %v6371_v7 = vpop.f32.mrf.mxu0 }
 0xe43   :  { %3945 = vmax.xlane.f32.xlu1 %v3944_v25  ;;  %3948 = vmax.xlane.f32.xlu0 %v3947_v11  ;;  %v3962_v25 = vsel %vm895_vm6, %v9347_v32, -inf  ;;  %v9355_v48 = vadd.f32 %v6913_v43, %v3926_v50  ;;  %v3968_v11 = vsel %vm895_vm6, %v9351_v52, -inf  ;;  %v9367_v43 = vpop.permute.xlu0 %4098 }
 0xe44   :  { %v3911_v34 = vpop.f32.mrf.mxu0 }
 0xe45   :  { %v3927_v7 = vmul.f32 0.5, %v3911_v34  ;;  %v3974_v63 = vsel %vm895_vm6, %v9355_v48, -inf }
 0xe46   :  { %v6374_v33 = vpop.f32.mrf.mxu0 }
 0xe47   :  { %3951 = vmax.xlane.f32.xlu1 %v3950_v16  ;;  %3954 = vmax.xlane.f32.xlu0 %v3953_v10  ;;  %v9359_v49 = vadd.f32 %v6914_v5, %v3927_v7  ;;  %v9369_v37 = vpop.permute.xlu0 %4108  ;;  %v3921_v5 = vmul.f32 0.5, %v9283_v55  ;;  %v3925_v55 = vmul.f32 0.5, %v3901_v4 }
 0xe49   :  { %v3977_v36 = vsel %vm932_vm7, %v9359_v49, -inf  ;;  %v9375_v62 = vadd.f32 %v9252_v26, %v3921_v5 }
 0xe4b   :  { %3957 = vmax.xlane.f32.xlu1 %v3956_v29  ;;  %v3923_v29 = vmul.f32 0.5, %v9290_v8  ;;  %v3959_v7 = vsel %vm895_vm6, %v9375_v62, -inf  ;;  %v9386_v8 = vadd.f32 %v9295_v30, %v3925_v55 }
 0xe4f   :  { %3963 = vmax.xlane.f32.xlu1 %v3962_v25 }
 0xe53   :  { %3969 = vmax.xlane.f32.xlu1 %v3968_v11 }
 0xe57   :  { %3975 = vmax.xlane.f32.xlu1 %v3974_v63 }
 0xe5b   :  { %3978 = vmax.xlane.f32.xlu1 %v3977_v36 }
 0xe5d   :  { %4088 = vrot.lane.b32.xlu0 %v8859_v56, %s6921_s26 }
 0xe6f   :  { %v3318_v34 = vpop.xlane.xlu1 %3317 }
 0xe70   :  { %v3355_v58 = vsub.f32 %v9195_v2, %v3318_v34  ;;  %v9382_v2 = vadd.f32 %v9272_v14, %v3923_v29 }
 0xe72   :  { %v3368_v33 = vmul.f32 1.442695, %v3355_v58  ;;  %v3971_v58 = vsel %vm895_vm6, %v9386_v8, -inf }
 0xe73   :  { %v3321_v16 = vpop.xlane.xlu0 %3320 }
 0xe74   :  { %v3356_v10 = vsub.f32 %v9205_v38, %v3321_v16  ;;  %6746 = vpow2.f32 %v3368_v33 }
 0xe76   :  { %v3370_v56 = vmul.f32 1.442695, %v3356_v10 }
 0xe77   :  { %v3324_v50 = vpop.xlane.xlu0 %3323 }
 0xe78   :  { %v3357_v25 = vsub.f32 %v9215_v13, %v3324_v50  ;;  %6748 = vpow2.f32 %v3370_v56  ;;  %v3965_v13 = vsel %vm895_vm6, %v9382_v2, -inf }
 0xe7a   :  { %v3372_v11 = vmul.f32 1.442695, %v3357_v25 }
 0xe7b   :  { %v3327_v38 = vpop.xlane.xlu0 %3326 }
 0xe7c   :  { %v3358_v26 = vsub.f32 %v9225_v46, %v3327_v38  ;;  %3960 = vmax.xlane.f32.xlu0 %v3959_v7  ;;  %6750 = vpow2.f32 %v3372_v11 }
 0xe7e   :  { %v3374_v63 = vmul.f32 1.442695, %v3358_v26 }
 0xe7f   :  { %v3330_v36 = vpop.xlane.xlu1 %3329 }
 0xe80   :  { %v3359_v34 = vsub.f32 %v9235_v39, %v3330_v36  ;;  %3966 = vmax.xlane.f32.xlu0 %v3965_v13  ;;  %6752 = vpow2.f32 %v3374_v63 }
 0xe81   :  { %v9393_v46 = vpop.eup %6746 }
 0xe82   :  { %v3376_v14 = vmul.f32 1.442695, %v3359_v34  ;;  %v3394_v16 = vsel %vm895_vm6, %v9393_v46, 0.0 }
 0xe83   :  { %v3333_v4 = vpop.xlane.xlu0 %3332 }
 0xe84   :  { %6754 = vpow2.f32 %v3376_v14  ;;  %v3360_v30 = vsub.f32 %v9245_v59, %v3333_v4  ;;  %3972 = vmax.xlane.f32.xlu0 %v3971_v58 }
 0xe85   :  { %v9398_v10 = vpop.eup %6748 }
 0xe86   :  { %v3378_v5 = vmul.f32 1.442695, %v3360_v30  ;;  %v3397_v50 = vsel %vm895_vm6, %v9398_v10, 0.0 }
 0xe87   :  { %v3336_v33 = vpop.xlane.xlu1 %3335 }
 0xe88   :  { %6756 = vpow2.f32 %v3378_v5  ;;  %v3361_v39 = vsub.f32 %v9255_v60, %v3336_v33  ;;  %3395 = vadd.xlane.f32.xlu0 %v3394_v16 }
 0xe89   :  { %v9403_v25 = vpop.eup %6750 }
 0xe8a   :  { %v3380_v29 = vmul.f32 1.442695, %v3361_v39  ;;  %v3400_v11 = vsel %vm895_vm6, %v9403_v25, 0.0 }
 0xe8b   :  { %v3339_v56 = vpop.xlane.xlu0 %3338 }
 0xe8c   :  { %6758 = vpow2.f32 %v3380_v29  ;;  %v3362_v59 = vsub.f32 %v9265_v9, %v3339_v56  ;;  %3398 = vadd.xlane.f32.xlu0 %v3397_v50 }
 0xe8d   :  { %v9408_v38 = vpop.eup %6752 }
 0xe8e   :  { %v3382_v7 = vmul.f32 1.442695, %v3362_v59  ;;  %v3403_v9 = vsel %vm895_vm6, %v9408_v38, 0.0 }
 0xe8f   :  { %v3342_v55 = vpop.xlane.xlu1 %3341  ;;  %v9433_v33 = vpop.permute.xlu0 %4090 }
 0xe90   :  { %6760 = vpow2.f32 %v3382_v7  ;;  %v3363_v60 = vsub.f32 %v9275_v53, %v3342_v55  ;;  %3401 = vadd.xlane.f32.xlu0 %v3400_v11 }
 0xe91   :  { %v9411_v26 = vpop.eup %6754 }
 0xe92   :  { %v3384_v63 = vmul.f32 1.442695, %v3363_v60  ;;  %v3406_v36 = vsel %vm895_vm6, %v9411_v26, 0.0 }
 0xe93   :  { %3407 = vadd.xlane.f32.xlu1 %v3406_v36  ;;  %v9435_v16 = vpop.permute.xlu1 %4092 }
 0xe94   :  { %6762 = vpow2.f32 %v3384_v63  ;;  %3404 = vadd.xlane.f32.xlu0 %v3403_v9 }
 0xe95   :  { %v9417_v13 = vpop.eup %6756 }
 0xe96   :  { %v3409_v34 = vsel %vm895_vm6, %v9417_v13, 0.0 }
 0xe98   :  { %3410 = vadd.xlane.f32.xlu0 %v3409_v34 }
 0xe99   :  { %v9421_v53 = vpop.eup %6758 }
 0xe9a   :  { %v3412_v14 = vsel %vm895_vm6, %v9421_v53, 0.0 }
 0xe9b   :  { %3413 = vadd.xlane.f32.xlu1 %v3412_v14 }
 0xe9d   :  { %v9425_v4 = vpop.eup %6760 }
 0xe9e   :  { %v3415_v58 = vsel %vm895_vm6, %v9425_v4, 0.0 }
 0xe9f   :  { %3416 = vadd.xlane.f32.xlu0 %v3415_v58 }
 0xea1   :  { %v9429_v30 = vpop.eup %6762 }
 0xea2   :  { %v3418_v5 = vsel %vm895_vm6, %v9429_v30, 0.0 }
 0xea3   :  { %3419 = vadd.xlane.f32.xlu1 %v3418_v5 }
 0xec0   :  { %v3345_v39 = vpop.xlane.xlu0 %3344 }
 0xec1   :  { %v3364_v29 = vsub.f32 %v9288_v23, %v3345_v39 }
 0xec3   :  { %v3386_v56 = vmul.f32 1.442695, %v3364_v29 }
 0xec4   :  { %v3348_v50 = vpop.xlane.xlu1 %3347  ;;  %v3351_v59 = vpop.xlane.xlu0 %3350 }
 0xec5   :  { %6764 = vpow2.f32 %v3386_v56  ;;  %v3365_v7 = vsub.f32 %v9298_v24, %v3348_v50  ;;  %v3366_v55 = vsub.f32 %v9303_v18, %v3351_v59 }
 0xec7   :  { %v3388_v11 = vmul.f32 1.442695, %v3365_v7  ;;  %v3390_v60 = vmul.f32 1.442695, %v3366_v55 }
 0xec8   :  { %v3354_v63 = vpop.xlane.xlu1 %3353  ;;  %v3943_v36 = vpop.xlane.xlu0 %3942 }
 0xec9   :  { %6766 = vpow2.f32 %v3388_v11  ;;  %v3367_v9 = vsub.f32 %v9310_v57, %v3354_v63  ;;  %v3980_v34 = vsub.f32 %v9313_v35, %v3943_v36 }
 0xeca   :  { %6768 = vpow2.f32 %v3390_v60 }
 0xecb   :  { %v3392_v14 = vmul.f32 1.442695, %v3367_v9  ;;  %v3993_v5 = vmul.f32 1.442695, %v3980_v34 }
 0xecc   :  { %v3946_v23 = vpop.xlane.xlu1 %3945  ;;  %v3949_v58 = vpop.xlane.xlu0 %3948 }
 0xecd   :  { %v3982_v39 = vsub.f32 %v9325_v45, %v3949_v58  ;;  %6770 = vpow2.f32 %v3392_v14  ;;  %v3981_v24 = vsub.f32 %v9320_v44, %v3946_v23 }
 0xece   :  { %6772 = vpow2.f32 %v3993_v5 }
 0xecf   :  { %v3997_v18 = vmul.f32 1.442695, %v3982_v39  ;;  %v3995_v35 = vmul.f32 1.442695, %v3981_v24 }
 0xed0   :  { %v3952_v29 = vpop.xlane.xlu1 %3951  ;;  %v3955_v56 = vpop.xlane.xlu0 %3954 }
 0xed1   :  { %v3984_v50 = vsub.f32 %v9335_v31, %v3955_v56  ;;  %6774 = vpow2.f32 %v3997_v18  ;;  %v3983_v57 = vsub.f32 %v9332_v54, %v3952_v29 }
 0xed2   :  { %v9445_v59 = vpop.eup %6764 }
 0xed3   :  { %v4001_v7 = vmul.f32 1.442695, %v3984_v50  ;;  %v3421_v55 = vsel %vm895_vm6, %v9445_v59, 0.0  ;;  %v3999_v44 = vmul.f32 1.442695, %v3983_v57 }
 0xed4   :  { %v3958_v45 = vpop.xlane.xlu1 %3957  ;;  %3422 = vadd.xlane.f32.xlu1 %v3421_v55 }
 0xed5   :  { %6776 = vpow2.f32 %v4001_v7  ;;  %v3985_v60 = vsub.f32 %v9340_v41, %v3958_v45  ;;  %v9489_v7 = vpop.permute.xlu0 %4088 }
 0xed6   :  { %v9450_v11 = vpop.eup %6766  ;;  %6778 = vpow2.f32 %v3995_v35 }
 0xed7   :  { %v3424_v31 = vsel %vm895_vm6, %v9450_v11, 0.0  ;;  %v9455_v63 = vpop.eup %6768  ;;  %6780 = vpow2.f32 %v3999_v44  ;;  %v4003_v54 = vmul.f32 1.442695, %v3985_v60 }
 0xed8   :  { %3425 = vadd.xlane.f32.xlu1 %v3424_v31  ;;  %v3427_v36 = vsel %vm895_vm6, %v9455_v63, 0.0  ;;  %v3964_v57 = vpop.xlane.xlu1 %3963 }
 0xed9   :  { %6782 = vpow2.f32 %v4003_v54  ;;  %v3987_v55 = vsub.f32 %v9347_v32, %v3964_v57 }
 0xeda   :  { %v9459_v9 = vpop.eup %6770 }
 0xedb   :  { %v9461_v34 = vpop.eup %6772  ;;  %v3430_v41 = vsel %vm932_vm7, %v9459_v9, 0.0  ;;  %v4007_v44 = vmul.f32 1.442695, %v3987_v55 }
 0xedc   :  { %3428 = vadd.xlane.f32.xlu1 %v3427_v36  ;;  %v4019_v5 = vsel %vm895_vm6, %v9461_v34, 0.0  ;;  %v3970_v45 = vpop.xlane.xlu1 %3969 }
 0xedd   :  { %v3989_v60 = vsub.f32 %v9351_v52, %v3970_v45  ;;  %6784 = vpow2.f32 %v4007_v44 }
 0xede   :  { %v9463_v14 = vpop.eup %6774 }
 0xedf   :  { %v4025_v23 = vsel %vm895_vm6, %v9463_v14, 0.0 }
 0xee0   :  { %3431 = vadd.xlane.f32.xlu1 %v3430_v41  ;;  %4026 = vadd.xlane.f32.xlu0 %v4025_v23  ;;  %v3976_v36 = vpop.xlane.xlu1 %3975  ;;  %v4011_v23 = vmul.f32 1.442695, %v3989_v60 }
 0xee2   :  { %v9469_v58 = vpop.eup %6776 }
 0xee3   :  { %v9473_v39 = vpop.eup %6778  ;;  %v4031_v24 = vsel %vm895_vm6, %v9469_v58, 0.0 }
 0xee4   :  { %4020 = vadd.xlane.f32.xlu1 %v4019_v5  ;;  %4032 = vadd.xlane.f32.xlu0 %v4031_v24  ;;  %v4022_v18 = vsel %vm895_vm6, %v9473_v39, 0.0  ;;  %v9479_v29 = vpop.eup %6780 }
 0xee5   :  { %v4028_v56 = vsel %vm895_vm6, %v9479_v29, 0.0 }
 0xee6   :  { %v9483_v50 = vpop.eup %6782 }
 0xee7   :  { %v4034_v35 = vsel %vm895_vm6, %v9483_v50, 0.0 }
 0xee8   :  { %4023 = vadd.xlane.f32.xlu1 %v4022_v18  ;;  %v3979_v18 = vpop.xlane.xlu1 %3978 }
 0xee9   :  { %v3992_v52 = vsub.f32 %v9359_v49, %v3979_v18 }
 0xeea   :  { %v9499_v45 = vpop.eup %6784 }
 0xeec   :  { %4029 = vadd.xlane.f32.xlu1 %v4028_v56 }
 0xef0   :  { %4035 = vadd.xlane.f32.xlu1 %v4034_v35 }
 0xefa   :  { %4086 = vrot.lane.b32.xlu0 %v8869_v27, %s6921_s26  ;;  %v3991_v27 = vsub.f32 %v9355_v48, %v3976_v36 }
 0xefc   :  { %v4015_v35 = vmul.f32 1.442695, %v3991_v27 }
 0xf05   :  { %v3961_v31 = vpop.xlane.xlu0 %3960 }
 0xf06   :  { %v3986_v54 = vsub.f32 %v9375_v62, %v3961_v31  ;;  %v4017_v62 = vmul.f32 1.442695, %v3992_v52 }
 0xf08   :  { %v4005_v41 = vmul.f32 1.442695, %v3986_v54 }
 0xf09   :  { %v9494_v5 = vpop.xlane.xlu0 %3966 }
 0xf0a   :  { %6786 = vpow2.f32 %v4005_v41 }
 0xf0b   :  { %6788 = vpow2.f32 %v4011_v23 }
 0xf0d   :  { %v3973_v24 = vpop.xlane.xlu0 %3972 }
 0xf0e   :  { %v3990_v32 = vsub.f32 %v9386_v8, %v3973_v24  ;;  %v4040_v8 = vsel %vm895_vm6, %v9499_v45, 0.0 }
 0xf10   :  { %v4013_v56 = vmul.f32 1.442695, %v3990_v32 }
 0xf11   :  { %v3396_v57 = vpop.xlane.xlu0 %3395 }
 0xf12   :  { %6790 = vpow2.f32 %v4013_v56 }
 0xf13   :  { %6792 = vrcp.f32 %v3396_v57 }
 0xf14   :  { %6794 = vpow2.f32 %v4015_v35 }
 0xf15   :  { %v3399_v55 = vpop.xlane.xlu0 %3398 }
 0xf16   :  { %6796 = vrcp.f32 %v3399_v55 }
 0xf17   :  { %v9501_v44 = vpop.eup %6786  ;;  %6798 = vpow2.f32 %v4017_v62 }
 0xf18   :  { %v4037_v48 = vsel %vm895_vm6, %v9501_v44, 0.0  ;;  %v9507_v49 = vpop.eup %6788 }
 0xf19   :  { %v3402_v60 = vpop.xlane.xlu0 %3401  ;;  %4038 = vadd.xlane.f32.xlu1 %v4037_v48  ;;  %4041 = vadd.xlane.f32.xlu0 %v4040_v8  ;;  %v4046_v31 = vsel %vm895_vm6, %v9507_v49, 0.0 }
 0xf1a   :  { %6800 = vrcp.f32 %v3402_v60 }
 0xf1c   :  { %v3408_v36 = vpop.xlane.xlu1 %3407 }
 0xf1d   :  { %v3405_v54 = vpop.xlane.xlu0 %3404  ;;  %4047 = vadd.xlane.f32.xlu0 %v4046_v31 }
 0xf1e   :  { %6802 = vrcp.f32 %v3405_v54 }
 0xf1f   :  { %v9511_v41 = vpop.eup %6790  ;;  %6804 = vrcp.f32 %v3408_v36 }
 0xf20   :  { %v6793_v23 = vpop.eup %6792  ;;  %v4049_v27 = vsel %vm895_vm6, %v9511_v41, 0.0 }
 0xf21   :  { %v3434_v24 = vmul.f32 %v6793_v23, %v9393_v46  ;;  %v9516_v18 = vpop.eup %6794  ;;  %4050 = vadd.xlane.f32.xlu0 %v4049_v27  ;;  %v3411_v32 = vpop.xlane.xlu0 %3410 }
 0xf22   :  { %6806 = vrcp.f32 %v3411_v32  ;;  %v4052_v46 = vsel %vm895_vm6, %v9516_v18, 0.0 }
 0xf23   :  { %v6797_v56 = vpop.eup %6796  ;;  %6272 = vmatmul.mubr.msk.f32.vlgmr.msra.gmra.mxu1 %vm895_vm6, %v3434_v24 }
 0xf24   :  { %6376 = vmatpush3.msk.msra.mxu1 %vm1117_vm5, %v9369_v37  ;;  %6274 = vmatprep.mubr.msk.f32.mxu1 %vm6916_vm0, %v10132_v15  ;;  %v3436_v35 = vmul.f32 %v6797_v56, %v9398_v10  ;;  %v9527_v52 = vpop.eup %6798  ;;  %v3414_v57 = vpop.xlane.xlu1 %3413 }
 0xf25   :  { %6377 = vmatprep.subr.mxu1 %v10132_v15  ;;  %4053 = vadd.xlane.f32.xlu0 %v4052_v46  ;;  %6808 = vrcp.f32 %v3414_v57 }
 0xf26   :  { %6378 = vmatpush3.msra.mxu1 %v9089_v12  ;;  %v4055_v12 = vsel %vm932_vm7, %v9527_v52, 0.0 }
 0xf27   :  { %v6801_v62 = vpop.eup %6800  ;;  %6379 = vmatprep.subr.mxu1 %v10132_v15  ;;  %6275 = vmatmul.mubr.msk.f32.gmra.mxu1 %vm895_vm6, %v3436_v35 }
 0xf28   :  { %6380 = vmatpush3.msra.mxu1 %v9098_v19  ;;  %6277 = vmatprep.mubr.msk.f32.mxu1 %vm6916_vm0, %v10132_v15  ;;  %v3438_v37 = vmul.f32 %v6801_v62, %v9403_v25  ;;  %v3417_v10 = vpop.xlane.xlu0 %3416 }
 0xf29   :  { %6381 = vmatprep.subr.mxu1 %v10132_v15  ;;  %4056 = vadd.xlane.f32.xlu0 %v4055_v12  ;;  %6810 = vrcp.f32 %v3417_v10 }
 0xf2a   :  { %6382 = vmatpush3.msra.mxu1 %v9107_v6  ;;  %4084 = vrot.lane.b32.xlu1 %v8867_v1, %s6921_s26 }
 0xf2b   :  { %v6803_v55 = vpop.eup %6802  ;;  %6383 = vmatprep.subr.mxu1 %v10132_v15  ;;  %6278 = vmatmul.mubr.msk.f32.gmra.mxu1 %vm895_vm6, %v3438_v37 }
 0xf2c   :  { %6384 = vmatpush3.msra.mxu1 %v9116_v21  ;;  %v3440_v19 = vmul.f32 %v6803_v55, %v9408_v38  ;;  %6280 = vmatprep.mubr.msk.f32.mxu1 %vm6916_vm0, %v10132_v15  ;;  %v6805_v6 = vpop.eup %6804  ;;  %v3420_v25 = vpop.xlane.xlu1 %3419  ;;  %v3988_v38 = vsub.f32 %v9382_v2, %v9494_v5 }
 0xf2d   :  { %6385 = vmatprep.subr.mxu1 %v10132_v15  ;;  %6812 = vrcp.f32 %v3420_v25  ;;  %v3442_v1 = vmul.f32 %v6805_v6, %v9411_v26 }
 0xf2e   :  { %6386 = vmatpush3.msra.mxu1 %v9367_v43 }
 0xf2f   :  { %6387 = vmatprep.subr.mxu1 %v10132_v15  ;;  %6281 = vmatmul.mubr.msk.f32.gmra.mxu1 %vm895_vm6, %v3440_v19  ;;  %v6807_v21 = vpop.eup %6806 }
 0xf30   :  { %6388 = vmatpush3.msra.mxu1 %v9122_v28  ;;  %6283 = vmatprep.mubr.msk.f32.mxu1 %vm6916_vm0, %v10132_v15  ;;  %v3444_v28 = vmul.f32 %v6807_v21, %v9417_v13  ;;  %v4009_v13 = vmul.f32 1.442695, %v3988_v38 }
 0xf31   :  { %6389 = vmatprep.subr.mxu1 %v10132_v15 }
 0xf32   :  { %6390 = vmatpush3.msra.mxu1 %v9128_v61  ;;  %v6809_v43 = vpop.eup %6808  ;;  %6814 = vpow2.f32 %v4009_v13 }
 0xf33   :  { %6391 = vmatprep.subr.mxu1 %v10132_v15  ;;  %6284 = vmatmul.mubr.msk.f32.gmra.mxu1 %vm895_vm6, %v3442_v1  ;;  %v3446_v61 = vmul.f32 %v6809_v43, %v9421_v53 }
 0xf34   :  { %6392 = vmatpush3.msra.mxu1 %v9435_v16  ;;  %6286 = vmatprep.mubr.msk.f32.mxu1 %vm6916_vm0, %v10132_v15 }
 0xf35   :  { %6393 = vmatprep.subr.mxu1 %v10132_v15 }
 0xf36   :  { %6394 = vmatpush3.msra.mxu1 %v9433_v33  ;;  %v6811_v26 = vpop.eup %6810 }
 0xf37   :  { %6395 = vmatprep.subr.mxu1 %v10132_v15  ;;  %6287 = vmatmul.mubr.msk.f32.gmra.mxu1 %vm895_vm6, %v3444_v28  ;;  %v3448_v2 = vmul.f32 %v6811_v26, %v9425_v4 }
 0xf38   :  { %6396 = vmatpush3.msra.mxu1 %v9489_v7  ;;  %6289 = vmatprep.mubr.msk.f32.mxu1 %vm6916_vm0, %v10132_v15 }
 0xf39   :  { %6397 = vmatprep.subr.mxu1 %v10132_v15 }
 0xf3a   :  { %v6813_v33 = vpop.eup %6812 }
 0xf3b   :  { %6290 = vmatmul.mubr.msk.f32.gmra.mxu1 %vm895_vm6, %v3446_v61  ;;  %v3450_v53 = vmul.f32 %v6813_v33, %v9429_v30 }
 0xf3c   :  { %6292 = vmatprep.mubr.msk.f32.mxu1 %vm6916_vm0, %v10132_v15 }
 0xf3f   :  { %6293 = vmatmul.mubr.msk.f32.gmra.mxu1 %vm895_vm6, %v3448_v2  ;;  %v9586_v16 = vpop.eup %6814 }
 0xf40   :  { %6295 = vmatprep.mubr.msk.f32.mxu1 %vm6916_vm0, %v10132_v15  ;;  %v4043_v7 = vsel %vm895_vm6, %v9586_v16, 0.0 }
 0xf43   :  { %6296 = vmatmul.mubr.msk.f32.gmra.mxu1 %vm895_vm6, %v3450_v53 }
 0xf44   :  { %6298 = vmatprep.mubr.msk.f32.mxu1 %vm6916_vm0, %v10132_v15 }
 0xf4e   :  { %4044 = vadd.xlane.f32.xlu1 %v4043_v7 }
 0xf5d   :  { %v3423_v4 = vpop.xlane.xlu1 %3422 }
 0xf5e   :  { %6816 = vrcp.f32 %v3423_v4 }
 0xf61   :  { %v3426_v5 = vpop.xlane.xlu1 %3425 }
 0xf62   :  { %6818 = vrcp.f32 %v3426_v5 }
 0xf65   :  { %v3429_v48 = vpop.xlane.xlu1 %3428 }
 0xf66   :  { %6820 = vrcp.f32 %v3429_v48 }
 0xf69   :  { %v3432_v8 = vpop.xlane.xlu1 %3431  ;;  %v4027_v60 = vpop.xlane.xlu0 %4026 }
 0xf6a   :  { %6822 = vrcp.f32 %v3432_v8 }
 0xf6b   :  { %v6817_v30 = vpop.eup %6816 }
 0xf6c   :  { %v3452_v31 = vmul.f32 %v6817_v30, %v9445_v59 }
 0xf6d   :  { %v4033_v54 = vpop.xlane.xlu0 %4032  ;;  %v4021_v56 = vpop.xlane.xlu1 %4020 }
 0xf6e   :  { %6299 = vmatmul.mubr.msk.f32.gmra.mxu1 %vm895_vm6, %v3452_v31  ;;  %6824 = vrcp.f32 %v4021_v56 }
 0xf6f   :  { %v6819_v36 = vpop.eup %6818  ;;  %6301 = vmatprep.mubr.msk.f32.mxu1 %vm6916_vm0, %v10132_v15 }
 0xf70   :  { %v3454_v23 = vmul.f32 %v6819_v36, %v9450_v11 }
 0xf71   :  { %v4087_v27 = vpop.permute.xlu0 %4086  ;;  %v4024_v35 = vpop.xlane.xlu1 %4023 }
 0xf72   :  { %6302 = vmatmul.mubr.msk.f32.gmra.mxu1 %vm895_vm6, %v3454_v23  ;;  %6826 = vrcp.f32 %v4024_v35 }
 0xf73   :  { %v6821_v24 = vpop.eup %6820  ;;  %6398 = vmatpush3.msra.mxu1 %v4087_v27  ;;  %6304 = vmatprep.mubr.msk.f32.mxu1 %vm6916_vm0, %v10132_v15  ;;  %6828 = vrcp.f32 %v4027_v60 }
 0xf74   :  { %v3456_v32 = vmul.f32 %v6821_v24, %v9455_v63  ;;  %6399 = vmatprep.subr.mxu1 %v10132_v15 }
 0xf75   :  { %v4030_v46 = vpop.xlane.xlu1 %4029 }
 0xf76   :  { %6305 = vmatmul.mubr.msk.f32.gmra.mxu1 %vm895_vm6, %v3456_v32  ;;  %6830 = vrcp.f32 %v4030_v46 }
 0xf77   :  { %v6823_v59 = vpop.eup %6822  ;;  %6307 = vmatprep.mubr.msk.f32.mxu1 %vm6916_vm0, %v10132_v15  ;;  %6832 = vrcp.f32 %v4033_v54 }
 0xf78   :  { %v3458_v11 = vmul.f32 %v6823_v59, %v9459_v9 }
 0xf79   :  { %v4036_v63 = vpop.xlane.xlu1 %4035 }
 0xf7a   :  { %6308 = vmatmul.mubr.msk.f32.gmra.mxu1 %vm895_vm6, %v3458_v11  ;;  %6834 = vrcp.f32 %v4036_v63 }
 0xf7b   :  { %6401 = vmatprep.mubr.msk.f32.mxu1 %vm6916_vm0, %v10132_v15  ;;  %v6825_v62 = vpop.eup %6824 }
 0xf7c   :  { %v4059_v37 = vmul.f32 %v6825_v62, %v9461_v34 }
 0xf7f   :  { %v6827_v9 = vpop.eup %6826 }
 0xf80   :  { %v4061_v10 = vmul.f32 %v6827_v9, %v9473_v39  ;;  %v6829_v55 = vpop.eup %6828 }
 0xf81   :  { %v4063_v34 = vmul.f32 %v6829_v55, %v9463_v14 }
 0xf83   :  { %v6831_v19 = vpop.eup %6830 }
 0xf84   :  { %v4065_v25 = vmul.f32 %v6831_v19, %v9479_v29  ;;  %v6833_v39 = vpop.eup %6832 }
 0xf85   :  { %v4067_v1 = vmul.f32 %v6833_v39, %v9469_v58 }
 0xf87   :  { %v6835_v21 = vpop.eup %6834 }
 0xf88   :  { %v4069_v14 = vmul.f32 %v6835_v21, %v9483_v50 }
 0xfa2   :  { %v4039_v57 = vpop.xlane.xlu1 %4038  ;;  %v4042_v6 = vpop.xlane.xlu0 %4041 }
 0xfa3   :  { %6836 = vrcp.f32 %v4039_v57 }
 0xfa4   :  { %6838 = vrcp.f32 %v4042_v6 }
 0xfa6   :  { %v4085_v12 = vpop.permute.xlu1 %4084  ;;  %v4048_v50 = vpop.xlane.xlu0 %4047 }
 0xfa7   :  { %6400 = vmatpush3.msra.mxu1 %v4085_v12 }
 0xfa8   :  { %6402 = vmatmul.mubr.msk.f32.vlgmr.msra.gmra.mxu1 %vm895_vm6, %v4059_v37  ;;  %6481 = vmatprep.subr.mxu1 %v10132_v15 }
 0xfa9   :  { %6404 = vmatprep.mubr.msk.f32.mxu1 %vm6916_vm0, %v10132_v15 }
 0xfaa   :  { %v4051_v38 = vpop.xlane.xlu0 %4050 }
 0xfac   :  { %6405 = vmatmul.mubr.msk.f32.gmra.mxu1 %vm895_vm6, %v4061_v10 }
 0xfad   :  { %6407 = vmatprep.mubr.msk.f32.mxu1 %vm6916_vm0, %v10132_v15 }
 0xfae   :  { %v4054_v26 = vpop.xlane.xlu0 %4053 }
 0xfb0   :  { %6408 = vmatmul.mubr.msk.f32.gmra.mxu1 %vm895_vm6, %v4063_v34  ;;  %v6837_v28 = vpop.eup %6836 }
 0xfb1   :  { %6410 = vmatprep.mubr.msk.f32.mxu1 %vm6916_vm0, %v10132_v15  ;;  %v4071_v29 = vmul.f32 %v6837_v28, %v9501_v44  ;;  %v6839_v43 = vpop.eup %6838 }
 0xfb2   :  { %v4073_v58 = vmul.f32 %v6839_v43, %v9499_v45  ;;  %v4057_v13 = vpop.xlane.xlu0 %4056 }
 0xfb4   :  { %6411 = vmatmul.mubr.msk.f32.gmra.mxu1 %vm895_vm6, %v4065_v25 }
 0xfb5   :  { %6413 = vmatprep.mubr.msk.f32.mxu1 %vm6916_vm0, %v10132_v15 }
 0xfb8   :  { %6414 = vmatmul.mubr.msk.f32.gmra.mxu1 %vm895_vm6, %v4067_v1 }
 0xfb9   :  { %6416 = vmatprep.mubr.msk.f32.mxu1 %vm6916_vm0, %v10132_v15 }
 0xfbc   :  { %6417 = vmatmul.mubr.msk.f32.gmra.mxu1 %vm895_vm6, %v4069_v14 }
 0xfbd   :  { %6419 = vmatprep.mubr.msk.f32.mxu1 %vm6916_vm0, %v10132_v15 }
 0xfc0   :  { %6420 = vmatmul.mubr.msk.f32.gmra.mxu1 %vm895_vm6, %v4071_v29 }
 0xfc1   :  { %6422 = vmatprep.mubr.msk.f32.mxu1 %vm6916_vm0, %v10132_v15 }
 0xfc4   :  { %6423 = vmatmul.mubr.msk.f32.gmra.mxu1 %vm895_vm6, %v4073_v58 }
 0xfc5   :  { %6425 = vmatprep.mubr.msk.f32.mxu1 %vm6916_vm0, %v10132_v15 }
 0xfd7   :  { %v4045_v61 = vpop.xlane.xlu1 %4044 }
 0xfd8   :  { %6840 = vrcp.f32 %v4045_v61 }
 0xfd9   :  { %6842 = vrcp.f32 %v4048_v50 }
 0xfda   :  { %6844 = vrcp.f32 %v4051_v38 }
 0xfdb   :  { %6846 = vrcp.f32 %v4054_v26 }
 0xfdc   :  { %6848 = vrcp.f32 %v4057_v13 }
 0xfe3   :  { %v3604_v44 = vpop.f32.mrf.mxu1 }
 0xfe4   :  { %3668 = vst.msk [vmem:[#allocation2] sm:$0xff] %vm686_vm4, %v3604_v44 }
 0xfe5   :  { %v6273_v2 = vpop.f32.mrf.mxu1  ;;  %v6841_v33 = vpop.eup %6840 }
 0xfe6   :  { %v4075_v53 = vmul.f32 %v6841_v33, %v9586_v16  ;;  %v6843_v7 = vpop.eup %6842 }
 0xfe7   :  { %v3609_v45 = vpop.f32.mrf.mxu1  ;;  %v4077_v48 = vmul.f32 %v6843_v7, %v9507_v49  ;;  %v6845_v8 = vpop.eup %6844 }
 0xfe8   :  { %3669 = vst.msk [vmem:[#allocation2 + $0x8] sm:$0xff] %vm686_vm4, %v3609_v45  ;;  %6426 = vmatmul.mubr.msk.f32.gmra.mxu1 %vm895_vm6, %v4075_v53  ;;  %v4079_v16 = vmul.f32 %v6845_v8, %v9511_v41  ;;  %v6847_v31 = vpop.eup %6846 }
 0xfe9   :  { %v6276_v4 = vpop.f32.mrf.mxu1  ;;  %6428 = vmatprep.mubr.msk.f32.mxu1 %vm6916_vm0, %v10132_v15  ;;  %v4081_v49 = vmul.f32 %v6847_v31, %v9516_v18  ;;  %v6849_v23 = vpop.eup %6848 }
 0xfea   :  { %v4083_v41 = vmul.f32 %v6849_v23, %v9527_v52 }
 0xfeb   :  { %v3614_v5 = vpop.f32.mrf.mxu1 }
 0xfec   :  { %3670 = vst.msk [vmem:[#allocation2 + $0x10] sm:$0xff] %vm686_vm4, %v3614_v5  ;;  %6429 = vmatmul.mubr.msk.f32.gmra.mxu1 %vm895_vm6, %v4077_v48 }
 0xfed   :  { %v6279_v60 = vpop.f32.mrf.mxu1  ;;  %6431 = vmatprep.mubr.msk.f32.mxu1 %vm6916_vm0, %v10132_v15 }
 0xfef   :  { %v3619_v30 = vpop.f32.mrf.mxu1 }
 0xff0   :  { %3671 = vst.msk [vmem:[#allocation2 + $0x18] sm:$0xff] %vm686_vm4, %v3619_v30  ;;  %6432 = vmatmul.mubr.msk.f32.gmra.mxu1 %vm895_vm6, %v4079_v16 }
 0xff1   :  { %v6282_v54 = vpop.f32.mrf.mxu1  ;;  %6434 = vmatprep.mubr.msk.f32.mxu1 %vm6916_vm0, %v10132_v15 }
 0xff3   :  { %v3624_v36 = vpop.f32.mrf.mxu1 }
 0xff4   :  { %3672 = vst.msk [vmem:[#allocation2 + $0x20] sm:$0xff] %vm686_vm4, %v3624_v36  ;;  %6435 = vmatmul.mubr.msk.f32.gmra.mxu1 %vm895_vm6, %v4081_v49 }
 0xff5   :  { %v6285_v27 = vpop.f32.mrf.mxu1  ;;  %6437 = vmatprep.mubr.msk.f32.mxu1 %vm6916_vm0, %v10132_v15 }
 0xff7   :  { %v3629_v24 = vpop.f32.mrf.mxu1 }
 0xff8   :  { %3673 = vst.msk [vmem:[#allocation2 + $0x28] sm:$0xff] %vm686_vm4, %v3629_v24  ;;  %6438 = vmatmul.mubr.msk.f32.gmra.mxu1 %vm895_vm6, %v4083_v41 }
 0xff9   :  { %v6288_v32 = vpop.f32.mrf.mxu1  ;;  %6489 = vmatprep.mubr.msk.f32.mxu1 %vm6916_vm0, %v10132_v15 }
 0xffb   :  { %v3634_v59 = vpop.f32.mrf.mxu1 }
 0xffc   :  { %3674 = vst.msk [vmem:[#allocation2 + $0x30] sm:$0xff] %vm686_vm4, %v3634_v59 }
 0xffd   :  { %v6291_v18 = vpop.f32.mrf.mxu1 }
 0xfff   :  { %v3639_v11 = vpop.f32.mrf.mxu1 }
0x1000   :  { %3675 = vst.msk [vmem:[#allocation2 + $0x38] sm:$0xff] %vm686_vm4, %v3639_v11 }
0x1001   :  { %v6294_v56 = vpop.f32.mrf.mxu1 }
0x1003   :  { %v3644_v35 = vpop.f32.mrf.mxu1 }
0x1004   :  { %3676 = vst.msk [vmem:[#allocation2 + $0x40] sm:$0xff] %vm686_vm4, %v3644_v35 }
0x1005   :  { %v6297_v46 = vpop.f32.mrf.mxu1 }
0x102e   :  { %v3649_v63 = vpop.f32.mrf.mxu1 }
0x102f   :  { %3677 = vst.msk [vmem:[#allocation2 + $0x48] sm:$0xff] %vm686_vm4, %v3649_v63 }
0x1030   :  { %v6300_v52 = vpop.f32.mrf.mxu1 }
0x1032   :  { %v3654_v57 = vpop.f32.mrf.mxu1 }
0x1033   :  { %3678 = vst.msk [vmem:[#allocation2 + $0x50] sm:$0xff] %vm686_vm4, %v3654_v57 }
0x1034   :  { %v6303_v62 = vpop.f32.mrf.mxu1 }
0x1036   :  { %v3659_v37 = vpop.f32.mrf.mxu1 }
0x1037   :  { %3679 = vst.msk [vmem:[#allocation2 + $0x58] sm:$0xff] %vm686_vm4, %v3659_v37 }
0x1038   :  { %v6306_v12 = vpop.f32.mrf.mxu1 }
0x103a   :  { %v3664_v9 = vpop.f32.mrf.mxu1 }
0x103b   :  { %3680 = vst.msk [vmem:[#allocation2 + $0x60] sm:$0xf] %vm1262_vm8, %v3664_v9 }
0x103c   :  { %v6309_v10 = vpop.f32.mrf.mxu1 }
0x1068   :  { %v4229_v55 = vpop.f32.mrf.mxu1 }
0x1069   :  { %4306 = vrot.lane.b32.xlu0 %v4229_v55, %s6922_s20 }
0x106a   :  { %v6403_v34 = vpop.f32.mrf.mxu1 }
0x106c   :  { %v4234_v19 = vpop.f32.mrf.mxu1 }
0x106d   :  { %4308 = vrot.lane.b32.xlu1 %v4234_v19, %s6922_s20 }
0x106e   :  { %v6406_v6 = vpop.f32.mrf.mxu1 }
0x1070   :  { %v4239_v25 = vpop.f32.mrf.mxu1 }
0x1071   :  { %4310 = vrot.lane.b32.xlu1 %v4239_v25, %s6922_s20  ;;  %v10140_v25 = vld [vmem:[#allocation3_spill] sm:$0xff] }
0x1072   :  { %v6409_v39 = vpop.f32.mrf.mxu1 }
0x1074   :  { %v4244_v1 = vpop.f32.mrf.mxu1 }
0x1075   :  { %4312 = vrot.lane.b32.xlu0 %v4244_v1, %s6922_s20 }
0x1076   :  { %v6412_v21 = vpop.f32.mrf.mxu1 }
0x1078   :  { %v4249_v14 = vpop.f32.mrf.mxu1 }
0x1079   :  { %4314 = vrot.lane.b32.xlu1 %v4249_v14, %s6922_s20 }
0x107a   :  { %v6415_v28 = vpop.f32.mrf.mxu1 }
0x107c   :  { %v4254_v29 = vpop.f32.mrf.mxu1 }
0x107d   :  { %4316 = vrot.lane.b32.xlu0 %v4254_v29, %s6922_s20 }
0x107e   :  { %v6418_v43 = vpop.f32.mrf.mxu1 }
0x1080   :  { %v4259_v58 = vpop.f32.mrf.mxu1 }
0x1081   :  { %4318 = vrot.lane.b32.xlu1 %v4259_v58, %s6922_s20  ;;  %v10142_v58 = vld [vmem:[#allocation5_spill] sm:$0xff] }
0x1082   :  { %v6421_v50 = vpop.f32.mrf.mxu1 }
0x1084   :  { %v4264_v38 = vpop.f32.mrf.mxu1 }
0x1085   :  { %4320 = vrot.lane.b32.xlu0 %v4264_v38, %s6922_s20 }
0x1086   :  { %v6424_v61 = vpop.f32.mrf.mxu1 }
0x10a8   :  { %v4269_v26 = vpop.f32.mrf.mxu1 }
0x10a9   :  { %4322 = vrot.lane.b32.xlu1 %v4269_v26, %s6922_s20  ;;  %v10143_v26 = vld [vmem:[#allocation6_spill] sm:$0xff] }
0x10aa   :  { %v6427_v44 = vpop.f32.mrf.mxu1 }
0x10ac   :  { %v4274_v13 = vpop.f32.mrf.mxu1 }
0x10ad   :  { %4324 = vrot.lane.b32.xlu0 %v4274_v13, %s6922_s20 }
0x10ae   :  { %v6430_v2 = vpop.f32.mrf.mxu1 }
0x10b0   :  { %v4279_v33 = vpop.f32.mrf.mxu1 }
0x10b1   :  { %4326 = vrot.lane.b32.xlu1 %v4279_v33, %s6922_s20 }
0x10b2   :  { %v6433_v45 = vpop.f32.mrf.mxu1 }
0x10b4   :  { %v4284_v53 = vpop.f32.mrf.mxu1 }
0x10b5   :  { %4328 = vrot.lane.b32.xlu0 %v4284_v53, %s6922_s20 }
0x10b6   :  { %v6436_v7 = vpop.f32.mrf.mxu1 }
0x10b8   :  { %v4289_v4 = vpop.f32.mrf.mxu1 }
0x10b9   :  { %4330 = vrot.lane.b32.xlu1 %v4289_v4, %s6922_s20 }
0x10ba   :  { %v6439_v5 = vpop.f32.mrf.mxu1 }
0x10db   :  { %v4307_v48 = vpop.permute.xlu0 %4306 }
0x10dc   :  { %4345 = vst.msk [vmem:[#allocation2] sm:$0xff] %vm1928_vm9, %v4307_v48 }
0x10df   :  { %v4309_v8 = vpop.permute.xlu1 %4308 }
0x10e0   :  { %4346 = vst.msk [vmem:[#allocation2 + $0x8] sm:$0xff] %vm1928_vm9, %v4309_v8 }
0x10e3   :  { %v4311_v60 = vpop.permute.xlu1 %4310  ;;  %v4358_v30 = vld [vmem:[#allocation2] sm:$0xff] }
0x10e4   :  { %4347 = vst.msk [vmem:[#allocation2 + $0x10] sm:$0xff] %vm1928_vm9, %v4311_v60  ;;  %v9690_v16 = vadd.f32 %v4358_v30, %v8578_v22 }
0x10e6   :  { %v4388_v31 = vsel %vm260_vm2, %v9690_v16, 0.0 }
0x10e7   :  { %v4313_v54 = vpop.permute.xlu0 %4312  ;;  %4389 = vadd.xlane.f32.xlu0 %v4388_v31  ;;  %v4359_v36 = vld [vmem:[#allocation2 + $0x8] sm:$0xff] }
0x10e8   :  { %4348 = vst.msk [vmem:[#allocation2 + $0x18] sm:$0xff] %vm1928_vm9, %v4313_v54  ;;  %v9696_v49 = vadd.f32 %v4359_v36, %v8584_v20 }
0x10ea   :  { %v4391_v23 = vsel %vm260_vm2, %v9696_v49, 0.0 }
0x10eb   :  { %4392 = vadd.xlane.f32.xlu1 %v4391_v23  ;;  %v4315_v27 = vpop.permute.xlu1 %4314  ;;  %v4360_v24 = vld [vmem:[#allocation2 + $0x10] sm:$0xff] }
0x10ec   :  { %4349 = vst.msk [vmem:[#allocation2 + $0x20] sm:$0xff] %vm1928_vm9, %v4315_v27  ;;  %v9702_v22 = vadd.f32 %v4360_v24, %v8590_v47 }
0x10ee   :  { %v4394_v41 = vsel %vm260_vm2, %v9702_v22, 0.0 }
0x10ef   :  { %v4317_v32 = vpop.permute.xlu0 %4316  ;;  %4395 = vadd.xlane.f32.xlu0 %v4394_v41  ;;  %v4361_v59 = vld [vmem:[#allocation2 + $0x18] sm:$0xff] }
0x10f0   :  { %4350 = vst.msk [vmem:[#allocation2 + $0x28] sm:$0xff] %vm1928_vm9, %v4317_v32  ;;  %v9708_v20 = vadd.f32 %v4361_v59, %v8596_v42 }
0x10f2   :  { %v4397_v18 = vsel %vm260_vm2, %v9708_v20, 0.0 }
0x10f3   :  { %4398 = vadd.xlane.f32.xlu0 %v4397_v18  ;;  %v4319_v11 = vpop.permute.xlu1 %4318  ;;  %v4362_v56 = vld [vmem:[#allocation2 + $0x20] sm:$0xff] }
0x10f4   :  { %4351 = vst.msk [vmem:[#allocation2 + $0x30] sm:$0xff] %vm1928_vm9, %v4319_v11  ;;  %v9714_v47 = vadd.f32 %v4362_v56, %v8602_v3 }
0x10f6   :  { %v4400_v35 = vsel %vm260_vm2, %v9714_v47, 0.0 }
0x10f7   :  { %v4321_v46 = vpop.permute.xlu0 %4320  ;;  %4401 = vadd.xlane.f32.xlu0 %v4400_v35  ;;  %v4363_v63 = vld [vmem:[#allocation2 + $0x28] sm:$0xff] }
0x10f8   :  { %4352 = vst.msk [vmem:[#allocation2 + $0x38] sm:$0xff] %vm1928_vm9, %v4321_v46  ;;  %v9720_v42 = vadd.f32 %v4363_v63, %v8608_v17 }
0x10fa   :  { %v4403_v52 = vsel %vm260_vm2, %v9720_v42, 0.0 }
0x10fb   :  { %4404 = vadd.xlane.f32.xlu1 %v4403_v52  ;;  %v4364_v57 = vld [vmem:[#allocation2 + $0x30] sm:$0xff] }
0x10fc   :  { %v9725_v62 = vadd.f32 %v4364_v57, %v8614_v0 }
0x10fe   :  { %v4406_v3 = vsel %vm260_vm2, %v9725_v62, 0.0 }
0x10ff   :  { %4407 = vadd.xlane.f32.xlu0 %v4406_v3  ;;  %v4365_v37 = vld [vmem:[#allocation2 + $0x38] sm:$0xff] }
0x1100   :  { %v9730_v12 = vadd.f32 %v4365_v37, %v8620_v40 }
0x1102   :  { %v4409_v17 = vsel %vm260_vm2, %v9730_v12, 0.0 }
0x1103   :  { %4410 = vadd.xlane.f32.xlu1 %v4409_v17 }
0x111b   :  { %v4323_v9 = vpop.permute.xlu1 %4322 }
0x111c   :  { %4353 = vst.msk [vmem:[#allocation2 + $0x40] sm:$0xff] %vm1928_vm9, %v4323_v9 }
0x111f   :  { %v4325_v10 = vpop.permute.xlu0 %4324 }
0x1120   :  { %4354 = vst.msk [vmem:[#allocation2 + $0x48] sm:$0xff] %vm1928_vm9, %v4325_v10 }
0x1123   :  { %v4327_v0 = vpop.permute.xlu1 %4326  ;;  %v4366_v55 = vld [vmem:[#allocation2 + $0x40] sm:$0xff] }
0x1124   :  { %4355 = vst.msk [vmem:[#allocation2 + $0x50] sm:$0xff] %vm1928_vm9, %v4327_v0  ;;  %v9738_v34 = vadd.f32 %v4366_v55, %v8626_v51  ;;  %v10141_v51 = vld [vmem:[#allocation4_spill] sm:$0xff] }
0x1126   :  { %v4412_v40 = vsel %vm260_vm2, %v9738_v34, 0.0 }
0x1127   :  { %v4329_v19 = vpop.permute.xlu0 %4328  ;;  %4413 = vadd.xlane.f32.xlu0 %v4412_v40  ;;  %v4367_v6 = vld [vmem:[#allocation2 + $0x48] sm:$0xff] }
0x1128   :  { %4356 = vst.msk [vmem:[#allocation2 + $0x58] sm:$0xff] %vm1928_vm9, %v4329_v19  ;;  %v9744_v39 = vadd.f32 %v4367_v6, %v10140_v25 }
0x112a   :  { %v4415_v1 = vsel %vm260_vm2, %v9744_v39, 0.0 }
0x112b   :  { %4416 = vadd.xlane.f32.xlu1 %v4415_v1  ;;  %v4331_v21 = vpop.permute.xlu1 %4330  ;;  %v4368_v14 = vld [vmem:[#allocation2 + $0x50] sm:$0xff] }
0x112c   :  { %4357 = vst.msk [vmem:[#allocation2 + $0x60] sm:$0xf] %vm1941_vm10, %v4331_v21  ;;  %v9750_v28 = vadd.f32 %v4368_v14, %v10141_v51  ;;  %v5359_v21 = vld [vmem:[%s10113_s10 + $0x8] sm:$0xff] }
0x112d   :  { %6441 = vmatpush3.msra.mxu0 %v5359_v21 }
0x112e   :  { %v4418_v29 = vsel %vm260_vm2, %v9750_v28, 0.0 }
0x112f   :  { %4419 = vadd.xlane.f32.xlu0 %v4418_v29  ;;  %v4369_v43 = vld [vmem:[#allocation2 + $0x58] sm:$0xff] }
0x1130   :  { %v9755_v50 = vadd.f32 %v4369_v43, %v10142_v58 }
0x1132   :  { %v4421_v38 = vsel %vm260_vm2, %v9755_v50, 0.0 }
0x1133   :  { %4422 = vadd.xlane.f32.xlu1 %v4421_v38  ;;  %v4370_v61 = vld [vmem:[#allocation2 + $0x60] sm:$0xf] }
0x1134   :  { %v9760_v44 = vadd.f32 %v4370_v61, %v10143_v26 }
0x1136   :  { %v4424_v13 = vsel %vm297_vm3, %v9760_v44, 0.0 }
0x1137   :  { %4425 = vadd.xlane.f32.xlu0 %v4424_v13 }
0x1170   :  { %v4390_v2 = vpop.xlane.xlu0 %4389 }
0x1171   :  { %v4427_v33 = vmul.f32 0.125, %v4390_v2 }
0x1173   :  { %v9765_v45 = vsub.f32 %v9690_v16, %v4427_v33 }
0x1174   :  { %v4393_v53 = vpop.xlane.xlu1 %4392 }
0x1175   :  { %v4428_v7 = vmul.f32 0.125, %v4393_v53  ;;  %v4453_v4 = vmul.f32 %v9765_v45, %v9765_v45 }
0x1177   :  { %v9770_v5 = vsub.f32 %v9696_v49, %v4428_v7  ;;  %v4466_v48 = vsel %vm260_vm2, %v4453_v4, 0.0 }
0x1178   :  { %4467 = vadd.xlane.f32.xlu1 %v4466_v48  ;;  %v4396_v8 = vpop.xlane.xlu0 %4395 }
0x1179   :  { %v4429_v60 = vmul.f32 0.125, %v4396_v8  ;;  %v4454_v30 = vmul.f32 %v9770_v5, %v9770_v5 }
0x117b   :  { %v9776_v31 = vsub.f32 %v9702_v22, %v4429_v60  ;;  %v4469_v54 = vsel %vm260_vm2, %v4454_v30, 0.0 }
0x117c   :  { %v4399_v36 = vpop.xlane.xlu0 %4398  ;;  %4470 = vadd.xlane.f32.xlu0 %v4469_v54 }
0x117d   :  { %v4430_v23 = vmul.f32 0.125, %v4399_v36  ;;  %v4455_v27 = vmul.f32 %v9776_v31, %v9776_v31 }
0x117f   :  { %v9782_v24 = vsub.f32 %v9708_v20, %v4430_v23  ;;  %v4472_v41 = vsel %vm260_vm2, %v4455_v27, 0.0 }
0x1180   :  { %4473 = vadd.xlane.f32.xlu1 %v4472_v41  ;;  %v4402_v32 = vpop.xlane.xlu0 %4401 }
0x1181   :  { %v4431_v59 = vmul.f32 0.125, %v4402_v32  ;;  %v4456_v18 = vmul.f32 %v9782_v24, %v9782_v24 }
0x1183   :  { %v9788_v11 = vsub.f32 %v9714_v47, %v4431_v59  ;;  %v4475_v56 = vsel %vm260_vm2, %v4456_v18, 0.0 }
0x1184   :  { %4476 = vadd.xlane.f32.xlu0 %v4475_v56  ;;  %v4405_v35 = vpop.xlane.xlu1 %4404 }
0x1185   :  { %v4432_v46 = vmul.f32 0.125, %v4405_v35  ;;  %v4457_v63 = vmul.f32 %v9788_v11, %v9788_v11 }
0x1187   :  { %v9794_v52 = vsub.f32 %v9720_v42, %v4432_v46  ;;  %v4478_v57 = vsel %vm260_vm2, %v4457_v63, 0.0 }
0x1188   :  { %4479 = vadd.xlane.f32.xlu1 %v4478_v57  ;;  %v4408_v3 = vpop.xlane.xlu0 %4407 }
0x1189   :  { %v4433_v37 = vmul.f32 0.125, %v4408_v3  ;;  %v4458_v17 = vmul.f32 %v9794_v52, %v9794_v52 }
0x118b   :  { %v9800_v9 = vsub.f32 %v9725_v62, %v4433_v37  ;;  %v4481_v10 = vsel %vm260_vm2, %v4458_v17, 0.0 }
0x118c   :  { %4482 = vadd.xlane.f32.xlu0 %v4481_v10  ;;  %v4411_v0 = vpop.xlane.xlu1 %4410 }
0x118d   :  { %v4434_v55 = vmul.f32 0.125, %v4411_v0  ;;  %v4459_v40 = vmul.f32 %v9800_v9, %v9800_v9 }
0x118f   :  { %v9806_v19 = vsub.f32 %v9730_v12, %v4434_v55  ;;  %v4484_v6 = vsel %vm260_vm2, %v4459_v40, 0.0 }
0x1190   :  { %4485 = vadd.xlane.f32.xlu1 %v4484_v6 }
0x1191   :  { %v4460_v25 = vmul.f32 %v9806_v19, %v9806_v19 }
0x1193   :  { %v4487_v1 = vsel %vm260_vm2, %v4460_v25, 0.0 }
0x1194   :  { %4488 = vadd.xlane.f32.xlu0 %v4487_v1  ;;  %v9848_v1 = vld [vmem:[%s10114_s8 + $0x1] ss:$0 sm:$0xff] }
0x11b0   :  { %v4414_v14 = vpop.xlane.xlu0 %4413 }
0x11b1   :  { %v4435_v51 = vmul.f32 0.125, %v4414_v14 }
0x11b3   :  { %v9816_v29 = vsub.f32 %v9738_v34, %v4435_v51  ;;  %v9854_v51 = vld [vmem:[%s10115_s9 + $0x1] ss:$0 sm:$0xff] }
0x11b4   :  { %v4417_v43 = vpop.xlane.xlu1 %4416 }
0x11b5   :  { %v4436_v58 = vmul.f32 0.125, %v4417_v43  ;;  %v4461_v38 = vmul.f32 %v9816_v29, %v9816_v29 }
0x11b7   :  { %v9821_v61 = vsub.f32 %v9744_v39, %v4436_v58  ;;  %v4490_v26 = vsel %vm260_vm2, %v4461_v38, 0.0 }
0x11b8   :  { %4491 = vadd.xlane.f32.xlu1 %v4490_v26  ;;  %v4420_v13 = vpop.xlane.xlu0 %4419 }
0x11b9   :  { %v4437_v2 = vmul.f32 0.125, %v4420_v13  ;;  %v4462_v33 = vmul.f32 %v9821_v61, %v9821_v61 }
0x11bb   :  { %v9827_v53 = vsub.f32 %v9750_v28, %v4437_v2  ;;  %v4493_v7 = vsel %vm260_vm2, %v4462_v33, 0.0 }
0x11bc   :  { %4494 = vadd.xlane.f32.xlu0 %v4493_v7  ;;  %v4423_v4 = vpop.xlane.xlu1 %4422 }
0x11bd   :  { %v4438_v48 = vmul.f32 0.125, %v4423_v4  ;;  %v4463_v8 = vmul.f32 %v9827_v53, %v9827_v53 }
0x11bf   :  { %v9833_v60 = vsub.f32 %v9755_v50, %v4438_v48  ;;  %v4496_v30 = vsel %vm260_vm2, %v4463_v8, 0.0 }
0x11c0   :  { %4497 = vadd.xlane.f32.xlu1 %v4496_v30  ;;  %v4426_v54 = vpop.xlane.xlu0 %4425 }
0x11c1   :  { %v4439_v36 = vmul.f32 0.125, %v4426_v54  ;;  %v4464_v23 = vmul.f32 %v9833_v60, %v9833_v60 }
0x11c3   :  { %v9839_v27 = vsub.f32 %v9760_v44, %v4439_v36  ;;  %v4499_v41 = vsel %vm260_vm2, %v4464_v23, 0.0 }
0x11c4   :  { %4500 = vadd.xlane.f32.xlu0 %v4499_v41 }
0x11c5   :  { %v4465_v32 = vmul.f32 %v9839_v27, %v9839_v27 }
0x11c7   :  { %v4502_v59 = vsel %vm297_vm3, %v4465_v32, 0.0 }
0x11c8   :  { %4503 = vadd.xlane.f32.xlu1 %v4502_v59 }
0x1201   :  { %v4468_v18 = vpop.xlane.xlu1 %4467 }
0x1202   :  { %v4505_v56 = vmul.f32 0.125, %v4468_v18 }
0x1204   :  { %v4518_v35 = vadd.f32 1e-05, %v4505_v56 }
0x1205   :  { %v4471_v46 = vpop.xlane.xlu0 %4470 }
0x1206   :  { %6850 = vrsqrt.f32 %v4518_v35  ;;  %v4506_v63 = vmul.f32 0.125, %v4471_v46 }
0x1208   :  { %v4519_v57 = vadd.f32 1e-05, %v4506_v63 }
0x1209   :  { %v4474_v3 = vpop.xlane.xlu1 %4473 }
0x120a   :  { %6852 = vrsqrt.f32 %v4519_v57  ;;  %v4507_v37 = vmul.f32 0.125, %v4474_v3 }
0x120c   :  { %v4520_v17 = vadd.f32 1e-05, %v4507_v37 }
0x120d   :  { %v4477_v10 = vpop.xlane.xlu0 %4476 }
0x120e   :  { %6854 = vrsqrt.f32 %v4520_v17  ;;  %v4508_v0 = vmul.f32 0.125, %v4477_v10 }
0x1210   :  { %v4521_v55 = vadd.f32 1e-05, %v4508_v0 }
0x1211   :  { %v4480_v40 = vpop.xlane.xlu1 %4479 }
0x1212   :  { %6856 = vrsqrt.f32 %v4521_v55  ;;  %v4509_v6 = vmul.f32 0.125, %v4480_v40 }
0x1213   :  { %v6851_v25 = vpop.eup %6850 }
0x1214   :  { %v4544_v21 = vmul.f32 %v6851_v25, %v9765_v45  ;;  %v4522_v14 = vadd.f32 1e-05, %v4509_v6 }
0x1215   :  { %v4483_v43 = vpop.xlane.xlu0 %4482 }
0x1216   :  { %v4563_v58 = vmul.f32 %v9848_v1, %v4544_v21  ;;  %6858 = vrsqrt.f32 %v4522_v14  ;;  %v4510_v38 = vmul.f32 0.125, %v4483_v43 }
0x1217   :  { %v6853_v26 = vpop.eup %6852 }
0x1218   :  { %v4582_v13 = vadd.f32 %v9854_v51, %v4563_v58  ;;  %v4545_v2 = vmul.f32 %v6853_v26, %v9770_v5  ;;  %v4523_v33 = vadd.f32 1e-05, %v4510_v38 }
0x1219   :  { %v4486_v7 = vpop.xlane.xlu1 %4485 }
0x121a   :  { %6860 = vrsqrt.f32 %v4523_v33  ;;  %v4511_v45 = vmul.f32 0.125, %v4486_v7  ;;  %6443 = vmatmul.mubr.msk.f32.vlgmr.msra.gmra.mxu0 %vm260_vm2, %v4582_v13  ;;  %v4564_v4 = vmul.f32 %v9848_v1, %v4545_v2 }
0x121b   :  { %v6855_v48 = vpop.eup %6854  ;;  %6445 = vmatprep.mubr.msk.f32.mxu0 %vm6916_vm0, %v10132_v15 }
0x121c   :  { %v4546_v8 = vmul.f32 %v6855_v48, %v9776_v31  ;;  %v4524_v30 = vadd.f32 1e-05, %v4511_v45  ;;  %v4583_v54 = vadd.f32 %v9854_v51, %v4564_v4 }
0x121d   :  { %v4489_v36 = vpop.xlane.xlu0 %4488 }
0x121e   :  { %6862 = vrsqrt.f32 %v4524_v30  ;;  %v4512_v5 = vmul.f32 0.125, %v4489_v36  ;;  %6446 = vmatmul.mubr.msk.f32.gmra.mxu0 %vm260_vm2, %v4583_v54  ;;  %v4565_v23 = vmul.f32 %v9848_v1, %v4546_v8 }
0x121f   :  { %v6857_v41 = vpop.eup %6856  ;;  %6448 = vmatprep.mubr.msk.f32.mxu0 %vm6916_vm0, %v10132_v15 }
0x1220   :  { %v4547_v32 = vmul.f32 %v6857_v41, %v9782_v24  ;;  %v4525_v59 = vadd.f32 1e-05, %v4512_v5  ;;  %v4584_v18 = vadd.f32 %v9854_v51, %v4565_v23 }
0x1222   :  { %6864 = vrsqrt.f32 %v4525_v59  ;;  %6449 = vmatmul.mubr.msk.f32.gmra.mxu0 %vm260_vm2, %v4584_v18  ;;  %v4566_v31 = vmul.f32 %v9848_v1, %v4547_v32 }
0x1223   :  { %v6859_v56 = vpop.eup %6858  ;;  %6451 = vmatprep.mubr.msk.f32.mxu0 %vm6916_vm0, %v10132_v15 }
0x1224   :  { %v4548_v35 = vmul.f32 %v6859_v56, %v9788_v11  ;;  %v4585_v46 = vadd.f32 %v9854_v51, %v4566_v31 }
0x1226   :  { %6452 = vmatmul.mubr.msk.f32.gmra.mxu0 %vm260_vm2, %v4585_v46  ;;  %v4567_v24 = vmul.f32 %v9848_v1, %v4548_v35 }
0x1227   :  { %v6861_v63 = vpop.eup %6860  ;;  %6454 = vmatprep.mubr.msk.f32.mxu0 %vm6916_vm0, %v10132_v15 }
0x1228   :  { %v4549_v57 = vmul.f32 %v6861_v63, %v9794_v52  ;;  %v4586_v3 = vadd.f32 %v9854_v51, %v4567_v24 }
0x122a   :  { %6455 = vmatmul.mubr.msk.f32.gmra.mxu0 %vm260_vm2, %v4586_v3  ;;  %v4568_v37 = vmul.f32 %v9848_v1, %v4549_v57  ;;  %v5378_v57 = vld [vmem:[%s10116_s12 + $0x38] sm:$0xff]  ;;  %v9949_v3 = vld [vmem:[%s10117_s11 + $0x1] ss:$0 sm:$0xff] }
0x122b   :  { %v6863_v17 = vpop.eup %6862  ;;  %6457 = vmatprep.mubr.msk.f32.mxu0 %vm6916_vm0, %v10132_v15  ;;  %6482 = vmatpush3.msra.mxu1 %v5378_v57 }
0x122c   :  { %v4550_v11 = vmul.f32 %v6863_v17, %v9800_v9  ;;  %v4587_v10 = vadd.f32 %v9854_v51, %v4568_v37  ;;  %6483 = vmatprep.subr.mxu1 %v10132_v15 }
0x122e   :  { %6458 = vmatmul.mubr.msk.f32.gmra.mxu0 %vm260_vm2, %v4587_v10  ;;  %v4569_v0 = vmul.f32 %v9848_v1, %v4550_v11 }
0x122f   :  { %v6865_v55 = vpop.eup %6864  ;;  %6460 = vmatprep.mubr.msk.f32.mxu0 %vm6916_vm0, %v10132_v15 }
0x1230   :  { %v4551_v52 = vmul.f32 %v6865_v55, %v9806_v19  ;;  %v4588_v40 = vadd.f32 %v9854_v51, %v4569_v0 }
0x1232   :  { %6461 = vmatmul.mubr.msk.f32.gmra.mxu0 %vm260_vm2, %v4588_v40  ;;  %v4570_v6 = vmul.f32 %v9848_v1, %v4551_v52 }
0x1233   :  { %6463 = vmatprep.mubr.msk.f32.mxu0 %vm6916_vm0, %v10132_v15 }
0x1234   :  { %v4589_v9 = vadd.f32 %v9854_v51, %v4570_v6 }
0x1236   :  { %6464 = vmatmul.mubr.msk.f32.gmra.mxu0 %vm260_vm2, %v4589_v9 }
0x1237   :  { %6466 = vmatprep.mubr.msk.f32.mxu0 %vm6916_vm0, %v10132_v15 }
0x1241   :  { %v4492_v25 = vpop.xlane.xlu1 %4491 }
0x1242   :  { %v4513_v21 = vmul.f32 0.125, %v4492_v25 }
0x1244   :  { %v4526_v14 = vadd.f32 1e-05, %v4513_v21 }
0x1245   :  { %v4495_v19 = vpop.xlane.xlu0 %4494 }
0x1246   :  { %6866 = vrsqrt.f32 %v4526_v14  ;;  %v4514_v43 = vmul.f32 0.125, %v4495_v19 }
0x1248   :  { %v4527_v58 = vadd.f32 1e-05, %v4514_v43 }
0x1249   :  { %v4498_v38 = vpop.xlane.xlu1 %4497 }
0x124a   :  { %6868 = vrsqrt.f32 %v4527_v58  ;;  %v4515_v26 = vmul.f32 0.125, %v4498_v38 }
0x124c   :  { %v4528_v13 = vadd.f32 1e-05, %v4515_v26 }
0x124d   :  { %v4501_v2 = vpop.xlane.xlu0 %4500 }
0x124e   :  { %6870 = vrsqrt.f32 %v4528_v13  ;;  %v4516_v33 = vmul.f32 0.125, %v4501_v2 }
0x1250   :  { %v4529_v7 = vadd.f32 1e-05, %v4516_v33 }
0x1251   :  { %v4504_v45 = vpop.xlane.xlu1 %4503 }
0x1252   :  { %6872 = vrsqrt.f32 %v4529_v7  ;;  %v4517_v4 = vmul.f32 0.125, %v4504_v45 }
0x1253   :  { %v6867_v48 = vpop.eup %6866 }
0x1254   :  { %v4552_v8 = vmul.f32 %v6867_v48, %v9816_v29  ;;  %v4530_v30 = vadd.f32 1e-05, %v4517_v4 }
0x1256   :  { %6874 = vrsqrt.f32 %v4530_v30  ;;  %v4571_v54 = vmul.f32 %v9848_v1, %v4552_v8 }
0x1257   :  { %v6869_v36 = vpop.eup %6868 }
0x1258   :  { %v4553_v5 = vmul.f32 %v6869_v36, %v9821_v61  ;;  %v4590_v23 = vadd.f32 %v9854_v51, %v4571_v54 }
0x125a   :  { %6467 = vmatmul.mubr.msk.f32.gmra.mxu0 %vm260_vm2, %v4590_v23  ;;  %v4572_v41 = vmul.f32 %v9848_v1, %v4553_v5 }
0x125b   :  { %v6871_v32 = vpop.eup %6870  ;;  %6469 = vmatprep.mubr.msk.f32.mxu0 %vm6916_vm0, %v10132_v15 }
0x125c   :  { %v4554_v59 = vmul.f32 %v6871_v32, %v9827_v53  ;;  %v4591_v29 = vadd.f32 %v9854_v51, %v4572_v41 }
0x125e   :  { %6470 = vmatmul.mubr.msk.f32.gmra.mxu0 %vm260_vm2, %v4591_v29  ;;  %v4573_v18 = vmul.f32 %v9848_v1, %v4554_v59 }
0x125f   :  { %v6873_v31 = vpop.eup %6872  ;;  %6472 = vmatprep.mubr.msk.f32.mxu0 %vm6916_vm0, %v10132_v15 }
0x1260   :  { %v4555_v61 = vmul.f32 %v6873_v31, %v9833_v60  ;;  %v4592_v56 = vadd.f32 %v9854_v51, %v4573_v18 }
0x1262   :  { %6473 = vmatmul.mubr.msk.f32.gmra.mxu0 %vm260_vm2, %v4592_v56  ;;  %v4574_v35 = vmul.f32 %v9848_v1, %v4555_v61 }
0x1263   :  { %v6875_v46 = vpop.eup %6874  ;;  %6475 = vmatprep.mubr.msk.f32.mxu0 %vm6916_vm0, %v10132_v15 }
0x1264   :  { %v4556_v53 = vmul.f32 %v6875_v46, %v9839_v27  ;;  %v4593_v24 = vadd.f32 %v9854_v51, %v4574_v35  ;;  %v5377_v27 = vld [vmem:[%s10116_s12 + $0x30] sm:$0xff] }
0x1265   :  { %6484 = vmatpush3.msra.mxu1 %v5377_v27 }
0x1266   :  { %6476 = vmatmul.mubr.msk.f32.gmra.mxu0 %vm260_vm2, %v4593_v24  ;;  %v4575_v63 = vmul.f32 %v9848_v1, %v4556_v53  ;;  %6485 = vmatprep.subr.mxu1 %v10132_v15  ;;  %v5376_v1 = vld [vmem:[%s10116_s12 + $0x28] sm:$0xff] }
0x1267   :  { %6478 = vmatprep.mubr.msk.f32.mxu0 %vm6916_vm0, %v10132_v15  ;;  %6486 = vmatpush3.msra.mxu1 %v5376_v1 }
0x1268   :  { %v4594_v60 = vadd.f32 %v9854_v51, %v4575_v63  ;;  %6487 = vmatprep.subr.mxu1 %v10132_v15  ;;  %v5375_v51 = vld [vmem:[%s10116_s12 + $0x20] sm:$0xff] }
0x1269   :  { %6488 = vmatpush3.msra.mxu1 %v5375_v51 }
0x126a   :  { %6479 = vmatmul.mubr.msk.f32.gmra.mxu0 %vm260_vm2, %v4594_v60 }
0x12da   :  { %v4710_v37 = vpop.f32.mrf.mxu0 }
0x12db   :  { %v4711_v17 = vadd.f32 %v9949_v3, %v4710_v37 }
0x12dc   :  { %v6444_v11 = vpop.f32.mrf.mxu0 }
0x12dd   :  { %v4787_v10 = vmul.f32 0.044715, %v4711_v17  ;;  %v4774_v51 = vmul.f32 0.5, %v4711_v17 }
0x12de   :  { %v4715_v0 = vpop.f32.mrf.mxu0 }
0x12df   :  { %v4800_v55 = vmul.f32 %v4787_v10, %v4711_v17  ;;  %v4716_v52 = vadd.f32 %v9949_v3, %v4715_v0 }
0x12e0   :  { %v6447_v40 = vpop.f32.mrf.mxu0 }
0x12e1   :  { %v4813_v6 = vmul.f32 %v4800_v55, %v4711_v17  ;;  %v4788_v9 = vmul.f32 0.044715, %v4716_v52 }
0x12e2   :  { %v4720_v25 = vpop.f32.mrf.mxu0 }
0x12e3   :  { %v4826_v21 = vadd.f32 %v4813_v6, %v4711_v17  ;;  %v4801_v14 = vmul.f32 %v4788_v9, %v4716_v52  ;;  %v9954_v19 = vadd.f32 %v9949_v3, %v4720_v25 }
0x12e4   :  { %v6450_v43 = vpop.f32.mrf.mxu0 }
0x12e5   :  { %v4839_v58 = vmul.f32 0.7978846, %v4826_v21  ;;  %v4814_v38 = vmul.f32 %v4801_v14, %v4716_v52  ;;  %v4789_v26 = vmul.f32 0.044715, %v9954_v19  ;;  %v4775_v43 = vmul.f32 0.5, %v4716_v52 }
0x12e6   :  { %v4725_v13 = vpop.f32.mrf.mxu0 }
0x12e7   :  { %6876 = vtanh.f32 %v4839_v58  ;;  %v4827_v2 = vadd.f32 %v4814_v38, %v4716_v52  ;;  %v4802_v33 = vmul.f32 %v4789_v26, %v9954_v19  ;;  %v9959_v7 = vadd.f32 %v9949_v3, %v4725_v13 }
0x12e8   :  { %v6453_v45 = vpop.f32.mrf.mxu0 }
0x12e9   :  { %v4840_v4 = vmul.f32 0.7978846, %v4827_v2  ;;  %v4815_v48 = vmul.f32 %v4802_v33, %v9954_v19  ;;  %v4790_v8 = vmul.f32 0.044715, %v9959_v7 }
0x12ea   :  { %v4730_v30 = vpop.f32.mrf.mxu0 }
0x12eb   :  { %6878 = vtanh.f32 %v4840_v4  ;;  %v4828_v54 = vadd.f32 %v4815_v48, %v9954_v19  ;;  %v4803_v36 = vmul.f32 %v4790_v8, %v9959_v7  ;;  %v9966_v5 = vadd.f32 %v9949_v3, %v4730_v30 }
0x12ec   :  { %v6456_v23 = vpop.f32.mrf.mxu0  ;;  %v4776_v4 = vmul.f32 0.5, %v9954_v19 }
0x12ed   :  { %v4841_v41 = vmul.f32 0.7978846, %v4828_v54  ;;  %v4816_v32 = vmul.f32 %v4803_v36, %v9959_v7  ;;  %v4791_v59 = vmul.f32 0.044715, %v9966_v5  ;;  %v4777_v23 = vmul.f32 0.5, %v9959_v7 }
0x12ee   :  { %v4735_v29 = vpop.f32.mrf.mxu0 }
0x12ef   :  { %6880 = vtanh.f32 %v4841_v41  ;;  %v4829_v18 = vadd.f32 %v4816_v32, %v9959_v7  ;;  %v4804_v31 = vmul.f32 %v4791_v59, %v9966_v5  ;;  %v4736_v61 = vadd.f32 %v9949_v3, %v4735_v29 }
0x12f0   :  { %v6459_v56 = vpop.f32.mrf.mxu0  ;;  %v4778_v29 = vmul.f32 0.5, %v9966_v5 }
0x12f1   :  { %v4842_v35 = vmul.f32 0.7978846, %v4829_v18  ;;  %v4817_v46 = vmul.f32 %v4804_v31, %v9966_v5  ;;  %v4792_v53 = vmul.f32 0.044715, %v4736_v61  ;;  %v4779_v56 = vmul.f32 0.5, %v4736_v61 }
0x12f2   :  { %v4740_v24 = vpop.f32.mrf.mxu0 }
0x12f3   :  { %6882 = vtanh.f32 %v4842_v35  ;;  %v4830_v63 = vadd.f32 %v4817_v46, %v9966_v5  ;;  %v4805_v60 = vmul.f32 %v4792_v53, %v4736_v61  ;;  %v4741_v57 = vadd.f32 %v9949_v3, %v4740_v24 }
0x12f4   :  { %v6877_v27 = vpop.eup %6876  ;;  %v6462_v1 = vpop.f32.mrf.mxu0 }
0x12f5   :  { %v4865_v37 = vadd.f32 1.0, %v6877_v27  ;;  %v4843_v11 = vmul.f32 0.7978846, %v4830_v63  ;;  %v4818_v10 = vmul.f32 %v4805_v60, %v4736_v61  ;;  %v4793_v0 = vmul.f32 0.044715, %v4741_v57 }
0x12f6   :  { %v4745_v55 = vpop.f32.mrf.mxu0  ;;  %v4780_v5 = vmul.f32 0.5, %v4741_v57 }
0x12f7   :  { %v4878_v40 = vmul.f32 %v4865_v37, %v4774_v51  ;;  %6884 = vtanh.f32 %v4843_v11  ;;  %v4831_v6 = vadd.f32 %v4818_v10, %v4736_v61  ;;  %v4746_v9 = vadd.f32 %v9949_v3, %v4745_v55 }
0x12f8   :  { %v6879_v25 = vpop.eup %6878  ;;  %v4806_v21 = vmul.f32 %v4793_v0, %v4741_v57  ;;  %v6465_v14 = vpop.f32.mrf.mxu0 }
0x12f9   :  { %v4844_v58 = vmul.f32 0.7978846, %v4831_v6  ;;  %v4794_v38 = vmul.f32 0.044715, %v4746_v9  ;;  %6490 = vmatmul.mubr.msk.f32.vlgmr.msra.gmra.mxu1 %vm2476_vm11, %v4878_v40  ;;  %v4866_v26 = vadd.f32 1.0, %v6879_v25  ;;  %v4781_v27 = vmul.f32 0.5, %v4746_v9 }
0x12fa   :  { %v4819_v17 = vmul.f32 %v4806_v21, %v4741_v57  ;;  %6492 = vmatprep.mubr.msk.f32.mxu1 %vm6916_vm0, %v10132_v15 }
0x12fb   :  { %6886 = vtanh.f32 %v4844_v58  ;;  %v4807_v13 = vmul.f32 %v4794_v38, %v4746_v9  ;;  %v4879_v2 = vmul.f32 %v4866_v26, %v4775_v43 }
0x12fc   :  { %v6881_v33 = vpop.eup %6880  ;;  %v4832_v45 = vadd.f32 %v4819_v17, %v4741_v57 }
0x12fd   :  { %v4820_v48 = vmul.f32 %v4807_v13, %v4746_v9  ;;  %6493 = vmatmul.mubr.msk.f32.gmra.mxu1 %vm2476_vm11, %v4879_v2  ;;  %v4867_v52 = vadd.f32 1.0, %v6881_v33 }
0x12fe   :  { %v4845_v8 = vmul.f32 0.7978846, %v4832_v45  ;;  %6495 = vmatprep.mubr.msk.f32.mxu1 %vm6916_vm0, %v10132_v15 }
0x12ff   :  { %v4833_v30 = vadd.f32 %v4820_v48, %v4746_v9  ;;  %v4880_v54 = vmul.f32 %v4867_v52, %v4776_v4 }
0x1300   :  { %v6883_v36 = vpop.eup %6882  ;;  %6888 = vtanh.f32 %v4845_v8 }
0x1301   :  { %v4846_v41 = vmul.f32 0.7978846, %v4833_v30  ;;  %6496 = vmatmul.mubr.msk.f32.gmra.mxu1 %vm2476_vm11, %v4880_v54  ;;  %v4868_v32 = vadd.f32 1.0, %v6883_v36 }
0x1302   :  { %6498 = vmatprep.mubr.msk.f32.mxu1 %vm6916_vm0, %v10132_v15 }
0x1303   :  { %6890 = vtanh.f32 %v4846_v41  ;;  %v4881_v19 = vmul.f32 %v4868_v32, %v4777_v23 }
0x1304   :  { %v6885_v59 = vpop.eup %6884 }
0x1305   :  { %6499 = vmatmul.mubr.msk.f32.gmra.mxu1 %vm2476_vm11, %v4881_v19  ;;  %v4869_v18 = vadd.f32 1.0, %v6885_v59 }
0x1306   :  { %6501 = vmatprep.mubr.msk.f32.mxu1 %vm6916_vm0, %v10132_v15 }
0x1307   :  { %v4882_v31 = vmul.f32 %v4869_v18, %v4778_v29 }
0x1308   :  { %v6887_v7 = vpop.eup %6886 }
0x1309   :  { %6502 = vmatmul.mubr.msk.f32.gmra.mxu1 %vm2476_vm11, %v4882_v31  ;;  %v4870_v35 = vadd.f32 1.0, %v6887_v7 }
0x130a   :  { %6504 = vmatprep.mubr.msk.f32.mxu1 %vm6916_vm0, %v10132_v15 }
0x130b   :  { %v4883_v46 = vmul.f32 %v4870_v35, %v4779_v56 }
0x130d   :  { %v6889_v53 = vpop.eup %6888  ;;  %6505 = vmatmul.mubr.msk.f32.gmra.mxu1 %vm2476_vm11, %v4883_v46 }
0x130e   :  { %6507 = vmatprep.mubr.msk.f32.mxu1 %vm6916_vm0, %v10132_v15  ;;  %v4871_v24 = vadd.f32 1.0, %v6889_v53 }
0x1310   :  { %v6891_v63 = vpop.eup %6890  ;;  %v4884_v60 = vmul.f32 %v4871_v24, %v4780_v5 }
0x1311   :  { %v4872_v1 = vadd.f32 1.0, %v6891_v63 }
0x1312   :  { %6508 = vmatmul.mubr.msk.f32.gmra.mxu1 %vm2476_vm11, %v4884_v60 }
0x1313   :  { %6510 = vmatprep.mubr.msk.f32.mxu1 %vm6916_vm0, %v10132_v15  ;;  %v4885_v61 = vmul.f32 %v4872_v1, %v4781_v27 }
0x1316   :  { %6511 = vmatmul.mubr.msk.f32.gmra.mxu1 %vm2476_vm11, %v4885_v61 }
0x1317   :  { %6513 = vmatprep.mubr.msk.f32.mxu1 %vm6916_vm0, %v10132_v15 }
0x131a   :  { %v4750_v57 = vpop.f32.mrf.mxu0 }
0x131b   :  { %v4751_v51 = vadd.f32 %v9949_v3, %v4750_v57 }
0x131c   :  { %v6468_v37 = vpop.f32.mrf.mxu0 }
0x131d   :  { %v4795_v11 = vmul.f32 0.044715, %v4751_v51  ;;  %v4782_v46 = vmul.f32 0.5, %v4751_v51 }
0x131e   :  { %v4755_v10 = vpop.f32.mrf.mxu0 }
0x131f   :  { %v4808_v0 = vmul.f32 %v4795_v11, %v4751_v51  ;;  %v4756_v55 = vadd.f32 %v9949_v3, %v4755_v10 }
0x1320   :  { %v6471_v40 = vpop.f32.mrf.mxu0 }
0x1321   :  { %v4821_v6 = vmul.f32 %v4808_v0, %v4751_v51  ;;  %v4796_v9 = vmul.f32 0.044715, %v4756_v55  ;;  %v4783_v60 = vmul.f32 0.5, %v4756_v55 }
0x1322   :  { %v4760_v25 = vpop.f32.mrf.mxu0 }
0x1323   :  { %v4834_v21 = vadd.f32 %v4821_v6, %v4751_v51  ;;  %v4809_v14 = vmul.f32 %v4796_v9, %v4756_v55  ;;  %v4761_v43 = vadd.f32 %v9949_v3, %v4760_v25 }
0x1324   :  { %v6474_v58 = vpop.f32.mrf.mxu0 }
0x1325   :  { %v4847_v38 = vmul.f32 0.7978846, %v4834_v21  ;;  %v4822_v26 = vmul.f32 %v4809_v14, %v4756_v55  ;;  %v4797_v17 = vmul.f32 0.044715, %v4761_v43  ;;  %v4784_v61 = vmul.f32 0.5, %v4761_v43 }
0x1326   :  { %v4765_v13 = vpop.f32.mrf.mxu0  ;;  %v10025_v21 = vld [vmem:[%s10118_s13 + $0x1] ss:$0 sm:$0xff] }
0x1327   :  { %6892 = vtanh.f32 %v4847_v38  ;;  %v4835_v2 = vadd.f32 %v4822_v26, %v4756_v55  ;;  %v4810_v33 = vmul.f32 %v4797_v17, %v4761_v43  ;;  %v4766_v45 = vadd.f32 %v9949_v3, %v4765_v13 }
0x1328   :  { %v6477_v4 = vpop.f32.mrf.mxu0 }
0x1329   :  { %v4848_v48 = vmul.f32 0.7978846, %v4835_v2  ;;  %v4823_v52 = vmul.f32 %v4810_v33, %v4761_v43  ;;  %v4798_v8 = vmul.f32 0.044715, %v4766_v45  ;;  %v4785_v11 = vmul.f32 0.5, %v4766_v45 }
0x132a   :  { %v4770_v30 = vpop.f32.mrf.mxu0 }
0x132b   :  { %6894 = vtanh.f32 %v4848_v48  ;;  %v4836_v54 = vadd.f32 %v4823_v52, %v4761_v43  ;;  %v4811_v36 = vmul.f32 %v4798_v8, %v4766_v45  ;;  %v4771_v23 = vadd.f32 %v9949_v3, %v4770_v30 }
0x132c   :  { %v6480_v41 = vpop.f32.mrf.mxu0 }
0x132d   :  { %v4849_v32 = vmul.f32 0.7978846, %v4836_v54  ;;  %v4824_v19 = vmul.f32 %v4811_v36, %v4766_v45  ;;  %v4799_v59 = vmul.f32 0.044715, %v4771_v23  ;;  %v4786_v40 = vmul.f32 0.5, %v4771_v23 }
0x132f   :  { %6896 = vtanh.f32 %v4849_v32  ;;  %v4837_v29 = vadd.f32 %v4824_v19, %v4766_v45  ;;  %v4812_v18 = vmul.f32 %v4799_v59, %v4771_v23 }
0x1331   :  { %v4850_v31 = vmul.f32 0.7978846, %v4837_v29  ;;  %v4825_v7 = vmul.f32 %v4812_v18, %v4771_v23 }
0x1333   :  { %6898 = vtanh.f32 %v4850_v31  ;;  %v4838_v56 = vadd.f32 %v4825_v7, %v4771_v23 }
0x1334   :  { %v6893_v35 = vpop.eup %6892 }
0x1335   :  { %v4851_v53 = vmul.f32 0.7978846, %v4838_v56  ;;  %v4873_v5 = vadd.f32 1.0, %v6893_v35 }
0x1337   :  { %6900 = vtanh.f32 %v4851_v53  ;;  %v4886_v24 = vmul.f32 %v4873_v5, %v4782_v46 }
0x1338   :  { %v6895_v63 = vpop.eup %6894 }
0x1339   :  { %6514 = vmatmul.mubr.msk.f32.gmra.mxu1 %vm2476_vm11, %v4886_v24  ;;  %v4874_v3 = vadd.f32 1.0, %v6895_v63 }
0x133a   :  { %6516 = vmatprep.mubr.msk.f32.mxu1 %vm6916_vm0, %v10132_v15 }
0x133b   :  { %v4887_v27 = vmul.f32 %v4874_v3, %v4783_v60 }
0x133c   :  { %v6897_v1 = vpop.eup %6896 }
0x133d   :  { %6517 = vmatmul.mubr.msk.f32.gmra.mxu1 %vm2476_vm11, %v4887_v27  ;;  %v4875_v57 = vadd.f32 1.0, %v6897_v1 }
0x133e   :  { %6519 = vmatprep.mubr.msk.f32.mxu1 %vm6916_vm0, %v10132_v15 }
0x133f   :  { %v4888_v51 = vmul.f32 %v4875_v57, %v4784_v61 }
0x1340   :  { %v6899_v37 = vpop.eup %6898 }
0x1341   :  { %6520 = vmatmul.mubr.msk.f32.gmra.mxu1 %vm2476_vm11, %v4888_v51  ;;  %v4876_v10 = vadd.f32 1.0, %v6899_v37 }
0x1342   :  { %6522 = vmatprep.mubr.msk.f32.mxu1 %vm6916_vm0, %v10132_v15 }
0x1343   :  { %v4889_v0 = vmul.f32 %v4876_v10, %v4785_v11 }
0x1344   :  { %v6901_v55 = vpop.eup %6900 }
0x1345   :  { %6523 = vmatmul.mubr.msk.f32.gmra.mxu1 %vm2476_vm11, %v4889_v0  ;;  %v4877_v6 = vadd.f32 1.0, %v6901_v55 }
0x1346   :  { %6525 = vmatprep.mubr.msk.f32.mxu1 %vm6916_vm0, %v10132_v15 }
0x1347   :  { %v4890_v9 = vmul.f32 %v4877_v6, %v4786_v40 }
0x1349   :  { %6526 = vmatmul.mubr.msk.f32.gmra.mxu1 %vm2476_vm11, %v4890_v9 }
0x13b9   :  { %v5001_v25 = vpop.f32.mrf.mxu1 }
0x13ba   :  { %v5065_v14 = vadd.f32 %v5001_v25, %v9690_v16 }
0x13bb   :  { %v6491_v43 = vpop.f32.mrf.mxu1 }
0x13bc   :  { %v5086_v58 = vadd.f32 %v10025_v21, %v5065_v14 }
0x13bd   :  { %v5006_v38 = vpop.f32.mrf.mxu1 }
0x13be   :  { %5099 = vst.msk [vmem:[%s10119_s14] sm:$0xff] %vm260_vm2, %v5086_v58  ;;  %v5066_v15 = vadd.f32 %v5006_v38, %v9696_v49 }
0x13bf   :  { %v6494_v26 = vpop.f32.mrf.mxu1 }
0x13c0   :  { %v5087_v17 = vadd.f32 %v10025_v21, %v5066_v15 }
0x13c1   :  { %v5011_v13 = vpop.f32.mrf.mxu1 }
0x13c2   :  { %5100 = vst.msk [vmem:[%s10119_s14 + $0x8] sm:$0xff] %vm260_vm2, %v5087_v17  ;;  %v5067_v16 = vadd.f32 %v5011_v13, %v9702_v22 }
0x13c3   :  { %v6497_v2 = vpop.f32.mrf.mxu1 }
0x13c4   :  { %v5088_v33 = vadd.f32 %v10025_v21, %v5067_v16 }
0x13c5   :  { %v5016_v45 = vpop.f32.mrf.mxu1 }
0x13c6   :  { %5101 = vst.msk [vmem:[%s10119_s14 + $0x10] sm:$0xff] %vm260_vm2, %v5088_v33  ;;  %v5068_v49 = vadd.f32 %v5016_v45, %v9708_v20 }
0x13c7   :  { %v6500_v4 = vpop.f32.mrf.mxu1 }
0x13c8   :  { %v5089_v48 = vadd.f32 %v10025_v21, %v5068_v49 }
0x13c9   :  { %v5021_v52 = vpop.f32.mrf.mxu1 }
0x13ca   :  { %5102 = vst.msk [vmem:[%s10119_s14 + $0x18] sm:$0xff] %vm260_vm2, %v5089_v48  ;;  %v5069_v22 = vadd.f32 %v5021_v52, %v9714_v47 }
0x13cb   :  { %v6503_v8 = vpop.f32.mrf.mxu1 }
0x13cc   :  { %v5090_v30 = vadd.f32 %v10025_v21, %v5069_v22 }
0x13cd   :  { %v5026_v54 = vpop.f32.mrf.mxu1 }
0x13ce   :  { %5103 = vst.msk [vmem:[%s10119_s14 + $0x20] sm:$0xff] %vm260_vm2, %v5090_v30  ;;  %v5070_v20 = vadd.f32 %v5026_v54, %v9720_v42 }
0x13cf   :  { %v6506_v36 = vpop.f32.mrf.mxu1 }
0x13d0   :  { %v5091_v23 = vadd.f32 %v10025_v21, %v5070_v20 }
0x13d2   :  { %5104 = vst.msk [vmem:[%s10119_s14 + $0x28] sm:$0xff] %vm260_vm2, %v5091_v23  ;;  %v5031_v47 = vpop.f32.mrf.mxu1 }
0x13d3   :  { %v5071_v41 = vadd.f32 %v5031_v47, %v9725_v62 }
0x13d4   :  { %v6509_v32 = vpop.f32.mrf.mxu1 }
0x13d5   :  { %v5092_v19 = vadd.f32 %v10025_v21, %v5071_v41 }
0x13d6   :  { %v5036_v59 = vpop.f32.mrf.mxu1 }
0x13d7   :  { %5105 = vst.msk [vmem:[%s10119_s14 + $0x30] sm:$0xff] %vm260_vm2, %v5092_v19  ;;  %v5072_v42 = vadd.f32 %v5036_v59, %v9730_v12 }
0x13d8   :  { %v6512_v29 = vpop.f32.mrf.mxu1 }
0x13d9   :  { %v5093_v18 = vadd.f32 %v10025_v21, %v5072_v42 }
0x13db   :  { %5106 = vst.msk [vmem:[%s10119_s14 + $0x38] sm:$0xff] %vm260_vm2, %v5093_v18 }
0x13f9   :  { %v5041_v62 = vpop.f32.mrf.mxu1 }
0x13fa   :  { %v5073_v31 = vadd.f32 %v5041_v62, %v9738_v34 }
0x13fb   :  { %v6515_v7 = vpop.f32.mrf.mxu1 }
0x13fc   :  { %v5094_v56 = vadd.f32 %v10025_v21, %v5073_v31 }
0x13fd   :  { %v5046_v35 = vpop.f32.mrf.mxu1 }
0x13fe   :  { %5107 = vst.msk [vmem:[%s10119_s14 + $0x40] sm:$0xff] %vm260_vm2, %v5094_v56  ;;  %v5074_v12 = vadd.f32 %v5046_v35, %v9744_v39 }
0x13ff   :  { %v6518_v46 = vpop.f32.mrf.mxu1 }
0x1400   :  { %v5095_v53 = vadd.f32 %v10025_v21, %v5074_v12 }
0x1401   :  { %v5051_v5 = vpop.f32.mrf.mxu1 }
0x1402   :  { %5108 = vst.msk [vmem:[%s10119_s14 + $0x48] sm:$0xff] %vm260_vm2, %v5095_v53  ;;  %v5075_v34 = vadd.f32 %v5051_v5, %v9750_v28 }
0x1403   :  { %v6521_v24 = vpop.f32.mrf.mxu1 }
0x1404   :  { %v5096_v63 = vadd.f32 %v10025_v21, %v5075_v34 }
0x1405   :  { %v5056_v60 = vpop.f32.mrf.mxu1 }
0x1406   :  { %5109 = vst.msk [vmem:[%s10119_s14 + $0x50] sm:$0xff] %vm260_vm2, %v5096_v63  ;;  %v5076_v39 = vadd.f32 %v5056_v60, %v9755_v50 }
0x1407   :  { %v6524_v3 = vpop.f32.mrf.mxu1 }
0x1408   :  { %v5097_v27 = vadd.f32 %v10025_v21, %v5076_v39 }
0x1409   :  { %v5061_v1 = vpop.f32.mrf.mxu1 }
0x140a   :  { %5110 = vst.msk [vmem:[%s10119_s14 + $0x58] sm:$0xff] %vm260_vm2, %v5097_v27  ;;  %v5077_v28 = vadd.f32 %v5061_v1, %v9760_v44 }
0x140b   :  { %v6527_v61 = vpop.f32.mrf.mxu1 }
0x140c   :  { %v5098_v57 = vadd.f32 %v10025_v21, %v5077_v28 }
0x140e   :  { %5111 = vst.msk [vmem:[%s10119_s14 + $0x60] sm:$0xf] %vm297_vm3, %v5098_v57 }

</bundles_post_ra>
